<compile_context>
chip_gen: v7x
topology: tpu7x:2x2x1
jax: 0.10.0
libtpu: 0.0.40
codegen_flags: <defaults>
</compile_context>

<pallas_src>
import jax
import jax.numpy as jnp
from jax import lax
from jax.experimental import pallas as pl
from jax.experimental.pallas import tpu as pltpu


def _round_up(n: int, m: int) -> int:
    return ((n + m - 1) // m) * m


# ---------------------------------------------------------------------------
# Kernel 1: all residual LSTM layers, one batch tile per grid step
# ---------------------------------------------------------------------------
def lstm_stack_kernel(x_ref, wih_ref, whh_ref, b_ref, out_ref, xw_scr):
    """Residual LSTM stack on one batch tile, fully VMEM-resident.

    Shapes (padded to hardware tiles):
      x_ref:   (S, BT, HP)    f32 time-major embedded input (this batch tile)
      wih_ref: (L, HP, 4*HP)  bf16 per-layer W_ih^T, gate blocks lane-padded
      whh_ref: (L, HP, 4*HP)  bf16 per-layer W_hh^T, gate blocks lane-padded
      b_ref:   (L, 1, 4*HP)   f32 per-layer b_ih + b_hh
      out_ref: (S, BT, HP)    f32 final activation; also serves as the
                              inter-layer activation buffer (written in place)
    Scratch:
      xw_scr:  (S, BT, 4*HP)  f32 hoisted input projection x @ W_ih^T + b
    """
    S, BT, HP = out_ref.shape
    L = wih_ref.shape[0]
    G = 4 * HP

    for l in range(L):  # static layer count; weights stay VMEM resident
        # Layer 0 reads the input block directly (no initial copy); later
        # layers read the previous layer's output in place from out_ref.
        src = x_ref if l == 0 else out_ref

        # Hoisted input projection: one (S*BT, HP) @ (HP, 4HP) bf16 MXU matmul
        # per layer instead of S tiny per-step matmuls.  f32 accumulation.
        x_all = src[...].astype(jnp.bfloat16).reshape(S * BT, HP)
        xw = (jnp.dot(x_all, wih_ref[l], preferred_element_type=jnp.float32)
              + b_ref[l])
        xw_scr[...] = xw.reshape(S, BT, G)

        def step(t, carry):
            # h/c live in vregs (loop carry) -> no per-step VMEM round-trip.
            h_prev, c_prev = carry
            z = xw_scr[t] + jnp.dot(h_prev.astype(jnp.bfloat16), whh_ref[l],
                                    preferred_element_type=jnp.float32)
            # PyTorch LSTM gate order i, f, g, o; each gate is a lane-aligned
            # 128-wide block (gate-padded weight layout) -> whole-vreg slices.
            i_g = jax.nn.sigmoid(z[:, 0 * HP:1 * HP])
            f_g = jax.nn.sigmoid(z[:, 1 * HP:2 * HP])
            g_g = jnp.tanh(z[:, 2 * HP:3 * HP])
            o_g = jax.nn.sigmoid(z[:, 3 * HP:4 * HP])
            c_new = f_g * c_prev + i_g * g_g
            h_new = o_g * jnp.tanh(c_new)
            # Residual add (E == H): input IS the residual.
            out_ref[t] = h_new + src[t]
            return h_new, c_new

        h0 = jnp.zeros((BT, HP), jnp.float32)
        c0 = jnp.zeros((BT, HP), jnp.float32)
        # S is small/static here -> fully unroll for LLO scheduler visibility.
        # TODO(synk): at production sequence lengths use a bounded unroll
        # factor to keep code size in check.
        lax.fori_loop(0, S, step, (h0, c0), unroll=True)


# ---------------------------------------------------------------------------
# Kernel 2: tied-weight output projection, tiled over (row tiles, vocab tiles)
# ---------------------------------------------------------------------------
def out_proj_kernel(a_ref, w_ref, b_ref, o_ref):
    """o = a @ w + b  with bf16 MXU operands and f32 accumulation.

      a_ref: (TM, HP) f32 activation rows     w_ref: (HP, TN) bf16 tied weight
      b_ref: (1, TN)  f32 bias                o_ref: (TM, TN) f32 logits tile
    """
    o_ref[...] = (jnp.dot(a_ref[...].astype(jnp.bfloat16), w_ref[...],
                          preferred_element_type=jnp.float32)
                  + b_ref[...])


# ---------------------------------------------------------------------------
# Parameter packing: transpose + pad weights so every gate block is 128 lanes;
# store matmul weights in bf16.  Padded columns/rows are zero, so padded
# hidden lanes stay exactly zero through the recurrence
# (sigmoid(0)=0.5 gating a zero cell -> h_pad == 0).
# ---------------------------------------------------------------------------
def _pack_layer(wih, whh, b_ih, b_hh, H, HP):
    E = wih.shape[1]
    wih_t = wih.T.astype(jnp.float32)          # (E, 4H)
    whh_t = whh.T.astype(jnp.float32)          # (H, 4H)
    b = (b_ih + b_hh).astype(jnp.float32)      # (4H,)
    wih_p = jnp.zeros((HP, 4 * HP), jnp.float32)
    whh_p = jnp.zeros((HP, 4 * HP), jnp.float32)
    b_p = jnp.zeros((1, 4 * HP), jnp.float32)
    for g in range(4):
        wih_p = wih_p.at[:E, g * HP:g * HP + H].set(wih_t[:, g * H:(g + 1) * H])
        whh_p = whh_p.at[:H, g * HP:g * HP + H].set(whh_t[:, g * H:(g + 1) * H])
        b_p = b_p.at[0, g * HP:g * HP + H].set(b[g * H:(g + 1) * H])
    return wih_p.astype(jnp.bfloat16), whh_p.astype(jnp.bfloat16), b_p


def _pick_tile(total: int, candidates=(2048, 1024, 512, 256, 128)) -> int:
    for c in candidates:
        if total % c == 0:
            return c
    return total


@jax.jit
def lstm_model_forward(token_ids, params):
    """token_ids: (B, S) int32 -> logits (B, S, V)."""
    emb = params["embedding"]                       # (V, E)
    V, E = emb.shape
    layers = params["layers"]
    H = layers[0]["whh"].shape[1]
    assert E == H, "residual path without projection requires E == H"
    B, S = token_ids.shape
    L = len(layers)

    HP = max(128, _round_up(H, 128))                # lane tile
    VP = max(128, _round_up(V, 128))
    BT = min(max(8, _round_up(B, 8)), 256)          # batch tile (sublane-aligned)
    BP = _round_up(B, BT)
    grid_b = BP // BT

    # Embedding gather directly in time-major order (no activation transpose).
    x_tm = jnp.take(emb, token_ids.T, axis=0).astype(jnp.float32)   # (S, B, E)
    x_pad = jnp.pad(x_tm, ((0, 0), (0, BP - B), (0, HP - E)))

    wih_l, whh_l, b_l = [], [], []
    for layer in layers:
        wih_p, whh_p, b_p = _pack_layer(layer["wih"], layer["whh"],
                                        layer["b_ih"], layer["b_hh"], H, HP)
        wih_l.append(wih_p)
        whh_l.append(whh_p)
        b_l.append(b_p)
    wih_all = jnp.stack(wih_l)                      # (L, HP, 4HP) bf16
    whh_all = jnp.stack(whh_l)                      # (L, HP, 4HP) bf16
    b_all = jnp.stack(b_l)                          # (L, 1, 4HP)  f32

    vmem_limit = 48 * 1024 * 1024                   # fits v7x's 64 MiB physical

    # ---- Kernel 1: residual LSTM stack, grid over batch tiles ("parallel") --
    act = pl.pallas_call(
        lstm_stack_kernel,
        out_shape=jax.ShapeDtypeStruct((S, BP, HP), jnp.float32),
        grid_spec=pltpu.PrefetchScalarGridSpec(
            num_scalar_prefetch=0,
            grid=(grid_b,),
            in_specs=[
                pl.BlockSpec((S, BT, HP), lambda b: (0, b, 0)),       # x tile
                pl.BlockSpec((L, HP, 4 * HP), lambda b: (0, 0, 0)),   # W_ih^T
                pl.BlockSpec((L, HP, 4 * HP), lambda b: (0, 0, 0)),   # W_hh^T
                pl.BlockSpec((L, 1, 4 * HP), lambda b: (0, 0, 0)),    # bias
            ],
            out_specs=pl.BlockSpec((S, BT, HP), lambda b: (0, b, 0)),
            scratch_shapes=[
                pltpu.VMEM((S, BT, 4 * HP), jnp.float32),   # hoisted x@W_ih^T+b
            ],
        ),
        compiler_params=pltpu.CompilerParams(
            dimension_semantics=("parallel",),
            vmem_limit_bytes=vmem_limit),
    )(x_pad, wih_all, whh_all, b_all)

    # ---- Kernel 2: tied output projection, tiled over rows x vocab ----------
    wout = jnp.zeros((HP, VP), jnp.bfloat16).at[:E, :V].set(
        emb.T.astype(jnp.bfloat16))
    bout = jnp.zeros((1, VP), jnp.float32).at[0, :V].set(
        params["out_bias"].astype(jnp.float32))

    M = S * BP
    act_flat = act.reshape(M, HP)                   # contiguous -> no copy
    TM = min(M, 256)
    MP = _round_up(M, TM)
    if MP != M:
        act_flat = jnp.pad(act_flat, ((0, MP - M), (0, 0)))
    TN = _pick_tile(VP)

    logits_flat = pl.pallas_call(
        out_proj_kernel,
        out_shape=jax.ShapeDtypeStruct((MP, VP), jnp.float32),
        grid_spec=pltpu.PrefetchScalarGridSpec(
            num_scalar_prefetch=0,
            grid=(MP // TM, VP // TN),
            in_specs=[
                pl.BlockSpec((TM, HP), lambda i, j: (i, 0)),   # activation rows
                pl.BlockSpec((HP, TN), lambda i, j: (0, j)),   # W_out^T tile
                pl.BlockSpec((1, TN), lambda i, j: (0, j)),    # bias tile
            ],
            out_specs=pl.BlockSpec((TM, TN), lambda i, j: (i, j)),
        ),
        compiler_params=pltpu.CompilerParams(
            dimension_semantics=("parallel", "parallel"),
            vmem_limit_bytes=vmem_limit),
    )(act_flat, wout, bout)

    # Strip padding and return batch-first logits.
    logits = logits_flat[:M].reshape(S, BP, VP)[:, :B, :V]
    return jnp.swapaxes(logits, 0, 1)


# ---------------------------------------------------------------------------
# Pure-JAX reference (bf16-MXU-aware, for correctness check)
# ---------------------------------------------------------------------------
def _ref_forward(token_ids, params):
    emb = params["embedding"]
    x = jnp.take(emb, token_ids, axis=0).astype(jnp.float32)   # (B, S, E)
    B, S, E = x.shape

    def bdot(a, b):
        return jnp.dot(a.astype(jnp.bfloat16), b.astype(jnp.bfloat16),
                       preferred_element_type=jnp.float32)

    for layer in params["layers"]:
        H = layer["whh"].shape[1]
        wih_t, whh_t = layer["wih"].T, layer["whh"].T
        b = (layer["b_ih"] + layer["b_hh"]).astype(jnp.float32)

        def step(carry, x_t, wih_t=wih_t, whh_t=whh_t, b=b, H=H):
            h, c = carry
            z = bdot(x_t, wih_t) + bdot(h, whh_t) + b
            i = jax.nn.sigmoid(z[:, 0 * H:1 * H])
            f = jax.nn.sigmoid(z[:, 1 * H:2 * H])
            g = jnp.tanh(z[:, 2 * H:3 * H])
            o = jax.nn.sigmoid(z[:, 3 * H:4 * H])
            c = f * c + i * g
            h = o * jnp.tanh(c)
            return (h, c), h

        h0 = jnp.zeros((B, H), jnp.float32)
        c0 = jnp.zeros((B, H), jnp.float32)
        _, hs = lax.scan(step, (h0, c0), jnp.transpose(x, (1, 0, 2)))
        x = jnp.transpose(hs, (1, 0, 2)) + x         # residual (E == H)

    logits = bdot(x, emb.T) + params["out_bias"]
    return logits


# ---------------------------------------------------------------------------
# Deterministic parameter construction
# ---------------------------------------------------------------------------
def init_params(key, vocab_size, embedding_size, hidden_size, num_layers):
    assert embedding_size == hidden_size
    keys = jax.random.split(key, 1 + 4 * num_layers)
    params = {}
    # embedding weight ~ U(-0.1, 0.1) (as in _init_weights); tied to output
    params["embedding"] = jax.random.uniform(
        keys[0], (vocab_size, embedding_size), jnp.float32, -0.1, 0.1)
    params["out_bias"] = jnp.zeros((vocab_size,), jnp.float32)

    layers = []
    bound = 1.0 / jnp.sqrt(hidden_size)
    for l in range(num_layers):
        k = keys[1 + 4 * l: 1 + 4 * (l + 1)]
        in_dim = embedding_size if l == 0 else hidden_size
        layers.append({
            "wih": jax.random.uniform(k[0], (4 * hidden_size, in_dim),
                                      jnp.float32, -bound, bound),
            "whh": jax.random.uniform(k[1], (4 * hidden_size, hidden_size),
                                      jnp.float32, -bound, bound),
            "b_ih": jax.random.uniform(k[2], (4 * hidden_size,),
                                       jnp.float32, -bound, bound),
            "b_hh": jax.random.uniform(k[3], (4 * hidden_size,),
                                       jnp.float32, -bound, bound),
        })
    params["layers"] = layers
    return params


# ---------------------------------------------------------------------------
if __name__ == "__main__":
    VOCAB, EMB, HID, NUM_LAYERS = 64, 32, 32, 2
    BATCH, SEQ = 2, 8

    key = jax.random.PRNGKey(0)
    k_params, k_tok = jax.random.split(key)
    params = init_params(k_params, VOCAB, EMB, HID, NUM_LAYERS)
    token_ids = jax.random.randint(k_tok, (BATCH, SEQ), 0, VOCAB, jnp.int32)

    logits = lstm_model_forward(token_ids, params)
    logits = jax.block_until_ready(logits)
    assert logits.shape == (BATCH, SEQ, VOCAB)
    assert logits.dtype == jnp.float32

    ref = jax.block_until_ready(_ref_forward(token_ids, params))
    assert jnp.allclose(logits, ref, rtol=2e-2, atol=2e-2), (
        float(jnp.max(jnp.abs(logits - ref))))

    # TODO(synk): nn.Dropout layers are identity here (eval-mode semantics).
    print("KERNEL_OK")
</pallas_src>

<mosaic_0001>
module attributes {stable_mosaic.version = 11 : i64} {
  func.func @out_proj_kernel(%arg0: i32, %arg1: i32, %arg2: memref<64x128xf32, #tpu.memory_space<vmem>>, %arg3: memref<128x128xbf16, #tpu.memory_space<vmem>>, %arg4: memref<1x128xf32, #tpu.memory_space<vmem>>, %arg5: memref<64x128xf32, #tpu.memory_space<vmem>>) attributes {dimension_semantics = [#tpu.dimension_semantics<parallel>, #tpu.dimension_semantics<parallel>], iteration_bounds = array<i64: 1, 1>, scalar_prefetch = 0 : i64, scratch_operands = 0 : i64, tpu.core_type = #tpu.core_type<tc>, window_params = [{transform_indices = @transform_0, window_bounds = array<i64: 64, 128>}, {transform_indices = @transform_1, window_bounds = array<i64: 128, 128>}, {transform_indices = @transform_2, window_bounds = array<i64: 1, 128>}, {transform_indices = @transform_3, window_bounds = array<i64: 64, 128>}]} {
    %c0 = arith.constant 0 : index
    %c0_0 = arith.constant 0 : index
    %0 = vector.load %arg2[%c0, %c0_0] : memref<64x128xf32, #tpu.memory_space<vmem>>, vector<64x128xf32>
    %1 = arith.truncf %0 : vector<64x128xf32> to vector<64x128xbf16>
    %c0_1 = arith.constant 0 : index
    %c0_2 = arith.constant 0 : index
    %2 = vector.load %arg3[%c0_1, %c0_2] : memref<128x128xbf16, #tpu.memory_space<vmem>>, vector<128x128xbf16>
    %cst = arith.constant dense<0.000000e+00> : vector<64x128xf32>
    %3 = tpu.matmul %1, %2, %cst {dimension_numbers = #tpu.dot_dimension_numbers<[1], [0], [0], [1], [0, 0, 1, 1], [], []>} : vector<64x128xbf16>, vector<128x128xbf16>, vector<64x128xf32> -> vector<64x128xf32>
    %c0_3 = arith.constant 0 : index
    %c0_4 = arith.constant 0 : index
    %4 = vector.load %arg4[%c0_3, %c0_4] : memref<1x128xf32, #tpu.memory_space<vmem>>, vector<1x128xf32>
    %5 = vector.broadcast %4 : vector<1x128xf32> to vector<64x128xf32>
    %6 = arith.addf %3, %5 : vector<64x128xf32>
    %c0_5 = arith.constant 0 : index
    %c0_6 = arith.constant 0 : index
    %7 = vector.load %arg5[%c0_5, %c0_6] : memref<64x128xf32, #tpu.memory_space<vmem>>, vector<64x128xf32>
    tpu.vector_store %arg5[%c0_5, %c0_6], %6 {strides = array<i32>} : memref<64x128xf32, #tpu.memory_space<vmem>>, vector<64x128xf32>,
    return
  }
  func.func @transform_0(%arg0: i32, %arg1: i32) -> (i32, i32) {
    %c0_i32 = arith.constant 0 : i32
    %c0_i32_0 = arith.constant 0 : i32
    return %arg0, %c0_i32 : i32, i32
  }
  func.func @transform_1(%arg0: i32, %arg1: i32) -> (i32, i32) {
    %c0_i32 = arith.constant 0 : i32
    %c0_i32_0 = arith.constant 0 : i32
    return %c0_i32, %arg1 : i32, i32
  }
  func.func @transform_2(%arg0: i32, %arg1: i32) -> (i32, i32) {
    %c0_i32 = arith.constant 0 : i32
    %c0_i32_0 = arith.constant 0 : i32
    return %c0_i32, %arg1 : i32, i32
  }
  func.func @transform_3(%arg0: i32, %arg1: i32) -> (i32, i32) {
    %c0_i32 = arith.constant 0 : i32
    return %arg0, %arg1 : i32, i32
  }
}

module attributes {stable_mosaic.version = 11 : i64} {
  func.func @lstm_stack_kernel(%arg0: i32, %arg1: memref<8x8x128xf32, #tpu.memory_space<vmem>>, %arg2: memref<2x128x512xbf16, #tpu.memory_space<vmem>>, %arg3: memref<2x128x512xbf16, #tpu.memory_space<vmem>>, %arg4: memref<2x1x512xf32, #tpu.memory_space<vmem>>, %arg5: memref<8x8x128xf32, #tpu.memory_space<vmem>>, %arg6: memref<8x8x512xf32, #tpu.memory_space<vmem>>) attributes {dimension_semantics = [#tpu.dimension_semantics<parallel>], iteration_bounds = array<i64: 1>, scalar_prefetch = 0 : i64, scratch_operands = 1 : i64, tpu.core_type = #tpu.core_type<tc>, window_params = [{transform_indices = @transform_0, window_bounds = array<i64: 8, 8, 128>}, {pipeline_mode = #tpu.pipeline_mode<synchronous>, transform_indices = @transform_1, window_bounds = array<i64: 2, 128, 512>}, {pipeline_mode = #tpu.pipeline_mode<synchronous>, transform_indices = @transform_2, window_bounds = array<i64: 2, 128, 512>}, {pipeline_mode = #tpu.pipeline_mode<synchronous>, transform_indices = @transform_3, window_bounds = array<i64: 2, 1, 512>}, {transform_indices = @transform_4, window_bounds = array<i64: 8, 8, 128>}]} {
    %c0 = arith.constant 0 : index
    %c0_0 = arith.constant 0 : index
    %c0_1 = arith.constant 0 : index
    %0 = vector.load %arg1[%c0, %c0_0, %c0_1] : memref<8x8x128xf32, #tpu.memory_space<vmem>>, vector<8x8x128xf32>
    %1 = arith.truncf %0 : vector<8x8x128xf32> to vector<8x8x128xbf16>
    %2 = vector.shape_cast %1 : vector<8x8x128xbf16> to vector<64x128xbf16>
    %c0_2 = arith.constant 0 : index
    %c0_3 = arith.constant 0 : index
    %c0_4 = arith.constant 0 : index
    %3 = vector.load %arg2[%c0_2, %c0_3, %c0_4] : memref<2x128x512xbf16, #tpu.memory_space<vmem>>, vector<1x128x512xbf16>
    %4 = vector.shape_cast %3 : vector<1x128x512xbf16> to vector<128x512xbf16>
    %cst = arith.constant dense<0.000000e+00> : vector<64x512xf32>
    %5 = tpu.matmul %2, %4, %cst {dimension_numbers = #tpu.dot_dimension_numbers<[1], [0], [0], [1], [0, 0, 1, 1], [], []>} : vector<64x128xbf16>, vector<128x512xbf16>, vector<64x512xf32> -> vector<64x512xf32>
    %c0_5 = arith.constant 0 : index
    %c0_6 = arith.constant 0 : index
    %c0_7 = arith.constant 0 : index
    %6 = vector.load %arg4[%c0_5, %c0_6, %c0_7] : memref<2x1x512xf32, #tpu.memory_space<vmem>>, vector<1x1x512xf32>
    %7 = vector.shape_cast %6 : vector<1x1x512xf32> to vector<1x512xf32>
    %8 = vector.broadcast %7 : vector<1x512xf32> to vector<64x512xf32>
    %9 = arith.addf %5, %8 : vector<64x512xf32>
    %10 = vector.shape_cast %9 : vector<64x512xf32> to vector<8x8x512xf32>
    %c0_8 = arith.constant 0 : index
    %c0_9 = arith.constant 0 : index
    %c0_10 = arith.constant 0 : index
    %11 = vector.load %arg6[%c0_8, %c0_9, %c0_10] : memref<8x8x512xf32, #tpu.memory_space<vmem>>, vector<8x8x512xf32>
    tpu.vector_store %arg6[%c0_8, %c0_9, %c0_10], %10 {strides = array<i32>} : memref<8x8x512xf32, #tpu.memory_space<vmem>>, vector<8x8x512xf32>,
    %cst_11 = arith.constant 0.000000e+00 : f32
    %12 = vector.broadcast %cst_11 : f32 to vector<8x128xf32>
    %cst_12 = arith.constant 0.000000e+00 : f32
    %13 = vector.broadcast %cst_12 : f32 to vector<8x128xf32>
    %c0_i32 = arith.constant 0 : i32
    %14 = arith.index_cast %c0_i32 : i32 to index
    %c0_13 = arith.constant 0 : index
    %c0_14 = arith.constant 0 : index
    %15 = vector.load %arg6[%14, %c0_13, %c0_14] : memref<8x8x512xf32, #tpu.memory_space<vmem>>, vector<1x8x512xf32>
    %16 = vector.shape_cast %15 : vector<1x8x512xf32> to vector<8x512xf32>
    %17 = arith.truncf %12 : vector<8x128xf32> to vector<8x128xbf16>
    %c0_15 = arith.constant 0 : index
    %c0_16 = arith.constant 0 : index
    %c0_17 = arith.constant 0 : index
    %18 = vector.load %arg3[%c0_15, %c0_16, %c0_17] : memref<2x128x512xbf16, #tpu.memory_space<vmem>>, vector<1x128x512xbf16>
    %19 = vector.shape_cast %18 : vector<1x128x512xbf16> to vector<128x512xbf16>
    %cst_18 = arith.constant dense<0.000000e+00> : vector<8x512xf32>
    %20 = tpu.matmul %17, %19, %cst_18 {dimension_numbers = #tpu.dot_dimension_numbers<[1], [0], [0], [1], [0, 0, 1, 1], [], []>} : vector<8x128xbf16>, vector<128x512xbf16>, vector<8x512xf32> -> vector<8x512xf32>
    %21 = arith.addf %16, %20 : vector<8x512xf32>
    %22 = vector.extract_strided_slice %21 {offsets = [0, 0], sizes = [8, 128], strides = [1, 1]} : vector<8x512xf32> to vector<8x128xf32>
    %23 = arith.negf %22 : vector<8x128xf32>
    %24 = math.exp %23 : vector<8x128xf32>
    %cst_19 = arith.constant 1.000000e+00 : f32
    %25 = vector.broadcast %cst_19 : f32 to vector<8x128xf32>
    %26 = arith.addf %25, %24 : vector<8x128xf32>
    %27 = arith.divf %25, %26 : vector<8x128xf32>
    %28 = vector.extract_strided_slice %21 {offsets = [0, 128], sizes = [8, 128], strides = [1, 1]} : vector<8x512xf32> to vector<8x128xf32>
    %29 = arith.negf %28 : vector<8x128xf32>
    %30 = math.exp %29 : vector<8x128xf32>
    %cst_20 = arith.constant 1.000000e+00 : f32
    %31 = vector.broadcast %cst_20 : f32 to vector<8x128xf32>
    %32 = arith.addf %31, %30 : vector<8x128xf32>
    %33 = arith.divf %31, %32 : vector<8x128xf32>
    %34 = vector.extract_strided_slice %21 {offsets = [0, 256], sizes = [8, 128], strides = [1, 1]} : vector<8x512xf32> to vector<8x128xf32>
    %35 = math.tanh %34 : vector<8x128xf32>
    %36 = vector.extract_strided_slice %21 {offsets = [0, 384], sizes = [8, 128], strides = [1, 1]} : vector<8x512xf32> to vector<8x128xf32>
    %37 = arith.negf %36 : vector<8x128xf32>
    %38 = math.exp %37 : vector<8x128xf32>
    %cst_21 = arith.constant 1.000000e+00 : f32
    %39 = vector.broadcast %cst_21 : f32 to vector<8x128xf32>
    %40 = arith.addf %39, %38 : vector<8x128xf32>
    %41 = arith.divf %39, %40 : vector<8x128xf32>
    %42 = arith.mulf %33, %13 : vector<8x128xf32>
    %43 = arith.mulf %27, %35 : vector<8x128xf32>
    %44 = arith.addf %42, %43 : vector<8x128xf32>
    %45 = math.tanh %44 : vector<8x128xf32>
    %46 = arith.mulf %41, %45 : vector<8x128xf32>
    %47 = arith.index_cast %c0_i32 : i32 to index
    %c0_22 = arith.constant 0 : index
    %c0_23 = arith.constant 0 : index
    %48 = vector.load %arg1[%47, %c0_22, %c0_23] : memref<8x8x128xf32, #tpu.memory_space<vmem>>, vector<1x8x128xf32>
    %49 = vector.shape_cast %48 : vector<1x8x128xf32> to vector<8x128xf32>
    %50 = arith.addf %46, %49 : vector<8x128xf32>
    %51 = arith.index_cast %c0_i32 : i32 to index
    %c0_24 = arith.constant 0 : index
    %c0_25 = arith.constant 0 : index
    %52 = vector.load %arg5[%51, %c0_24, %c0_25] : memref<8x8x128xf32, #tpu.memory_space<vmem>>, vector<1x8x128xf32>
    %53 = vector.shape_cast %52 : vector<1x8x128xf32> to vector<8x128xf32>
    %54 = vector.shape_cast %50 : vector<8x128xf32> to vector<1x8x128xf32>
    tpu.vector_store %arg5[%51, %c0_24, %c0_25], %54 {strides = array<i32>} : memref<8x8x128xf32, #tpu.memory_space<vmem>>, vector<1x8x128xf32>,
    %c1_i32 = arith.constant 1 : i32
    %55 = arith.index_cast %c1_i32 : i32 to index
    %c0_26 = arith.constant 0 : index
    %c0_27 = arith.constant 0 : index
    %56 = vector.load %arg6[%55, %c0_26, %c0_27] : memref<8x8x512xf32, #tpu.memory_space<vmem>>, vector<1x8x512xf32>
    %57 = vector.shape_cast %56 : vector<1x8x512xf32> to vector<8x512xf32>
    %58 = arith.truncf %46 : vector<8x128xf32> to vector<8x128xbf16>
    %c0_28 = arith.constant 0 : index
    %c0_29 = arith.constant 0 : index
    %c0_30 = arith.constant 0 : index
    %59 = vector.load %arg3[%c0_28, %c0_29, %c0_30] : memref<2x128x512xbf16, #tpu.memory_space<vmem>>, vector<1x128x512xbf16>
    %60 = vector.shape_cast %59 : vector<1x128x512xbf16> to vector<128x512xbf16>
    %cst_31 = arith.constant dense<0.000000e+00> : vector<8x512xf32>
    %61 = tpu.matmul %58, %60, %cst_31 {dimension_numbers = #tpu.dot_dimension_numbers<[1], [0], [0], [1], [0, 0, 1, 1], [], []>} : vector<8x128xbf16>, vector<128x512xbf16>, vector<8x512xf32> -> vector<8x512xf32>
    %62 = arith.addf %57, %61 : vector<8x512xf32>
    %63 = vector.extract_strided_slice %62 {offsets = [0, 0], sizes = [8, 128], strides = [1, 1]} : vector<8x512xf32> to vector<8x128xf32>
    %64 = arith.negf %63 : vector<8x128xf32>
    %65 = math.exp %64 : vector<8x128xf32>
    %cst_32 = arith.constant 1.000000e+00 : f32
    %66 = vector.broadcast %cst_32 : f32 to vector<8x128xf32>
    %67 = arith.addf %66, %65 : vector<8x128xf32>
    %68 = arith.divf %66, %67 : vector<8x128xf32>
    %69 = vector.extract_strided_slice %62 {offsets = [0, 128], sizes = [8, 128], strides = [1, 1]} : vector<8x512xf32> to vector<8x128xf32>
    %70 = arith.negf %69 : vector<8x128xf32>
    %71 = math.exp %70 : vector<8x128xf32>
    %cst_33 = arith.constant 1.000000e+00 : f32
    %72 = vector.broadcast %cst_33 : f32 to vector<8x128xf32>
    %73 = arith.addf %72, %71 : vector<8x128xf32>
    %74 = arith.divf %72, %73 : vector<8x128xf32>
    %75 = vector.extract_strided_slice %62 {offsets = [0, 256], sizes = [8, 128], strides = [1, 1]} : vector<8x512xf32> to vector<8x128xf32>
    %76 = math.tanh %75 : vector<8x128xf32>
    %77 = vector.extract_strided_slice %62 {offsets = [0, 384], sizes = [8, 128], strides = [1, 1]} : vector<8x512xf32> to vector<8x128xf32>
    %78 = arith.negf %77 : vector<8x128xf32>
    %79 = math.exp %78 : vector<8x128xf32>
    %cst_34 = arith.constant 1.000000e+00 : f32
    %80 = vector.broadcast %cst_34 : f32 to vector<8x128xf32>
    %81 = arith.addf %80, %79 : vector<8x128xf32>
    %82 = arith.divf %80, %81 : vector<8x128xf32>
    %83 = arith.mulf %74, %44 : vector<8x128xf32>
    %84 = arith.mulf %68, %76 : vector<8x128xf32>
    %85 = arith.addf %83, %84 : vector<8x128xf32>
    %86 = math.tanh %85 : vector<8x128xf32>
    %87 = arith.mulf %82, %86 : vector<8x128xf32>
    %88 = arith.index_cast %c1_i32 : i32 to index
    %c0_35 = arith.constant 0 : index
    %c0_36 = arith.constant 0 : index
    %89 = vector.load %arg1[%88, %c0_35, %c0_36] : memref<8x8x128xf32, #tpu.memory_space<vmem>>, vector<1x8x128xf32>
    %90 = vector.shape_cast %89 : vector<1x8x128xf32> to vector<8x128xf32>
    %91 = arith.addf %87, %90 : vector<8x128xf32>
    %92 = arith.index_cast %c1_i32 : i32 to index
    %c0_37 = arith.constant 0 : index
    %c0_38 = arith.constant 0 : index
    %93 = vector.load %arg5[%92, %c0_37, %c0_38] : memref<8x8x128xf32, #tpu.memory_space<vmem>>, vector<1x8x128xf32>
    %94 = vector.shape_cast %93 : vector<1x8x128xf32> to vector<8x128xf32>
    %95 = vector.shape_cast %91 : vector<8x128xf32> to vector<1x8x128xf32>
    tpu.vector_store %arg5[%92, %c0_37, %c0_38], %95 {strides = array<i32>} : memref<8x8x128xf32, #tpu.memory_space<vmem>>, vector<1x8x128xf32>,
    %c2_i32 = arith.constant 2 : i32
    %96 = arith.index_cast %c2_i32 : i32 to index
    %c0_39 = arith.constant 0 : index
    %c0_40 = arith.constant 0 : index
    %97 = vector.load %arg6[%96, %c0_39, %c0_40] : memref<8x8x512xf32, #tpu.memory_space<vmem>>, vector<1x8x512xf32>
    %98 = vector.shape_cast %97 : vector<1x8x512xf32> to vector<8x512xf32>
    %99 = arith.truncf %87 : vector<8x128xf32> to vector<8x128xbf16>
    %c0_41 = arith.constant 0 : index
    %c0_42 = arith.constant 0 : index
    %c0_43 = arith.constant 0 : index
    %100 = vector.load %arg3[%c0_41, %c0_42, %c0_43] : memref<2x128x512xbf16, #tpu.memory_space<vmem>>, vector<1x128x512xbf16>
    %101 = vector.shape_cast %100 : vector<1x128x512xbf16> to vector<128x512xbf16>
    %cst_44 = arith.constant dense<0.000000e+00> : vector<8x512xf32>
    %102 = tpu.matmul %99, %101, %cst_44 {dimension_numbers = #tpu.dot_dimension_numbers<[1], [0], [0], [1], [0, 0, 1, 1], [], []>} : vector<8x128xbf16>, vector<128x512xbf16>, vector<8x512xf32> -> vector<8x512xf32>
    %103 = arith.addf %98, %102 : vector<8x512xf32>
    %104 = vector.extract_strided_slice %103 {offsets = [0, 0], sizes = [8, 128], strides = [1, 1]} : vector<8x512xf32> to vector<8x128xf32>
    %105 = arith.negf %104 : vector<8x128xf32>
    %106 = math.exp %105 : vector<8x128xf32>
    %cst_45 = arith.constant 1.000000e+00 : f32
    %107 = vector.broadcast %cst_45 : f32 to vector<8x128xf32>
    %108 = arith.addf %107, %106 : vector<8x128xf32>
    %109 = arith.divf %107, %108 : vector<8x128xf32>
    %110 = vector.extract_strided_slice %103 {offsets = [0, 128], sizes = [8, 128], strides = [1, 1]} : vector<8x512xf32> to vector<8x128xf32>
    %111 = arith.negf %110 : vector<8x128xf32>
    %112 = math.exp %111 : vector<8x128xf32>
    %cst_46 = arith.constant 1.000000e+00 : f32
    %113 = vector.broadcast %cst_46 : f32 to vector<8x128xf32>
    %114 = arith.addf %113, %112 : vector<8x128xf32>
    %115 = arith.divf %113, %114 : vector<8x128xf32>
    %116 = vector.extract_strided_slice %103 {offsets = [0, 256], sizes = [8, 128], strides = [1, 1]} : vector<8x512xf32> to vector<8x128xf32>
    %117 = math.tanh %116 : vector<8x128xf32>
    %118 = vector.extract_strided_slice %103 {offsets = [0, 384], sizes = [8, 128], strides = [1, 1]} : vector<8x512xf32> to vector<8x128xf32>
    %119 = arith.negf %118 : vector<8x128xf32>
    %120 = math.exp %119 : vector<8x128xf32>
    %cst_47 = arith.constant 1.000000e+00 : f32
    %121 = vector.broadcast %cst_47 : f32 to vector<8x128xf32>
    %122 = arith.addf %121, %120 : vector<8x128xf32>
    %123 = arith.divf %121, %122 : vector<8x128xf32>
    %124 = arith.mulf %115, %85 : vector<8x128xf32>
    %125 = arith.mulf %109, %117 : vector<8x128xf32>
    %126 = arith.addf %124, %125 : vector<8x128xf32>
    %127 = math.tanh %126 : vector<8x128xf32>
    %128 = arith.mulf %123, %127 : vector<8x128xf32>
    %129 = arith.index_cast %c2_i32 : i32 to index
    %c0_48 = arith.constant 0 : index
    %c0_49 = arith.constant 0 : index
    %130 = vector.load %arg1[%129, %c0_48, %c0_49] : memref<8x8x128xf32, #tpu.memory_space<vmem>>, vector<1x8x128xf32>
    %131 = vector.shape_cast %130 : vector<1x8x128xf32> to vector<8x128xf32>
    %132 = arith.addf %128, %131 : vector<8x128xf32>
    %133 = arith.index_cast %c2_i32 : i32 to index
    %c0_50 = arith.constant 0 : index
    %c0_51 = arith.constant 0 : index
    %134 = vector.load %arg5[%133, %c0_50, %c0_51] : memref<8x8x128xf32, #tpu.memory_space<vmem>>, vector<1x8x128xf32>
    %135 = vector.shape_cast %134 : vector<1x8x128xf32> to vector<8x128xf32>
    %136 = vector.shape_cast %132 : vector<8x128xf32> to vector<1x8x128xf32>
    tpu.vector_store %arg5[%133, %c0_50, %c0_51], %136 {strides = array<i32>} : memref<8x8x128xf32, #tpu.memory_space<vmem>>, vector<1x8x128xf32>,
    %c3_i32 = arith.constant 3 : i32
    %137 = arith.index_cast %c3_i32 : i32 to index
    %c0_52 = arith.constant 0 : index
    %c0_53 = arith.constant 0 : index
    %138 = vector.load %arg6[%137, %c0_52, %c0_53] : memref<8x8x512xf32, #tpu.memory_space<vmem>>, vector<1x8x512xf32>
    %139 = vector.shape_cast %138 : vector<1x8x512xf32> to vector<8x512xf32>
    %140 = arith.truncf %128 : vector<8x128xf32> to vector<8x128xbf16>
    %c0_54 = arith.constant 0 : index
    %c0_55 = arith.constant 0 : index
    %c0_56 = arith.constant 0 : index
    %141 = vector.load %arg3[%c0_54, %c0_55, %c0_56] : memref<2x128x512xbf16, #tpu.memory_space<vmem>>, vector<1x128x512xbf16>
    %142 = vector.shape_cast %141 : vector<1x128x512xbf16> to vector<128x512xbf16>
    %cst_57 = arith.constant dense<0.000000e+00> : vector<8x512xf32>
    %143 = tpu.matmul %140, %142, %cst_57 {dimension_numbers = #tpu.dot_dimension_numbers<[1], [0], [0], [1], [0, 0, 1, 1], [], []>} : vector<8x128xbf16>, vector<128x512xbf16>, vector<8x512xf32> -> vector<8x512xf32>
    %144 = arith.addf %139, %143 : vector<8x512xf32>
    %145 = vector.extract_strided_slice %144 {offsets = [0, 0], sizes = [8, 128], strides = [1, 1]} : vector<8x512xf32> to vector<8x128xf32>
    %146 = arith.negf %145 : vector<8x128xf32>
    %147 = math.exp %146 : vector<8x128xf32>
    %cst_58 = arith.constant 1.000000e+00 : f32
    %148 = vector.broadcast %cst_58 : f32 to vector<8x128xf32>
    %149 = arith.addf %148, %147 : vector<8x128xf32>
    %150 = arith.divf %148, %149 : vector<8x128xf32>
    %151 = vector.extract_strided_slice %144 {offsets = [0, 128], sizes = [8, 128], strides = [1, 1]} : vector<8x512xf32> to vector<8x128xf32>
    %152 = arith.negf %151 : vector<8x128xf32>
    %153 = math.exp %152 : vector<8x128xf32>
    %cst_59 = arith.constant 1.000000e+00 : f32
    %154 = vector.broadcast %cst_59 : f32 to vector<8x128xf32>
    %155 = arith.addf %154, %153 : vector<8x128xf32>
    %156 = arith.divf %154, %155 : vector<8x128xf32>
    %157 = vector.extract_strided_slice %144 {offsets = [0, 256], sizes = [8, 128], strides = [1, 1]} : vector<8x512xf32> to vector<8x128xf32>
    %158 = math.tanh %157 : vector<8x128xf32>
    %159 = vector.extract_strided_slice %144 {offsets = [0, 384], sizes = [8, 128], strides = [1, 1]} : vector<8x512xf32> to vector<8x128xf32>
    %160 = arith.negf %159 : vector<8x128xf32>
    %161 = math.exp %160 : vector<8x128xf32>
    %cst_60 = arith.constant 1.000000e+00 : f32
    %162 = vector.broadcast %cst_60 : f32 to vector<8x128xf32>
    %163 = arith.addf %162, %161 : vector<8x128xf32>
    %164 = arith.divf %162, %163 : vector<8x128xf32>
    %165 = arith.mulf %156, %126 : vector<8x128xf32>
    %166 = arith.mulf %150, %158 : vector<8x128xf32>
    %167 = arith.addf %165, %166 : vector<8x128xf32>
    %168 = math.tanh %167 : vector<8x128xf32>
    %169 = arith.mulf %164, %168 : vector<8x128xf32>
    %170 = arith.index_cast %c3_i32 : i32 to index
    %c0_61 = arith.constant 0 : index
    %c0_62 = arith.constant 0 : index
    %171 = vector.load %arg1[%170, %c0_61, %c0_62] : memref<8x8x128xf32, #tpu.memory_space<vmem>>, vector<1x8x128xf32>
    %172 = vector.shape_cast %171 : vector<1x8x128xf32> to vector<8x128xf32>
    %173 = arith.addf %169, %172 : vector<8x128xf32>
    %174 = arith.index_cast %c3_i32 : i32 to index
    %c0_63 = arith.constant 0 : index
    %c0_64 = arith.constant 0 : index
    %175 = vector.load %arg5[%174, %c0_63, %c0_64] : memref<8x8x128xf32, #tpu.memory_space<vmem>>, vector<1x8x128xf32>
    %176 = vector.shape_cast %175 : vector<1x8x128xf32> to vector<8x128xf32>
    %177 = vector.shape_cast %173 : vector<8x128xf32> to vector<1x8x128xf32>
    tpu.vector_store %arg5[%174, %c0_63, %c0_64], %177 {strides = array<i32>} : memref<8x8x128xf32, #tpu.memory_space<vmem>>, vector<1x8x128xf32>,
    %c4_i32 = arith.constant 4 : i32
    %178 = arith.index_cast %c4_i32 : i32 to index
    %c0_65 = arith.constant 0 : index
    %c0_66 = arith.constant 0 : index
    %179 = vector.load %arg6[%178, %c0_65, %c0_66] : memref<8x8x512xf32, #tpu.memory_space<vmem>>, vector<1x8x512xf32>
    %180 = vector.shape_cast %179 : vector<1x8x512xf32> to vector<8x512xf32>
    %181 = arith.truncf %169 : vector<8x128xf32> to vector<8x128xbf16>
    %c0_67 = arith.constant 0 : index
    %c0_68 = arith.constant 0 : index
    %c0_69 = arith.constant 0 : index
    %182 = vector.load %arg3[%c0_67, %c0_68, %c0_69] : memref<2x128x512xbf16, #tpu.memory_space<vmem>>, vector<1x128x512xbf16>
    %183 = vector.shape_cast %182 : vector<1x128x512xbf16> to vector<128x512xbf16>
    %cst_70 = arith.constant dense<0.000000e+00> : vector<8x512xf32>
    %184 = tpu.matmul %181, %183, %cst_70 {dimension_numbers = #tpu.dot_dimension_numbers<[1], [0], [0], [1], [0, 0, 1, 1], [], []>} : vector<8x128xbf16>, vector<128x512xbf16>, vector<8x512xf32> -> vector<8x512xf32>
    %185 = arith.addf %180, %184 : vector<8x512xf32>
    %186 = vector.extract_strided_slice %185 {offsets = [0, 0], sizes = [8, 128], strides = [1, 1]} : vector<8x512xf32> to vector<8x128xf32>
    %187 = arith.negf %186 : vector<8x128xf32>
    %188 = math.exp %187 : vector<8x128xf32>
    %cst_71 = arith.constant 1.000000e+00 : f32
    %189 = vector.broadcast %cst_71 : f32 to vector<8x128xf32>
    %190 = arith.addf %189, %188 : vector<8x128xf32>
    %191 = arith.divf %189, %190 : vector<8x128xf32>
    %192 = vector.extract_strided_slice %185 {offsets = [0, 128], sizes = [8, 128], strides = [1, 1]} : vector<8x512xf32> to vector<8x128xf32>
    %193 = arith.negf %192 : vector<8x128xf32>
    %194 = math.exp %193 : vector<8x128xf32>
    %cst_72 = arith.constant 1.000000e+00 : f32
    %195 = vector.broadcast %cst_72 : f32 to vector<8x128xf32>
    %196 = arith.addf %195, %194 : vector<8x128xf32>
    %197 = arith.divf %195, %196 : vector<8x128xf32>
    %198 = vector.extract_strided_slice %185 {offsets = [0, 256], sizes = [8, 128], strides = [1, 1]} : vector<8x512xf32> to vector<8x128xf32>
    %199 = math.tanh %198 : vector<8x128xf32>
    %200 = vector.extract_strided_slice %185 {offsets = [0, 384], sizes = [8, 128], strides = [1, 1]} : vector<8x512xf32> to vector<8x128xf32>
    %201 = arith.negf %200 : vector<8x128xf32>
    %202 = math.exp %201 : vector<8x128xf32>
    %cst_73 = arith.constant 1.000000e+00 : f32
    %203 = vector.broadcast %cst_73 : f32 to vector<8x128xf32>
    %204 = arith.addf %203, %202 : vector<8x128xf32>
    %205 = arith.divf %203, %204 : vector<8x128xf32>
    %206 = arith.mulf %197, %167 : vector<8x128xf32>
    %207 = arith.mulf %191, %199 : vector<8x128xf32>
    %208 = arith.addf %206, %207 : vector<8x128xf32>
    %209 = math.tanh %208 : vector<8x128xf32>
    %210 = arith.mulf %205, %209 : vector<8x128xf32>
    %211 = arith.index_cast %c4_i32 : i32 to index
    %c0_74 = arith.constant 0 : index
    %c0_75 = arith.constant 0 : index
    %212 = vector.load %arg1[%211, %c0_74, %c0_75] : memref<8x8x128xf32, #tpu.memory_space<vmem>>, vector<1x8x128xf32>
    %213 = vector.shape_cast %212 : vector<1x8x128xf32> to vector<8x128xf32>
    %214 = arith.addf %210, %213 : vector<8x128xf32>
    %215 = arith.index_cast %c4_i32 : i32 to index
    %c0_76 = arith.constant 0 : index
    %c0_77 = arith.constant 0 : index
    %216 = vector.load %arg5[%215, %c0_76, %c0_77] : memref<8x8x128xf32, #tpu.memory_space<vmem>>, vector<1x8x128xf32>
    %217 = vector.shape_cast %216 : vector<1x8x128xf32> to vector<8x128xf32>
    %218 = vector.shape_cast %214 : vector<8x128xf32> to vector<1x8x128xf32>
    tpu.vector_store %arg5[%215, %c0_76, %c0_77], %218 {strides = array<i32>} : memref<8x8x128xf32, #tpu.memory_space<vmem>>, vector<1x8x128xf32>,
    %c5_i32 = arith.constant 5 : i32
    %219 = arith.index_cast %c5_i32 : i32 to index
    %c0_78 = arith.constant 0 : index
    %c0_79 = arith.constant 0 : index
    %220 = vector.load %arg6[%219, %c0_78, %c0_79] : memref<8x8x512xf32, #tpu.memory_space<vmem>>, vector<1x8x512xf32>
    %221 = vector.shape_cast %220 : vector<1x8x512xf32> to vector<8x512xf32>
    %222 = arith.truncf %210 : vector<8x128xf32> to vector<8x128xbf16>
    %c0_80 = arith.constant 0 : index
    %c0_81 = arith.constant 0 : index
    %c0_82 = arith.constant 0 : index
    %223 = vector.load %arg3[%c0_80, %c0_81, %c0_82] : memref<2x128x512xbf16, #tpu.memory_space<vmem>>, vector<1x128x512xbf16>
    %224 = vector.shape_cast %223 : vector<1x128x512xbf16> to vector<128x512xbf16>
    %cst_83 = arith.constant dense<0.000000e+00> : vector<8x512xf32>
    %225 = tpu.matmul %222, %224, %cst_83 {dimension_numbers = #tpu.dot_dimension_numbers<[1], [0], [0], [1], [0, 0, 1, 1], [], []>} : vector<8x128xbf16>, vector<128x512xbf16>, vector<8x512xf32> -> vector<8x512xf32>
    %226 = arith.addf %221, %225 : vector<8x512xf32>
    %227 = vector.extract_strided_slice %226 {offsets = [0, 0], sizes = [8, 128], strides = [1, 1]} : vector<8x512xf32> to vector<8x128xf32>
    %228 = arith.negf %227 : vector<8x128xf32>
    %229 = math.exp %228 : vector<8x128xf32>
    %cst_84 = arith.constant 1.000000e+00 : f32
    %230 = vector.broadcast %cst_84 : f32 to vector<8x128xf32>
    %231 = arith.addf %230, %229 : vector<8x128xf32>
    %232 = arith.divf %230, %231 : vector<8x128xf32>
    %233 = vector.extract_strided_slice %226 {offsets = [0, 128], sizes = [8, 128], strides = [1, 1]} : vector<8x512xf32> to vector<8x128xf32>
    %234 = arith.negf %233 : vector<8x128xf32>
    %235 = math.exp %234 : vector<8x128xf32>
    %cst_85 = arith.constant 1.000000e+00 : f32
    %236 = vector.broadcast %cst_85 : f32 to vector<8x128xf32>
    %237 = arith.addf %236, %235 : vector<8x128xf32>
    %238 = arith.divf %236, %237 : vector<8x128xf32>
    %239 = vector.extract_strided_slice %226 {offsets = [0, 256], sizes = [8, 128], strides = [1, 1]} : vector<8x512xf32> to vector<8x128xf32>
    %240 = math.tanh %239 : vector<8x128xf32>
    %241 = vector.extract_strided_slice %226 {offsets = [0, 384], sizes = [8, 128], strides = [1, 1]} : vector<8x512xf32> to vector<8x128xf32>
    %242 = arith.negf %241 : vector<8x128xf32>
    %243 = math.exp %242 : vector<8x128xf32>
    %cst_86 = arith.constant 1.000000e+00 : f32
    %244 = vector.broadcast %cst_86 : f32 to vector<8x128xf32>
    %245 = arith.addf %244, %243 : vector<8x128xf32>
    %246 = arith.divf %244, %245 : vector<8x128xf32>
    %247 = arith.mulf %238, %208 : vector<8x128xf32>
    %248 = arith.mulf %232, %240 : vector<8x128xf32>
    %249 = arith.addf %247, %248 : vector<8x128xf32>
    %250 = math.tanh %249 : vector<8x128xf32>
    %251 = arith.mulf %246, %250 : vector<8x128xf32>
    %252 = arith.index_cast %c5_i32 : i32 to index
    %c0_87 = arith.constant 0 : index
    %c0_88 = arith.constant 0 : index
    %253 = vector.load %arg1[%252, %c0_87, %c0_88] : memref<8x8x128xf32, #tpu.memory_space<vmem>>, vector<1x8x128xf32>
    %254 = vector.shape_cast %253 : vector<1x8x128xf32> to vector<8x128xf32>
    %255 = arith.addf %251, %254 : vector<8x128xf32>
    %256 = arith.index_cast %c5_i32 : i32 to index
    %c0_89 = arith.constant 0 : index
    %c0_90 = arith.constant 0 : index
    %257 = vector.load %arg5[%256, %c0_89, %c0_90] : memref<8x8x128xf32, #tpu.memory_space<vmem>>, vector<1x8x128xf32>
    %258 = vector.shape_cast %257 : vector<1x8x128xf32> to vector<8x128xf32>
    %259 = vector.shape_cast %255 : vector<8x128xf32> to vector<1x8x128xf32>
    tpu.vector_store %arg5[%256, %c0_89, %c0_90], %259 {strides = array<i32>} : memref<8x8x128xf32, #tpu.memory_space<vmem>>, vector<1x8x128xf32>,
    %c6_i32 = arith.constant 6 : i32
    %260 = arith.index_cast %c6_i32 : i32 to index
    %c0_91 = arith.constant 0 : index
    %c0_92 = arith.constant 0 : index
    %261 = vector.load %arg6[%260, %c0_91, %c0_92] : memref<8x8x512xf32, #tpu.memory_space<vmem>>, vector<1x8x512xf32>
    %262 = vector.shape_cast %261 : vector<1x8x512xf32> to vector<8x512xf32>
    %263 = arith.truncf %251 : vector<8x128xf32> to vector<8x128xbf16>
    %c0_93 = arith.constant 0 : index
    %c0_94 = arith.constant 0 : index
    %c0_95 = arith.constant 0 : index
    %264 = vector.load %arg3[%c0_93, %c0_94, %c0_95] : memref<2x128x512xbf16, #tpu.memory_space<vmem>>, vector<1x128x512xbf16>
    %265 = vector.shape_cast %264 : vector<1x128x512xbf16> to vector<128x512xbf16>
    %cst_96 = arith.constant dense<0.000000e+00> : vector<8x512xf32>
    %266 = tpu.matmul %263, %265, %cst_96 {dimension_numbers = #tpu.dot_dimension_numbers<[1], [0], [0], [1], [0, 0, 1, 1], [], []>} : vector<8x128xbf16>, vector<128x512xbf16>, vector<8x512xf32> -> vector<8x512xf32>
    %267 = arith.addf %262, %266 : vector<8x512xf32>
    %268 = vector.extract_strided_slice %267 {offsets = [0, 0], sizes = [8, 128], strides = [1, 1]} : vector<8x512xf32> to vector<8x128xf32>
    %269 = arith.negf %268 : vector<8x128xf32>
    %270 = math.exp %269 : vector<8x128xf32>
    %cst_97 = arith.constant 1.000000e+00 : f32
    %271 = vector.broadcast %cst_97 : f32 to vector<8x128xf32>
    %272 = arith.addf %271, %270 : vector<8x128xf32>
    %273 = arith.divf %271, %272 : vector<8x128xf32>
    %274 = vector.extract_strided_slice %267 {offsets = [0, 128], sizes = [8, 128], strides = [1, 1]} : vector<8x512xf32> to vector<8x128xf32>
    %275 = arith.negf %274 : vector<8x128xf32>
    %276 = math.exp %275 : vector<8x128xf32>
    %cst_98 = arith.constant 1.000000e+00 : f32
    %277 = vector.broadcast %cst_98 : f32 to vector<8x128xf32>
    %278 = arith.addf %277, %276 : vector<8x128xf32>
    %279 = arith.divf %277, %278 : vector<8x128xf32>
    %280 = vector.extract_strided_slice %267 {offsets = [0, 256], sizes = [8, 128], strides = [1, 1]} : vector<8x512xf32> to vector<8x128xf32>
    %281 = math.tanh %280 : vector<8x128xf32>
    %282 = vector.extract_strided_slice %267 {offsets = [0, 384], sizes = [8, 128], strides = [1, 1]} : vector<8x512xf32> to vector<8x128xf32>
    %283 = arith.negf %282 : vector<8x128xf32>
    %284 = math.exp %283 : vector<8x128xf32>
    %cst_99 = arith.constant 1.000000e+00 : f32
    %285 = vector.broadcast %cst_99 : f32 to vector<8x128xf32>
    %286 = arith.addf %285, %284 : vector<8x128xf32>
    %287 = arith.divf %285, %286 : vector<8x128xf32>
    %288 = arith.mulf %279, %249 : vector<8x128xf32>
    %289 = arith.mulf %273, %281 : vector<8x128xf32>
    %290 = arith.addf %288, %289 : vector<8x128xf32>
    %291 = math.tanh %290 : vector<8x128xf32>
    %292 = arith.mulf %287, %291 : vector<8x128xf32>
    %293 = arith.index_cast %c6_i32 : i32 to index
    %c0_100 = arith.constant 0 : index
    %c0_101 = arith.constant 0 : index
    %294 = vector.load %arg1[%293, %c0_100, %c0_101] : memref<8x8x128xf32, #tpu.memory_space<vmem>>, vector<1x8x128xf32>
    %295 = vector.shape_cast %294 : vector<1x8x128xf32> to vector<8x128xf32>
    %296 = arith.addf %292, %295 : vector<8x128xf32>
    %297 = arith.index_cast %c6_i32 : i32 to index
    %c0_102 = arith.constant 0 : index
    %c0_103 = arith.constant 0 : index
    %298 = vector.load %arg5[%297, %c0_102, %c0_103] : memref<8x8x128xf32, #tpu.memory_space<vmem>>, vector<1x8x128xf32>
    %299 = vector.shape_cast %298 : vector<1x8x128xf32> to vector<8x128xf32>
    %300 = vector.shape_cast %296 : vector<8x128xf32> to vector<1x8x128xf32>
    tpu.vector_store %arg5[%297, %c0_102, %c0_103], %300 {strides = array<i32>} : memref<8x8x128xf32, #tpu.memory_space<vmem>>, vector<1x8x128xf32>,
    %c7_i32 = arith.constant 7 : i32
    %301 = arith.index_cast %c7_i32 : i32 to index
    %c0_104 = arith.constant 0 : index
    %c0_105 = arith.constant 0 : index
    %302 = vector.load %arg6[%301, %c0_104, %c0_105] : memref<8x8x512xf32, #tpu.memory_space<vmem>>, vector<1x8x512xf32>
    %303 = vector.shape_cast %302 : vector<1x8x512xf32> to vector<8x512xf32>
    %304 = arith.truncf %292 : vector<8x128xf32> to vector<8x128xbf16>
    %c0_106 = arith.constant 0 : index
    %c0_107 = arith.constant 0 : index
    %c0_108 = arith.constant 0 : index
    %305 = vector.load %arg3[%c0_106, %c0_107, %c0_108] : memref<2x128x512xbf16, #tpu.memory_space<vmem>>, vector<1x128x512xbf16>
    %306 = vector.shape_cast %305 : vector<1x128x512xbf16> to vector<128x512xbf16>
    %cst_109 = arith.constant dense<0.000000e+00> : vector<8x512xf32>
    %307 = tpu.matmul %304, %306, %cst_109 {dimension_numbers = #tpu.dot_dimension_numbers<[1], [0], [0], [1], [0, 0, 1, 1], [], []>} : vector<8x128xbf16>, vector<128x512xbf16>, vector<8x512xf32> -> vector<8x512xf32>
    %308 = arith.addf %303, %307 : vector<8x512xf32>
    %309 = vector.extract_strided_slice %308 {offsets = [0, 0], sizes = [8, 128], strides = [1, 1]} : vector<8x512xf32> to vector<8x128xf32>
    %310 = arith.negf %309 : vector<8x128xf32>
    %311 = math.exp %310 : vector<8x128xf32>
    %cst_110 = arith.constant 1.000000e+00 : f32
    %312 = vector.broadcast %cst_110 : f32 to vector<8x128xf32>
    %313 = arith.addf %312, %311 : vector<8x128xf32>
    %314 = arith.divf %312, %313 : vector<8x128xf32>
    %315 = vector.extract_strided_slice %308 {offsets = [0, 128], sizes = [8, 128], strides = [1, 1]} : vector<8x512xf32> to vector<8x128xf32>
    %316 = arith.negf %315 : vector<8x128xf32>
    %317 = math.exp %316 : vector<8x128xf32>
    %cst_111 = arith.constant 1.000000e+00 : f32
    %318 = vector.broadcast %cst_111 : f32 to vector<8x128xf32>
    %319 = arith.addf %318, %317 : vector<8x128xf32>
    %320 = arith.divf %318, %319 : vector<8x128xf32>
    %321 = vector.extract_strided_slice %308 {offsets = [0, 256], sizes = [8, 128], strides = [1, 1]} : vector<8x512xf32> to vector<8x128xf32>
    %322 = math.tanh %321 : vector<8x128xf32>
    %323 = vector.extract_strided_slice %308 {offsets = [0, 384], sizes = [8, 128], strides = [1, 1]} : vector<8x512xf32> to vector<8x128xf32>
    %324 = arith.negf %323 : vector<8x128xf32>
    %325 = math.exp %324 : vector<8x128xf32>
    %cst_112 = arith.constant 1.000000e+00 : f32
    %326 = vector.broadcast %cst_112 : f32 to vector<8x128xf32>
    %327 = arith.addf %326, %325 : vector<8x128xf32>
    %328 = arith.divf %326, %327 : vector<8x128xf32>
    %329 = arith.mulf %320, %290 : vector<8x128xf32>
    %330 = arith.mulf %314, %322 : vector<8x128xf32>
    %331 = arith.addf %329, %330 : vector<8x128xf32>
    %332 = math.tanh %331 : vector<8x128xf32>
    %333 = arith.mulf %328, %332 : vector<8x128xf32>
    %334 = arith.index_cast %c7_i32 : i32 to index
    %c0_113 = arith.constant 0 : index
    %c0_114 = arith.constant 0 : index
    %335 = vector.load %arg1[%334, %c0_113, %c0_114] : memref<8x8x128xf32, #tpu.memory_space<vmem>>, vector<1x8x128xf32>
    %336 = vector.shape_cast %335 : vector<1x8x128xf32> to vector<8x128xf32>
    %337 = arith.addf %333, %336 : vector<8x128xf32>
    %338 = arith.index_cast %c7_i32 : i32 to index
    %c0_115 = arith.constant 0 : index
    %c0_116 = arith.constant 0 : index
    %339 = vector.load %arg5[%338, %c0_115, %c0_116] : memref<8x8x128xf32, #tpu.memory_space<vmem>>, vector<1x8x128xf32>
    %340 = vector.shape_cast %339 : vector<1x8x128xf32> to vector<8x128xf32>
    %341 = vector.shape_cast %337 : vector<8x128xf32> to vector<1x8x128xf32>
    tpu.vector_store %arg5[%338, %c0_115, %c0_116], %341 {strides = array<i32>} : memref<8x8x128xf32, #tpu.memory_space<vmem>>, vector<1x8x128xf32>,
    %c8_i32 = arith.constant 8 : i32
    %c0_117 = arith.constant 0 : index
    %c0_118 = arith.constant 0 : index
    %c0_119 = arith.constant 0 : index
    %342 = vector.load %arg5[%c0_117, %c0_118, %c0_119] : memref<8x8x128xf32, #tpu.memory_space<vmem>>, vector<8x8x128xf32>
    %343 = arith.truncf %342 : vector<8x8x128xf32> to vector<8x8x128xbf16>
    %344 = vector.shape_cast %343 : vector<8x8x128xbf16> to vector<64x128xbf16>
    %c1 = arith.constant 1 : index
    %c0_120 = arith.constant 0 : index
    %c0_121 = arith.constant 0 : index
    %345 = vector.load %arg2[%c1, %c0_120, %c0_121] : memref<2x128x512xbf16, #tpu.memory_space<vmem>>, vector<1x128x512xbf16>
    %346 = vector.shape_cast %345 : vector<1x128x512xbf16> to vector<128x512xbf16>
    %cst_122 = arith.constant dense<0.000000e+00> : vector<64x512xf32>
    %347 = tpu.matmul %344, %346, %cst_122 {dimension_numbers = #tpu.dot_dimension_numbers<[1], [0], [0], [1], [0, 0, 1, 1], [], []>} : vector<64x128xbf16>, vector<128x512xbf16>, vector<64x512xf32> -> vector<64x512xf32>
    %c1_123 = arith.constant 1 : index
    %c0_124 = arith.constant 0 : index
    %c0_125 = arith.constant 0 : index
    %348 = vector.load %arg4[%c1_123, %c0_124, %c0_125] : memref<2x1x512xf32, #tpu.memory_space<vmem>>, vector<1x1x512xf32>
    %349 = vector.shape_cast %348 : vector<1x1x512xf32> to vector<1x512xf32>
    %350 = vector.broadcast %349 : vector<1x512xf32> to vector<64x512xf32>
    %351 = arith.addf %347, %350 : vector<64x512xf32>
    %352 = vector.shape_cast %351 : vector<64x512xf32> to vector<8x8x512xf32>
    %c0_126 = arith.constant 0 : index
    %c0_127 = arith.constant 0 : index
    %c0_128 = arith.constant 0 : index
    %353 = vector.load %arg6[%c0_126, %c0_127, %c0_128] : memref<8x8x512xf32, #tpu.memory_space<vmem>>, vector<8x8x512xf32>
    tpu.vector_store %arg6[%c0_126, %c0_127, %c0_128], %352 {strides = array<i32>} : memref<8x8x512xf32, #tpu.memory_space<vmem>>, vector<8x8x512xf32>,
    %cst_129 = arith.constant 0.000000e+00 : f32
    %354 = vector.broadcast %cst_129 : f32 to vector<8x128xf32>
    %cst_130 = arith.constant 0.000000e+00 : f32
    %355 = vector.broadcast %cst_130 : f32 to vector<8x128xf32>
    %c0_i32_131 = arith.constant 0 : i32
    %356 = arith.index_cast %c0_i32_131 : i32 to index
    %c0_132 = arith.constant 0 : index
    %c0_133 = arith.constant 0 : index
    %357 = vector.load %arg6[%356, %c0_132, %c0_133] : memref<8x8x512xf32, #tpu.memory_space<vmem>>, vector<1x8x512xf32>
    %358 = vector.shape_cast %357 : vector<1x8x512xf32> to vector<8x512xf32>
    %359 = arith.truncf %354 : vector<8x128xf32> to vector<8x128xbf16>
    %c1_134 = arith.constant 1 : index
    %c0_135 = arith.constant 0 : index
    %c0_136 = arith.constant 0 : index
    %360 = vector.load %arg3[%c1_134, %c0_135, %c0_136] : memref<2x128x512xbf16, #tpu.memory_space<vmem>>, vector<1x128x512xbf16>
    %361 = vector.shape_cast %360 : vector<1x128x512xbf16> to vector<128x512xbf16>
    %cst_137 = arith.constant dense<0.000000e+00> : vector<8x512xf32>
    %362 = tpu.matmul %359, %361, %cst_137 {dimension_numbers = #tpu.dot_dimension_numbers<[1], [0], [0], [1], [0, 0, 1, 1], [], []>} : vector<8x128xbf16>, vector<128x512xbf16>, vector<8x512xf32> -> vector<8x512xf32>
    %363 = arith.addf %358, %362 : vector<8x512xf32>
    %364 = vector.extract_strided_slice %363 {offsets = [0, 0], sizes = [8, 128], strides = [1, 1]} : vector<8x512xf32> to vector<8x128xf32>
    %365 = arith.negf %364 : vector<8x128xf32>
    %366 = math.exp %365 : vector<8x128xf32>
    %cst_138 = arith.constant 1.000000e+00 : f32
    %367 = vector.broadcast %cst_138 : f32 to vector<8x128xf32>
    %368 = arith.addf %367, %366 : vector<8x128xf32>
    %369 = arith.divf %367, %368 : vector<8x128xf32>
    %370 = vector.extract_strided_slice %363 {offsets = [0, 128], sizes = [8, 128], strides = [1, 1]} : vector<8x512xf32> to vector<8x128xf32>
    %371 = arith.negf %370 : vector<8x128xf32>
    %372 = math.exp %371 : vector<8x128xf32>
    %cst_139 = arith.constant 1.000000e+00 : f32
    %373 = vector.broadcast %cst_139 : f32 to vector<8x128xf32>
    %374 = arith.addf %373, %372 : vector<8x128xf32>
    %375 = arith.divf %373, %374 : vector<8x128xf32>
    %376 = vector.extract_strided_slice %363 {offsets = [0, 256], sizes = [8, 128], strides = [1, 1]} : vector<8x512xf32> to vector<8x128xf32>
    %377 = math.tanh %376 : vector<8x128xf32>
    %378 = vector.extract_strided_slice %363 {offsets = [0, 384], sizes = [8, 128], strides = [1, 1]} : vector<8x512xf32> to vector<8x128xf32>
    %379 = arith.negf %378 : vector<8x128xf32>
    %380 = math.exp %379 : vector<8x128xf32>
    %cst_140 = arith.constant 1.000000e+00 : f32
    %381 = vector.broadcast %cst_140 : f32 to vector<8x128xf32>
    %382 = arith.addf %381, %380 : vector<8x128xf32>
    %383 = arith.divf %381, %382 : vector<8x128xf32>
    %384 = arith.mulf %375, %355 : vector<8x128xf32>
    %385 = arith.mulf %369, %377 : vector<8x128xf32>
    %386 = arith.addf %384, %385 : vector<8x128xf32>
    %387 = math.tanh %386 : vector<8x128xf32>
    %388 = arith.mulf %383, %387 : vector<8x128xf32>
    %389 = arith.index_cast %c0_i32_131 : i32 to index
    %c0_141 = arith.constant 0 : index
    %c0_142 = arith.constant 0 : index
    %390 = vector.load %arg5[%389, %c0_141, %c0_142] : memref<8x8x128xf32, #tpu.memory_space<vmem>>, vector<1x8x128xf32>
    %391 = vector.shape_cast %390 : vector<1x8x128xf32> to vector<8x128xf32>
    %392 = arith.addf %388, %391 : vector<8x128xf32>
    %393 = arith.index_cast %c0_i32_131 : i32 to index
    %c0_143 = arith.constant 0 : index
    %c0_144 = arith.constant 0 : index
    %394 = vector.load %arg5[%393, %c0_143, %c0_144] : memref<8x8x128xf32, #tpu.memory_space<vmem>>, vector<1x8x128xf32>
    %395 = vector.shape_cast %394 : vector<1x8x128xf32> to vector<8x128xf32>
    %396 = vector.shape_cast %392 : vector<8x128xf32> to vector<1x8x128xf32>
    tpu.vector_store %arg5[%393, %c0_143, %c0_144], %396 {strides = array<i32>} : memref<8x8x128xf32, #tpu.memory_space<vmem>>, vector<1x8x128xf32>,
    %c1_i32_145 = arith.constant 1 : i32
    %397 = arith.index_cast %c1_i32_145 : i32 to index
    %c0_146 = arith.constant 0 : index
    %c0_147 = arith.constant 0 : index
    %398 = vector.load %arg6[%397, %c0_146, %c0_147] : memref<8x8x512xf32, #tpu.memory_space<vmem>>, vector<1x8x512xf32>
    %399 = vector.shape_cast %398 : vector<1x8x512xf32> to vector<8x512xf32>
    %400 = arith.truncf %388 : vector<8x128xf32> to vector<8x128xbf16>
    %c1_148 = arith.constant 1 : index
    %c0_149 = arith.constant 0 : index
    %c0_150 = arith.constant 0 : index
    %401 = vector.load %arg3[%c1_148, %c0_149, %c0_150] : memref<2x128x512xbf16, #tpu.memory_space<vmem>>, vector<1x128x512xbf16>
    %402 = vector.shape_cast %401 : vector<1x128x512xbf16> to vector<128x512xbf16>
    %cst_151 = arith.constant dense<0.000000e+00> : vector<8x512xf32>
    %403 = tpu.matmul %400, %402, %cst_151 {dimension_numbers = #tpu.dot_dimension_numbers<[1], [0], [0], [1], [0, 0, 1, 1], [], []>} : vector<8x128xbf16>, vector<128x512xbf16>, vector<8x512xf32> -> vector<8x512xf32>
    %404 = arith.addf %399, %403 : vector<8x512xf32>
    %405 = vector.extract_strided_slice %404 {offsets = [0, 0], sizes = [8, 128], strides = [1, 1]} : vector<8x512xf32> to vector<8x128xf32>
    %406 = arith.negf %405 : vector<8x128xf32>
    %407 = math.exp %406 : vector<8x128xf32>
    %cst_152 = arith.constant 1.000000e+00 : f32
    %408 = vector.broadcast %cst_152 : f32 to vector<8x128xf32>
    %409 = arith.addf %408, %407 : vector<8x128xf32>
    %410 = arith.divf %408, %409 : vector<8x128xf32>
    %411 = vector.extract_strided_slice %404 {offsets = [0, 128], sizes = [8, 128], strides = [1, 1]} : vector<8x512xf32> to vector<8x128xf32>
    %412 = arith.negf %411 : vector<8x128xf32>
    %413 = math.exp %412 : vector<8x128xf32>
    %cst_153 = arith.constant 1.000000e+00 : f32
    %414 = vector.broadcast %cst_153 : f32 to vector<8x128xf32>
    %415 = arith.addf %414, %413 : vector<8x128xf32>
    %416 = arith.divf %414, %415 : vector<8x128xf32>
    %417 = vector.extract_strided_slice %404 {offsets = [0, 256], sizes = [8, 128], strides = [1, 1]} : vector<8x512xf32> to vector<8x128xf32>
    %418 = math.tanh %417 : vector<8x128xf32>
    %419 = vector.extract_strided_slice %404 {offsets = [0, 384], sizes = [8, 128], strides = [1, 1]} : vector<8x512xf32> to vector<8x128xf32>
    %420 = arith.negf %419 : vector<8x128xf32>
    %421 = math.exp %420 : vector<8x128xf32>
    %cst_154 = arith.constant 1.000000e+00 : f32
    %422 = vector.broadcast %cst_154 : f32 to vector<8x128xf32>
    %423 = arith.addf %422, %421 : vector<8x128xf32>
    %424 = arith.divf %422, %423 : vector<8x128xf32>
    %425 = arith.mulf %416, %386 : vector<8x128xf32>
    %426 = arith.mulf %410, %418 : vector<8x128xf32>
    %427 = arith.addf %425, %426 : vector<8x128xf32>
    %428 = math.tanh %427 : vector<8x128xf32>
    %429 = arith.mulf %424, %428 : vector<8x128xf32>
    %430 = arith.index_cast %c1_i32_145 : i32 to index
    %c0_155 = arith.constant 0 : index
    %c0_156 = arith.constant 0 : index
    %431 = vector.load %arg5[%430, %c0_155, %c0_156] : memref<8x8x128xf32, #tpu.memory_space<vmem>>, vector<1x8x128xf32>
    %432 = vector.shape_cast %431 : vector<1x8x128xf32> to vector<8x128xf32>
    %433 = arith.addf %429, %432 : vector<8x128xf32>
    %434 = arith.index_cast %c1_i32_145 : i32 to index
    %c0_157 = arith.constant 0 : index
    %c0_158 = arith.constant 0 : index
    %435 = vector.load %arg5[%434, %c0_157, %c0_158] : memref<8x8x128xf32, #tpu.memory_space<vmem>>, vector<1x8x128xf32>
    %436 = vector.shape_cast %435 : vector<1x8x128xf32> to vector<8x128xf32>
    %437 = vector.shape_cast %433 : vector<8x128xf32> to vector<1x8x128xf32>
    tpu.vector_store %arg5[%434, %c0_157, %c0_158], %437 {strides = array<i32>} : memref<8x8x128xf32, #tpu.memory_space<vmem>>, vector<1x8x128xf32>,
    %c2_i32_159 = arith.constant 2 : i32
    %438 = arith.index_cast %c2_i32_159 : i32 to index
    %c0_160 = arith.constant 0 : index
    %c0_161 = arith.constant 0 : index
    %439 = vector.load %arg6[%438, %c0_160, %c0_161] : memref<8x8x512xf32, #tpu.memory_space<vmem>>, vector<1x8x512xf32>
    %440 = vector.shape_cast %439 : vector<1x8x512xf32> to vector<8x512xf32>
    %441 = arith.truncf %429 : vector<8x128xf32> to vector<8x128xbf16>
    %c1_162 = arith.constant 1 : index
    %c0_163 = arith.constant 0 : index
    %c0_164 = arith.constant 0 : index
    %442 = vector.load %arg3[%c1_162, %c0_163, %c0_164] : memref<2x128x512xbf16, #tpu.memory_space<vmem>>, vector<1x128x512xbf16>
    %443 = vector.shape_cast %442 : vector<1x128x512xbf16> to vector<128x512xbf16>
    %cst_165 = arith.constant dense<0.000000e+00> : vector<8x512xf32>
    %444 = tpu.matmul %441, %443, %cst_165 {dimension_numbers = #tpu.dot_dimension_numbers<[1], [0], [0], [1], [0, 0, 1, 1], [], []>} : vector<8x128xbf16>, vector<128x512xbf16>, vector<8x512xf32> -> vector<8x512xf32>
    %445 = arith.addf %440, %444 : vector<8x512xf32>
    %446 = vector.extract_strided_slice %445 {offsets = [0, 0], sizes = [8, 128], strides = [1, 1]} : vector<8x512xf32> to vector<8x128xf32>
    %447 = arith.negf %446 : vector<8x128xf32>
    %448 = math.exp %447 : vector<8x128xf32>
    %cst_166 = arith.constant 1.000000e+00 : f32
    %449 = vector.broadcast %cst_166 : f32 to vector<8x128xf32>
    %450 = arith.addf %449, %448 : vector<8x128xf32>
    %451 = arith.divf %449, %450 : vector<8x128xf32>
    %452 = vector.extract_strided_slice %445 {offsets = [0, 128], sizes = [8, 128], strides = [1, 1]} : vector<8x512xf32> to vector<8x128xf32>
    %453 = arith.negf %452 : vector<8x128xf32>
    %454 = math.exp %453 : vector<8x128xf32>
    %cst_167 = arith.constant 1.000000e+00 : f32
    %455 = vector.broadcast %cst_167 : f32 to vector<8x128xf32>
    %456 = arith.addf %455, %454 : vector<8x128xf32>
    %457 = arith.divf %455, %456 : vector<8x128xf32>
    %458 = vector.extract_strided_slice %445 {offsets = [0, 256], sizes = [8, 128], strides = [1, 1]} : vector<8x512xf32> to vector<8x128xf32>
    %459 = math.tanh %458 : vector<8x128xf32>
    %460 = vector.extract_strided_slice %445 {offsets = [0, 384], sizes = [8, 128], strides = [1, 1]} : vector<8x512xf32> to vector<8x128xf32>
    %461 = arith.negf %460 : vector<8x128xf32>
    %462 = math.exp %461 : vector<8x128xf32>
    %cst_168 = arith.constant 1.000000e+00 : f32
    %463 = vector.broadcast %cst_168 : f32 to vector<8x128xf32>
    %464 = arith.addf %463, %462 : vector<8x128xf32>
    %465 = arith.divf %463, %464 : vector<8x128xf32>
    %466 = arith.mulf %457, %427 : vector<8x128xf32>
    %467 = arith.mulf %451, %459 : vector<8x128xf32>
    %468 = arith.addf %466, %467 : vector<8x128xf32>
    %469 = math.tanh %468 : vector<8x128xf32>
    %470 = arith.mulf %465, %469 : vector<8x128xf32>
    %471 = arith.index_cast %c2_i32_159 : i32 to index
    %c0_169 = arith.constant 0 : index
    %c0_170 = arith.constant 0 : index
    %472 = vector.load %arg5[%471, %c0_169, %c0_170] : memref<8x8x128xf32, #tpu.memory_space<vmem>>, vector<1x8x128xf32>
    %473 = vector.shape_cast %472 : vector<1x8x128xf32> to vector<8x128xf32>
    %474 = arith.addf %470, %473 : vector<8x128xf32>
    %475 = arith.index_cast %c2_i32_159 : i32 to index
    %c0_171 = arith.constant 0 : index
    %c0_172 = arith.constant 0 : index
    %476 = vector.load %arg5[%475, %c0_171, %c0_172] : memref<8x8x128xf32, #tpu.memory_space<vmem>>, vector<1x8x128xf32>
    %477 = vector.shape_cast %476 : vector<1x8x128xf32> to vector<8x128xf32>
    %478 = vector.shape_cast %474 : vector<8x128xf32> to vector<1x8x128xf32>
    tpu.vector_store %arg5[%475, %c0_171, %c0_172], %478 {strides = array<i32>} : memref<8x8x128xf32, #tpu.memory_space<vmem>>, vector<1x8x128xf32>,
    %c3_i32_173 = arith.constant 3 : i32
    %479 = arith.index_cast %c3_i32_173 : i32 to index
    %c0_174 = arith.constant 0 : index
    %c0_175 = arith.constant 0 : index
    %480 = vector.load %arg6[%479, %c0_174, %c0_175] : memref<8x8x512xf32, #tpu.memory_space<vmem>>, vector<1x8x512xf32>
    %481 = vector.shape_cast %480 : vector<1x8x512xf32> to vector<8x512xf32>
    %482 = arith.truncf %470 : vector<8x128xf32> to vector<8x128xbf16>
    %c1_176 = arith.constant 1 : index
    %c0_177 = arith.constant 0 : index
    %c0_178 = arith.constant 0 : index
    %483 = vector.load %arg3[%c1_176, %c0_177, %c0_178] : memref<2x128x512xbf16, #tpu.memory_space<vmem>>, vector<1x128x512xbf16>
    %484 = vector.shape_cast %483 : vector<1x128x512xbf16> to vector<128x512xbf16>
    %cst_179 = arith.constant dense<0.000000e+00> : vector<8x512xf32>
    %485 = tpu.matmul %482, %484, %cst_179 {dimension_numbers = #tpu.dot_dimension_numbers<[1], [0], [0], [1], [0, 0, 1, 1], [], []>} : vector<8x128xbf16>, vector<128x512xbf16>, vector<8x512xf32> -> vector<8x512xf32>
    %486 = arith.addf %481, %485 : vector<8x512xf32>
    %487 = vector.extract_strided_slice %486 {offsets = [0, 0], sizes = [8, 128], strides = [1, 1]} : vector<8x512xf32> to vector<8x128xf32>
    %488 = arith.negf %487 : vector<8x128xf32>
    %489 = math.exp %488 : vector<8x128xf32>
    %cst_180 = arith.constant 1.000000e+00 : f32
    %490 = vector.broadcast %cst_180 : f32 to vector<8x128xf32>
    %491 = arith.addf %490, %489 : vector<8x128xf32>
    %492 = arith.divf %490, %491 : vector<8x128xf32>
    %493 = vector.extract_strided_slice %486 {offsets = [0, 128], sizes = [8, 128], strides = [1, 1]} : vector<8x512xf32> to vector<8x128xf32>
    %494 = arith.negf %493 : vector<8x128xf32>
    %495 = math.exp %494 : vector<8x128xf32>
    %cst_181 = arith.constant 1.000000e+00 : f32
    %496 = vector.broadcast %cst_181 : f32 to vector<8x128xf32>
    %497 = arith.addf %496, %495 : vector<8x128xf32>
    %498 = arith.divf %496, %497 : vector<8x128xf32>
    %499 = vector.extract_strided_slice %486 {offsets = [0, 256], sizes = [8, 128], strides = [1, 1]} : vector<8x512xf32> to vector<8x128xf32>
    %500 = math.tanh %499 : vector<8x128xf32>
    %501 = vector.extract_strided_slice %486 {offsets = [0, 384], sizes = [8, 128], strides = [1, 1]} : vector<8x512xf32> to vector<8x128xf32>
    %502 = arith.negf %501 : vector<8x128xf32>
    %503 = math.exp %502 : vector<8x128xf32>
    %cst_182 = arith.constant 1.000000e+00 : f32
    %504 = vector.broadcast %cst_182 : f32 to vector<8x128xf32>
    %505 = arith.addf %504, %503 : vector<8x128xf32>
    %506 = arith.divf %504, %505 : vector<8x128xf32>
    %507 = arith.mulf %498, %468 : vector<8x128xf32>
    %508 = arith.mulf %492, %500 : vector<8x128xf32>
    %509 = arith.addf %507, %508 : vector<8x128xf32>
    %510 = math.tanh %509 : vector<8x128xf32>
    %511 = arith.mulf %506, %510 : vector<8x128xf32>
    %512 = arith.index_cast %c3_i32_173 : i32 to index
    %c0_183 = arith.constant 0 : index
    %c0_184 = arith.constant 0 : index
    %513 = vector.load %arg5[%512, %c0_183, %c0_184] : memref<8x8x128xf32, #tpu.memory_space<vmem>>, vector<1x8x128xf32>
    %514 = vector.shape_cast %513 : vector<1x8x128xf32> to vector<8x128xf32>
    %515 = arith.addf %511, %514 : vector<8x128xf32>
    %516 = arith.index_cast %c3_i32_173 : i32 to index
    %c0_185 = arith.constant 0 : index
    %c0_186 = arith.constant 0 : index
    %517 = vector.load %arg5[%516, %c0_185, %c0_186] : memref<8x8x128xf32, #tpu.memory_space<vmem>>, vector<1x8x128xf32>
    %518 = vector.shape_cast %517 : vector<1x8x128xf32> to vector<8x128xf32>
    %519 = vector.shape_cast %515 : vector<8x128xf32> to vector<1x8x128xf32>
    tpu.vector_store %arg5[%516, %c0_185, %c0_186], %519 {strides = array<i32>} : memref<8x8x128xf32, #tpu.memory_space<vmem>>, vector<1x8x128xf32>,
    %c4_i32_187 = arith.constant 4 : i32
    %520 = arith.index_cast %c4_i32_187 : i32 to index
    %c0_188 = arith.constant 0 : index
    %c0_189 = arith.constant 0 : index
    %521 = vector.load %arg6[%520, %c0_188, %c0_189] : memref<8x8x512xf32, #tpu.memory_space<vmem>>, vector<1x8x512xf32>
    %522 = vector.shape_cast %521 : vector<1x8x512xf32> to vector<8x512xf32>
    %523 = arith.truncf %511 : vector<8x128xf32> to vector<8x128xbf16>
    %c1_190 = arith.constant 1 : index
    %c0_191 = arith.constant 0 : index
    %c0_192 = arith.constant 0 : index
    %524 = vector.load %arg3[%c1_190, %c0_191, %c0_192] : memref<2x128x512xbf16, #tpu.memory_space<vmem>>, vector<1x128x512xbf16>
    %525 = vector.shape_cast %524 : vector<1x128x512xbf16> to vector<128x512xbf16>
    %cst_193 = arith.constant dense<0.000000e+00> : vector<8x512xf32>
    %526 = tpu.matmul %523, %525, %cst_193 {dimension_numbers = #tpu.dot_dimension_numbers<[1], [0], [0], [1], [0, 0, 1, 1], [], []>} : vector<8x128xbf16>, vector<128x512xbf16>, vector<8x512xf32> -> vector<8x512xf32>
    %527 = arith.addf %522, %526 : vector<8x512xf32>
    %528 = vector.extract_strided_slice %527 {offsets = [0, 0], sizes = [8, 128], strides = [1, 1]} : vector<8x512xf32> to vector<8x128xf32>
    %529 = arith.negf %528 : vector<8x128xf32>
    %530 = math.exp %529 : vector<8x128xf32>
    %cst_194 = arith.constant 1.000000e+00 : f32
    %531 = vector.broadcast %cst_194 : f32 to vector<8x128xf32>
    %532 = arith.addf %531, %530 : vector<8x128xf32>
    %533 = arith.divf %531, %532 : vector<8x128xf32>
    %534 = vector.extract_strided_slice %527 {offsets = [0, 128], sizes = [8, 128], strides = [1, 1]} : vector<8x512xf32> to vector<8x128xf32>
    %535 = arith.negf %534 : vector<8x128xf32>
    %536 = math.exp %535 : vector<8x128xf32>
    %cst_195 = arith.constant 1.000000e+00 : f32
    %537 = vector.broadcast %cst_195 : f32 to vector<8x128xf32>
    %538 = arith.addf %537, %536 : vector<8x128xf32>
    %539 = arith.divf %537, %538 : vector<8x128xf32>
    %540 = vector.extract_strided_slice %527 {offsets = [0, 256], sizes = [8, 128], strides = [1, 1]} : vector<8x512xf32> to vector<8x128xf32>
    %541 = math.tanh %540 : vector<8x128xf32>
    %542 = vector.extract_strided_slice %527 {offsets = [0, 384], sizes = [8, 128], strides = [1, 1]} : vector<8x512xf32> to vector<8x128xf32>
    %543 = arith.negf %542 : vector<8x128xf32>
    %544 = math.exp %543 : vector<8x128xf32>
    %cst_196 = arith.constant 1.000000e+00 : f32
    %545 = vector.broadcast %cst_196 : f32 to vector<8x128xf32>
    %546 = arith.addf %545, %544 : vector<8x128xf32>
    %547 = arith.divf %545, %546 : vector<8x128xf32>
    %548 = arith.mulf %539, %509 : vector<8x128xf32>
    %549 = arith.mulf %533, %541 : vector<8x128xf32>
    %550 = arith.addf %548, %549 : vector<8x128xf32>
    %551 = math.tanh %550 : vector<8x128xf32>
    %552 = arith.mulf %547, %551 : vector<8x128xf32>
    %553 = arith.index_cast %c4_i32_187 : i32 to index
    %c0_197 = arith.constant 0 : index
    %c0_198 = arith.constant 0 : index
    %554 = vector.load %arg5[%553, %c0_197, %c0_198] : memref<8x8x128xf32, #tpu.memory_space<vmem>>, vector<1x8x128xf32>
    %555 = vector.shape_cast %554 : vector<1x8x128xf32> to vector<8x128xf32>
    %556 = arith.addf %552, %555 : vector<8x128xf32>
    %557 = arith.index_cast %c4_i32_187 : i32 to index
    %c0_199 = arith.constant 0 : index
    %c0_200 = arith.constant 0 : index
    %558 = vector.load %arg5[%557, %c0_199, %c0_200] : memref<8x8x128xf32, #tpu.memory_space<vmem>>, vector<1x8x128xf32>
    %559 = vector.shape_cast %558 : vector<1x8x128xf32> to vector<8x128xf32>
    %560 = vector.shape_cast %556 : vector<8x128xf32> to vector<1x8x128xf32>
    tpu.vector_store %arg5[%557, %c0_199, %c0_200], %560 {strides = array<i32>} : memref<8x8x128xf32, #tpu.memory_space<vmem>>, vector<1x8x128xf32>,
    %c5_i32_201 = arith.constant 5 : i32
    %561 = arith.index_cast %c5_i32_201 : i32 to index
    %c0_202 = arith.constant 0 : index
    %c0_203 = arith.constant 0 : index
    %562 = vector.load %arg6[%561, %c0_202, %c0_203] : memref<8x8x512xf32, #tpu.memory_space<vmem>>, vector<1x8x512xf32>
    %563 = vector.shape_cast %562 : vector<1x8x512xf32> to vector<8x512xf32>
    %564 = arith.truncf %552 : vector<8x128xf32> to vector<8x128xbf16>
    %c1_204 = arith.constant 1 : index
    %c0_205 = arith.constant 0 : index
    %c0_206 = arith.constant 0 : index
    %565 = vector.load %arg3[%c1_204, %c0_205, %c0_206] : memref<2x128x512xbf16, #tpu.memory_space<vmem>>, vector<1x128x512xbf16>
    %566 = vector.shape_cast %565 : vector<1x128x512xbf16> to vector<128x512xbf16>
    %cst_207 = arith.constant dense<0.000000e+00> : vector<8x512xf32>
    %567 = tpu.matmul %564, %566, %cst_207 {dimension_numbers = #tpu.dot_dimension_numbers<[1], [0], [0], [1], [0, 0, 1, 1], [], []>} : vector<8x128xbf16>, vector<128x512xbf16>, vector<8x512xf32> -> vector<8x512xf32>
    %568 = arith.addf %563, %567 : vector<8x512xf32>
    %569 = vector.extract_strided_slice %568 {offsets = [0, 0], sizes = [8, 128], strides = [1, 1]} : vector<8x512xf32> to vector<8x128xf32>
    %570 = arith.negf %569 : vector<8x128xf32>
    %571 = math.exp %570 : vector<8x128xf32>
    %cst_208 = arith.constant 1.000000e+00 : f32
    %572 = vector.broadcast %cst_208 : f32 to vector<8x128xf32>
    %573 = arith.addf %572, %571 : vector<8x128xf32>
    %574 = arith.divf %572, %573 : vector<8x128xf32>
    %575 = vector.extract_strided_slice %568 {offsets = [0, 128], sizes = [8, 128], strides = [1, 1]} : vector<8x512xf32> to vector<8x128xf32>
    %576 = arith.negf %575 : vector<8x128xf32>
    %577 = math.exp %576 : vector<8x128xf32>
    %cst_209 = arith.constant 1.000000e+00 : f32
    %578 = vector.broadcast %cst_209 : f32 to vector<8x128xf32>
    %579 = arith.addf %578, %577 : vector<8x128xf32>
    %580 = arith.divf %578, %579 : vector<8x128xf32>
    %581 = vector.extract_strided_slice %568 {offsets = [0, 256], sizes = [8, 128], strides = [1, 1]} : vector<8x512xf32> to vector<8x128xf32>
    %582 = math.tanh %581 : vector<8x128xf32>
    %583 = vector.extract_strided_slice %568 {offsets = [0, 384], sizes = [8, 128], strides = [1, 1]} : vector<8x512xf32> to vector<8x128xf32>
    %584 = arith.negf %583 : vector<8x128xf32>
    %585 = math.exp %584 : vector<8x128xf32>
    %cst_210 = arith.constant 1.000000e+00 : f32
    %586 = vector.broadcast %cst_210 : f32 to vector<8x128xf32>
    %587 = arith.addf %586, %585 : vector<8x128xf32>
    %588 = arith.divf %586, %587 : vector<8x128xf32>
    %589 = arith.mulf %580, %550 : vector<8x128xf32>
    %590 = arith.mulf %574, %582 : vector<8x128xf32>
    %591 = arith.addf %589, %590 : vector<8x128xf32>
    %592 = math.tanh %591 : vector<8x128xf32>
    %593 = arith.mulf %588, %592 : vector<8x128xf32>
    %594 = arith.index_cast %c5_i32_201 : i32 to index
    %c0_211 = arith.constant 0 : index
    %c0_212 = arith.constant 0 : index
    %595 = vector.load %arg5[%594, %c0_211, %c0_212] : memref<8x8x128xf32, #tpu.memory_space<vmem>>, vector<1x8x128xf32>
    %596 = vector.shape_cast %595 : vector<1x8x128xf32> to vector<8x128xf32>
    %597 = arith.addf %593, %596 : vector<8x128xf32>
    %598 = arith.index_cast %c5_i32_201 : i32 to index
    %c0_213 = arith.constant 0 : index
    %c0_214 = arith.constant 0 : index
    %599 = vector.load %arg5[%598, %c0_213, %c0_214] : memref<8x8x128xf32, #tpu.memory_space<vmem>>, vector<1x8x128xf32>
    %600 = vector.shape_cast %599 : vector<1x8x128xf32> to vector<8x128xf32>
    %601 = vector.shape_cast %597 : vector<8x128xf32> to vector<1x8x128xf32>
    tpu.vector_store %arg5[%598, %c0_213, %c0_214], %601 {strides = array<i32>} : memref<8x8x128xf32, #tpu.memory_space<vmem>>, vector<1x8x128xf32>,
    %c6_i32_215 = arith.constant 6 : i32
    %602 = arith.index_cast %c6_i32_215 : i32 to index
    %c0_216 = arith.constant 0 : index
    %c0_217 = arith.constant 0 : index
    %603 = vector.load %arg6[%602, %c0_216, %c0_217] : memref<8x8x512xf32, #tpu.memory_space<vmem>>, vector<1x8x512xf32>
    %604 = vector.shape_cast %603 : vector<1x8x512xf32> to vector<8x512xf32>
    %605 = arith.truncf %593 : vector<8x128xf32> to vector<8x128xbf16>
    %c1_218 = arith.constant 1 : index
    %c0_219 = arith.constant 0 : index
    %c0_220 = arith.constant 0 : index
    %606 = vector.load %arg3[%c1_218, %c0_219, %c0_220] : memref<2x128x512xbf16, #tpu.memory_space<vmem>>, vector<1x128x512xbf16>
    %607 = vector.shape_cast %606 : vector<1x128x512xbf16> to vector<128x512xbf16>
    %cst_221 = arith.constant dense<0.000000e+00> : vector<8x512xf32>
    %608 = tpu.matmul %605, %607, %cst_221 {dimension_numbers = #tpu.dot_dimension_numbers<[1], [0], [0], [1], [0, 0, 1, 1], [], []>} : vector<8x128xbf16>, vector<128x512xbf16>, vector<8x512xf32> -> vector<8x512xf32>
    %609 = arith.addf %604, %608 : vector<8x512xf32>
    %610 = vector.extract_strided_slice %609 {offsets = [0, 0], sizes = [8, 128], strides = [1, 1]} : vector<8x512xf32> to vector<8x128xf32>
    %611 = arith.negf %610 : vector<8x128xf32>
    %612 = math.exp %611 : vector<8x128xf32>
    %cst_222 = arith.constant 1.000000e+00 : f32
    %613 = vector.broadcast %cst_222 : f32 to vector<8x128xf32>
    %614 = arith.addf %613, %612 : vector<8x128xf32>
    %615 = arith.divf %613, %614 : vector<8x128xf32>
    %616 = vector.extract_strided_slice %609 {offsets = [0, 128], sizes = [8, 128], strides = [1, 1]} : vector<8x512xf32> to vector<8x128xf32>
    %617 = arith.negf %616 : vector<8x128xf32>
    %618 = math.exp %617 : vector<8x128xf32>
    %cst_223 = arith.constant 1.000000e+00 : f32
    %619 = vector.broadcast %cst_223 : f32 to vector<8x128xf32>
    %620 = arith.addf %619, %618 : vector<8x128xf32>
    %621 = arith.divf %619, %620 : vector<8x128xf32>
    %622 = vector.extract_strided_slice %609 {offsets = [0, 256], sizes = [8, 128], strides = [1, 1]} : vector<8x512xf32> to vector<8x128xf32>
    %623 = math.tanh %622 : vector<8x128xf32>
    %624 = vector.extract_strided_slice %609 {offsets = [0, 384], sizes = [8, 128], strides = [1, 1]} : vector<8x512xf32> to vector<8x128xf32>
    %625 = arith.negf %624 : vector<8x128xf32>
    %626 = math.exp %625 : vector<8x128xf32>
    %cst_224 = arith.constant 1.000000e+00 : f32
    %627 = vector.broadcast %cst_224 : f32 to vector<8x128xf32>
    %628 = arith.addf %627, %626 : vector<8x128xf32>
    %629 = arith.divf %627, %628 : vector<8x128xf32>
    %630 = arith.mulf %621, %591 : vector<8x128xf32>
    %631 = arith.mulf %615, %623 : vector<8x128xf32>
    %632 = arith.addf %630, %631 : vector<8x128xf32>
    %633 = math.tanh %632 : vector<8x128xf32>
    %634 = arith.mulf %629, %633 : vector<8x128xf32>
    %635 = arith.index_cast %c6_i32_215 : i32 to index
    %c0_225 = arith.constant 0 : index
    %c0_226 = arith.constant 0 : index
    %636 = vector.load %arg5[%635, %c0_225, %c0_226] : memref<8x8x128xf32, #tpu.memory_space<vmem>>, vector<1x8x128xf32>
    %637 = vector.shape_cast %636 : vector<1x8x128xf32> to vector<8x128xf32>
    %638 = arith.addf %634, %637 : vector<8x128xf32>
    %639 = arith.index_cast %c6_i32_215 : i32 to index
    %c0_227 = arith.constant 0 : index
    %c0_228 = arith.constant 0 : index
    %640 = vector.load %arg5[%639, %c0_227, %c0_228] : memref<8x8x128xf32, #tpu.memory_space<vmem>>, vector<1x8x128xf32>
    %641 = vector.shape_cast %640 : vector<1x8x128xf32> to vector<8x128xf32>
    %642 = vector.shape_cast %638 : vector<8x128xf32> to vector<1x8x128xf32>
    tpu.vector_store %arg5[%639, %c0_227, %c0_228], %642 {strides = array<i32>} : memref<8x8x128xf32, #tpu.memory_space<vmem>>, vector<1x8x128xf32>,
    %c7_i32_229 = arith.constant 7 : i32
    %643 = arith.index_cast %c7_i32_229 : i32 to index
    %c0_230 = arith.constant 0 : index
    %c0_231 = arith.constant 0 : index
    %644 = vector.load %arg6[%643, %c0_230, %c0_231] : memref<8x8x512xf32, #tpu.memory_space<vmem>>, vector<1x8x512xf32>
    %645 = vector.shape_cast %644 : vector<1x8x512xf32> to vector<8x512xf32>
    %646 = arith.truncf %634 : vector<8x128xf32> to vector<8x128xbf16>
    %c1_232 = arith.constant 1 : index
    %c0_233 = arith.constant 0 : index
    %c0_234 = arith.constant 0 : index
    %647 = vector.load %arg3[%c1_232, %c0_233, %c0_234] : memref<2x128x512xbf16, #tpu.memory_space<vmem>>, vector<1x128x512xbf16>
    %648 = vector.shape_cast %647 : vector<1x128x512xbf16> to vector<128x512xbf16>
    %cst_235 = arith.constant dense<0.000000e+00> : vector<8x512xf32>
    %649 = tpu.matmul %646, %648, %cst_235 {dimension_numbers = #tpu.dot_dimension_numbers<[1], [0], [0], [1], [0, 0, 1, 1], [], []>} : vector<8x128xbf16>, vector<128x512xbf16>, vector<8x512xf32> -> vector<8x512xf32>
    %650 = arith.addf %645, %649 : vector<8x512xf32>
    %651 = vector.extract_strided_slice %650 {offsets = [0, 0], sizes = [8, 128], strides = [1, 1]} : vector<8x512xf32> to vector<8x128xf32>
    %652 = arith.negf %651 : vector<8x128xf32>
    %653 = math.exp %652 : vector<8x128xf32>
    %cst_236 = arith.constant 1.000000e+00 : f32
    %654 = vector.broadcast %cst_236 : f32 to vector<8x128xf32>
    %655 = arith.addf %654, %653 : vector<8x128xf32>
    %656 = arith.divf %654, %655 : vector<8x128xf32>
    %657 = vector.extract_strided_slice %650 {offsets = [0, 128], sizes = [8, 128], strides = [1, 1]} : vector<8x512xf32> to vector<8x128xf32>
    %658 = arith.negf %657 : vector<8x128xf32>
    %659 = math.exp %658 : vector<8x128xf32>
    %cst_237 = arith.constant 1.000000e+00 : f32
    %660 = vector.broadcast %cst_237 : f32 to vector<8x128xf32>
    %661 = arith.addf %660, %659 : vector<8x128xf32>
    %662 = arith.divf %660, %661 : vector<8x128xf32>
    %663 = vector.extract_strided_slice %650 {offsets = [0, 256], sizes = [8, 128], strides = [1, 1]} : vector<8x512xf32> to vector<8x128xf32>
    %664 = math.tanh %663 : vector<8x128xf32>
    %665 = vector.extract_strided_slice %650 {offsets = [0, 384], sizes = [8, 128], strides = [1, 1]} : vector<8x512xf32> to vector<8x128xf32>
    %666 = arith.negf %665 : vector<8x128xf32>
    %667 = math.exp %666 : vector<8x128xf32>
    %cst_238 = arith.constant 1.000000e+00 : f32
    %668 = vector.broadcast %cst_238 : f32 to vector<8x128xf32>
    %669 = arith.addf %668, %667 : vector<8x128xf32>
    %670 = arith.divf %668, %669 : vector<8x128xf32>
    %671 = arith.mulf %662, %632 : vector<8x128xf32>
    %672 = arith.mulf %656, %664 : vector<8x128xf32>
    %673 = arith.addf %671, %672 : vector<8x128xf32>
    %674 = math.tanh %673 : vector<8x128xf32>
    %675 = arith.mulf %670, %674 : vector<8x128xf32>
    %676 = arith.index_cast %c7_i32_229 : i32 to index
    %c0_239 = arith.constant 0 : index
    %c0_240 = arith.constant 0 : index
    %677 = vector.load %arg5[%676, %c0_239, %c0_240] : memref<8x8x128xf32, #tpu.memory_space<vmem>>, vector<1x8x128xf32>
    %678 = vector.shape_cast %677 : vector<1x8x128xf32> to vector<8x128xf32>
    %679 = arith.addf %675, %678 : vector<8x128xf32>
    %680 = arith.index_cast %c7_i32_229 : i32 to index
    %c0_241 = arith.constant 0 : index
    %c0_242 = arith.constant 0 : index
    %681 = vector.load %arg5[%680, %c0_241, %c0_242] : memref<8x8x128xf32, #tpu.memory_space<vmem>>, vector<1x8x128xf32>
    %682 = vector.shape_cast %681 : vector<1x8x128xf32> to vector<8x128xf32>
    %683 = vector.shape_cast %679 : vector<8x128xf32> to vector<1x8x128xf32>
    tpu.vector_store %arg5[%680, %c0_241, %c0_242], %683 {strides = array<i32>} : memref<8x8x128xf32, #tpu.memory_space<vmem>>, vector<1x8x128xf32>,
    %c8_i32_243 = arith.constant 8 : i32
    return
  }
  func.func @transform_0(%arg0: i32) -> (i32, i32, i32) {
    %c0_i32 = arith.constant 0 : i32
    %c0_i32_0 = arith.constant 0 : i32
    %c0_i32_1 = arith.constant 0 : i32
    return %c0_i32, %arg0, %c0_i32_0 : i32, i32, i32
  }
  func.func @transform_1(%arg0: i32) -> (i32, i32, i32) {
    %c0_i32 = arith.constant 0 : i32
    %c0_i32_0 = arith.constant 0 : i32
    %c0_i32_1 = arith.constant 0 : i32
    %c0_i32_2 = arith.constant 0 : i32
    return %c0_i32, %c0_i32_0, %c0_i32_1 : i32, i32, i32
  }
  func.func @transform_2(%arg0: i32) -> (i32, i32, i32) {
    %c0_i32 = arith.constant 0 : i32
    %c0_i32_0 = arith.constant 0 : i32
    %c0_i32_1 = arith.constant 0 : i32
    %c0_i32_2 = arith.constant 0 : i32
    return %c0_i32, %c0_i32_0, %c0_i32_1 : i32, i32, i32
  }
  func.func @transform_3(%arg0: i32) -> (i32, i32, i32) {
    %c0_i32 = arith.constant 0 : i32
    %c0_i32_0 = arith.constant 0 : i32
    %c0_i32_1 = arith.constant 0 : i32
    %c0_i32_2 = arith.constant 0 : i32
    return %c0_i32, %c0_i32_0, %c0_i32_1 : i32, i32, i32
  }
  func.func @transform_4(%arg0: i32) -> (i32, i32, i32) {
    %c0_i32 = arith.constant 0 : i32
    %c0_i32_0 = arith.constant 0 : i32
    %c0_i32_1 = arith.constant 0 : i32
    return %c0_i32, %arg0, %c0_i32_0 : i32, i32, i32
  }
}

</mosaic_0001>

<bundles_post_ra>
// kernel: lstm_model_forward.3
= control target key start
LH: loop header
LB: loop body
LE: loop exit
PB: predicated region body
PF: predicated region fallthrough
CT: control target
= control target key end

     0   :  { %s339_s1 = inlined_call_operand.vmem [shape: bf16[128,128], index: 1, kind: input, shape index: {}]   ;;  %s340_s0 = inlined_call_operand.vmem [shape: f32[64,128], index: 0, kind: input, shape index: {}]   ;;  %s341_s2 = inlined_call_operand.vmem [shape: f32[1,128], index: 2, kind: input, shape index: {}]   ;;  %s342_s3 = inlined_call_operand.vmem [shape: f32[64,128], index: 3, kind: output, shape index: {}]  }
   0x1   :  { %v236_v0 = vld [vmem:[%s339_s1] sm:$0xff]   ;;  %v237_v1 = vld [vmem:[%s339_s1 + $0x8] sm:$0xff]   ;;  %v238_v2 = vld [vmem:[%s339_s1 + $0x10] sm:$0xff]  }
   0x2   :  { %196 = vmatprep.subr.bf16.mxu0 %v236_v0  ;;  %220 = vmatprep.subr.bf16.mxu1 %v236_v0  ;;  %v239_v3 = vld [vmem:[%s339_s1 + $0x18] sm:$0xff]   ;;  %v15_v4 = vld [vmem:[%s340_s0] sm:$0xff]  ;;  %v16_v5 = vld [vmem:[%s340_s0 + $0x8] sm:$0xff] }
   0x3   :  { %197 = vmatpush3.bf16.msra.mxu0 %v236_v0  ;;  %228 = vmatpush3.bf16.msra.mxu1 %v236_v0  ;;  %v19_v6 = vld [vmem:[%s340_s0 + $0x20] sm:$0xff]  ;;  %v23_v7 = vpack.c.bf16 %v16_v5, %v15_v4  ;;  %v20_v8 = vld [vmem:[%s340_s0 + $0x28] sm:$0xff]  ;;  %v242_v12 = vld [vmem:[%s339_s1 + $0x30] sm:$0xff]  }
   0x4   :  { %198 = vmatprep.subr.bf16.mxu0 %v237_v1  ;;  %221 = vmatprep.subr.bf16.mxu1 %v237_v1  ;;  %v25_v9 = vpack.c.bf16 %v20_v8, %v19_v6  ;;  %v240_v10 = vld [vmem:[%s339_s1 + $0x20] sm:$0xff]   ;;  %v241_v11 = vld [vmem:[%s339_s1 + $0x28] sm:$0xff]   ;;  %v243_v13 = vld [vmem:[%s339_s1 + $0x38] sm:$0xff]  }
   0x5   :  { %212 = vmatprep.mubr.bf16.mxu0 %v23_v7  ;;  %v17_v14 = vld [vmem:[%s340_s0 + $0x10] sm:$0xff]  ;;  %v18_v15 = vld [vmem:[%s340_s0 + $0x18] sm:$0xff]  ;;  %v175_v20 = vld [vmem:[%s341_s2] ss:$0 sm:$0xff] }
   0x6   :  { %216 = vmatprep.mubr.bf16.mxu1 %v25_v9  ;;  %v21_v16 = vld [vmem:[%s340_s0 + $0x30] sm:$0xff]  ;;  %v22_v17 = vld [vmem:[%s340_s0 + $0x38] sm:$0xff]  ;;  %v24_v18 = vpack.c.bf16 %v18_v15, %v17_v14 }
   0x7   :  { %199 = vmatpush3.bf16.msra.mxu0 %v237_v1  ;;  %229 = vmatpush3.bf16.msra.mxu1 %v237_v1  ;;  %v26_v19 = vpack.c.bf16 %v22_v17, %v21_v16 }
   0x8   :  { %200 = vmatprep.subr.bf16.mxu0 %v238_v2  ;;  %222 = vmatprep.subr.bf16.mxu1 %v238_v2 }
   0xb   :  { %201 = vmatpush3.bf16.msra.mxu0 %v238_v2  ;;  %230 = vmatpush3.bf16.msra.mxu1 %v238_v2 }
   0xc   :  { %202 = vmatprep.subr.bf16.mxu0 %v239_v3  ;;  %223 = vmatprep.subr.bf16.mxu1 %v239_v3 }
   0xf   :  { %203 = vmatpush3.bf16.msra.mxu0 %v239_v3  ;;  %231 = vmatpush3.bf16.msra.mxu1 %v239_v3 }
  0x10   :  { %204 = vmatprep.subr.bf16.mxu0 %v240_v10  ;;  %224 = vmatprep.subr.bf16.mxu1 %v240_v10 }
  0x13   :  { %205 = vmatpush3.bf16.msra.mxu0 %v240_v10  ;;  %232 = vmatpush3.bf16.msra.mxu1 %v240_v10 }
  0x14   :  { %206 = vmatprep.subr.bf16.mxu0 %v241_v11  ;;  %225 = vmatprep.subr.bf16.mxu1 %v241_v11 }
  0x17   :  { %207 = vmatpush3.bf16.msra.mxu0 %v241_v11  ;;  %233 = vmatpush3.bf16.msra.mxu1 %v241_v11 }
  0x18   :  { %208 = vmatprep.subr.bf16.mxu0 %v242_v12  ;;  %226 = vmatprep.subr.bf16.mxu1 %v242_v12 }
  0x1b   :  { %209 = vmatpush3.bf16.msra.mxu0 %v242_v12  ;;  %234 = vmatpush3.bf16.msra.mxu1 %v242_v12 }
  0x1c   :  { %210 = vmatprep.subr.bf16.mxu0 %v243_v13  ;;  %227 = vmatprep.subr.bf16.mxu1 %v243_v13 }
  0x1f   :  { %211 = vmatpush3.bf16.msra.mxu0 %v243_v13  ;;  %235 = vmatpush3.bf16.msra.mxu1 %v243_v13 }
  0x22   :  { %213 = vmatmul.mubr.bf16.vlgmr.msra.gmra.mrb[0].mxu0 %v24_v18  ;;  %217 = vmatmul.mubr.bf16.vlgmr.msra.gmra.mrb[0].mxu1 %v26_v19 }
  0xf5   :  { %v214_v21 = vpop.f32.mrb[0].mxu0  ;;  %v218_v22 = vpop.f32.mrb[0].mxu1 }
  0xf6   :  { %v141_v23 = vadd.f32 %v214_v21, %v175_v20  ;;  %v157_v24 = vadd.f32 %v218_v22, %v175_v20  ;;  %v132_v25 = vpop.f32.mrb[1].mxu0  ;;  %v148_v26 = vpop.f32.mrb[1].mxu1 }
  0xf7   :  { %v133_v27 = vadd.f32 %v175_v20, %v132_v25  ;;  %v149_v28 = vadd.f32 %v175_v20, %v148_v26  ;;  %v215_v29 = vpop.f32.mrb[2].mxu0  ;;  %v219_v30 = vpop.f32.mrb[2].mxu1 }
  0xf8   :  { %165 = vst [vmem:[%s342_s3 + $0x10] sm:$0xff] %v141_v23  ;;  %169 = vst [vmem:[%s342_s3 + $0x30] sm:$0xff] %v157_v24  ;;  %v144_v31 = vadd.f32 %v215_v29, %v175_v20  ;;  %v160_v32 = vadd.f32 %v219_v30, %v175_v20  ;;  %v135_v33 = vpop.f32.mrb[3].mxu0  ;;  %v151_v34 = vpop.f32.mrb[3].mxu1 }
  0xf9   :  { %163 = vst [vmem:[%s342_s3] sm:$0xff] %v133_v27  ;;  %167 = vst [vmem:[%s342_s3 + $0x20] sm:$0xff] %v149_v28  ;;  %v136_v35 = vadd.f32 %v175_v20, %v135_v33  ;;  %v152_v36 = vadd.f32 %v175_v20, %v151_v34 }
  0xfa   :  { %166 = vst [vmem:[%s342_s3 + $0x18] sm:$0xff] %v144_v31  ;;  %170 = vst [vmem:[%s342_s3 + $0x38] sm:$0xff] %v160_v32 }
  0xfb   :  { %164 = vst [vmem:[%s342_s3 + $0x8] sm:$0xff] %v136_v35  ;;  %168 = vst [vmem:[%s342_s3 + $0x28] sm:$0xff] %v152_v36 }

// kernel: lstm_model_forward.2
= control target key start
LH: loop header
LB: loop body
LE: loop exit
PB: predicated region body
PF: predicated region fallthrough
CT: control target
= control target key end

     0   :  { %v9276_v1 = vmov 0   ;;  %s9267_s1 = inlined_call_operand.vmem [shape: bf16[2,128,512], index: 1, kind: input, shape index: {}]   ;;  %s9268_s2 = inlined_call_operand.vmem [shape: bf16[2,128,512], index: 2, kind: input, shape index: {}]   ;;  %s9269_s0 = inlined_call_operand.vmem [shape: f32[8,8,128], index: 0, kind: input, shape index: {}]   ;;  %s9270_s3 = inlined_call_operand.vmem [shape: f32[2,1,512], index: 3, kind: input, shape index: {}]   ;;  %s9271_s4 = inlined_call_operand.vmem [shape: f32[8,8,128], index: 4, kind: output, shape index: {}]  }
   0x1   :  { %v6826_v0 = vld [vmem:[%s9267_s1 + $0x4] ss:$16 sps:$4 sm:$0xff]   ;;  %304 = vmatprep.mubr.bf16.mxu0 %v9276_v1  ;;  %377 = vmatprep.mubr.bf16.mxu1 %v9276_v1  ;;  %v6828_v2 = vld [vmem:[%s9267_s1 + $0xc] ss:$16 sps:$4 sm:$0xff]   ;;  %v6830_v3 = vld [vmem:[%s9267_s1] ss:$16 sps:$4 sm:$0xff]  }
   0x2   :  { %272 = vmatprep.subr.bf16.mxu0 %v6826_v0  ;;  %v6831_v4 = vld [vmem:[%s9267_s1 + $0x8] ss:$16 sps:$4 sm:$0xff]   ;;  %345 = vmatprep.subr.bf16.mxu1 %v6828_v2  ;;  %v6832_v5 = vld [vmem:[%s9267_s1 + $0x24] ss:$16 sps:$4 sm:$0xff]   ;;  %v6834_v6 = vld [vmem:[%s9267_s1 + $0x2c] ss:$16 sps:$4 sm:$0xff]  }
   0x3   :  { %273 = vmatpush1.bf16.msra.mxu0 %v6830_v3  ;;  %346 = vmatpush1.bf16.msra.mxu1 %v6831_v4  ;;  %v6836_v7 = vld [vmem:[%s9267_s1 + $0x20] ss:$16 sps:$4 sm:$0xff]   ;;  %v6837_v8 = vld [vmem:[%s9267_s1 + $0x28] ss:$16 sps:$4 sm:$0xff]   ;;  %v6838_v9 = vld [vmem:[%s9267_s1 + $0x44] ss:$16 sps:$4 sm:$0xff]  }
   0x4   :  { %274 = vmatprep.subr.bf16.mxu0 %v6832_v5  ;;  %347 = vmatprep.subr.bf16.mxu1 %v6834_v6  ;;  %v6840_v10 = vld [vmem:[%s9267_s1 + $0x4c] ss:$16 sps:$4 sm:$0xff]   ;;  %v6842_v11 = vld [vmem:[%s9267_s1 + $0x40] ss:$16 sps:$4 sm:$0xff]   ;;  %v6843_v12 = vld [vmem:[%s9267_s1 + $0x48] ss:$16 sps:$4 sm:$0xff]  }
   0x5   :  { %v6844_v13 = vld [vmem:[%s9267_s1 + $0x64] ss:$16 sps:$4 sm:$0xff]   ;;  %v6846_v14 = vld [vmem:[%s9267_s1 + $0x6c] ss:$16 sps:$4 sm:$0xff]   ;;  %v6848_v15 = vld [vmem:[%s9267_s1 + $0x60] ss:$16 sps:$4 sm:$0xff]  }
   0x6   :  { %v6849_v16 = vld [vmem:[%s9267_s1 + $0x68] ss:$16 sps:$4 sm:$0xff]   ;;  %v6850_v17 = vld [vmem:[%s9267_s1 + $0x84] ss:$16 sps:$4 sm:$0xff]   ;;  %v6852_v18 = vld [vmem:[%s9267_s1 + $0x8c] ss:$16 sps:$4 sm:$0xff]  }
   0x7   :  { %275 = vmatpush1.bf16.msra.mxu0 %v6836_v7  ;;  %348 = vmatpush1.bf16.msra.mxu1 %v6837_v8  ;;  %v6854_v19 = vld [vmem:[%s9267_s1 + $0x80] ss:$16 sps:$4 sm:$0xff]   ;;  %v6855_v20 = vld [vmem:[%s9267_s1 + $0x88] ss:$16 sps:$4 sm:$0xff]   ;;  %v6856_v21 = vld [vmem:[%s9267_s1 + $0xa4] ss:$16 sps:$4 sm:$0xff]  }
   0x8   :  { %276 = vmatprep.subr.bf16.mxu0 %v6838_v9  ;;  %349 = vmatprep.subr.bf16.mxu1 %v6840_v10  ;;  %v6858_v22 = vld [vmem:[%s9267_s1 + $0xac] ss:$16 sps:$4 sm:$0xff]   ;;  %v6860_v23 = vld [vmem:[%s9267_s1 + $0xa0] ss:$16 sps:$4 sm:$0xff]   ;;  %v6861_v24 = vld [vmem:[%s9267_s1 + $0xa8] ss:$16 sps:$4 sm:$0xff]  }
   0x9   :  { %v6862_v25 = vld [vmem:[%s9267_s1 + $0xc4] ss:$16 sps:$4 sm:$0xff]   ;;  %v6864_v26 = vld [vmem:[%s9267_s1 + $0xcc] ss:$16 sps:$4 sm:$0xff]   ;;  %v6866_v27 = vld [vmem:[%s9267_s1 + $0xc0] ss:$16 sps:$4 sm:$0xff]  }
   0xa   :  { %v6867_v28 = vld [vmem:[%s9267_s1 + $0xc8] ss:$16 sps:$4 sm:$0xff]   ;;  %v6868_v29 = vld [vmem:[%s9267_s1 + $0xe4] ss:$16 sps:$4 sm:$0xff]   ;;  %v6870_v30 = vld [vmem:[%s9267_s1 + $0xec] ss:$16 sps:$4 sm:$0xff]  }
   0xb   :  { %277 = vmatpush1.bf16.msra.mxu0 %v6842_v11  ;;  %350 = vmatpush1.bf16.msra.mxu1 %v6843_v12  ;;  %v6872_v31 = vld [vmem:[%s9267_s1 + $0xe0] ss:$16 sps:$4 sm:$0xff]   ;;  %v6873_v32 = vld [vmem:[%s9267_s1 + $0xe8] ss:$16 sps:$4 sm:$0xff]   ;;  %v7507_v35 = vld [vmem:[%s9268_s2 + $0x4] ss:$16 sps:$4 sm:$0xff]  }
   0xc   :  { %278 = vmatprep.subr.bf16.mxu0 %v6844_v13  ;;  %351 = vmatprep.subr.bf16.mxu1 %v6846_v14  ;;  %v7497_v33 = vld [vmem:[%s9269_s0] sm:$0xff]  ;;  %v7502_v34 = vld [vmem:[%s9269_s0 + $0x8] sm:$0xff]  ;;  %v20_v44 = vld [vmem:[%s9269_s0 + $0x10] sm:$0xff]  ;;  %v68_v14 = vlaneseq }
   0xd   :  { %v7512_v36 = vld [vmem:[%s9268_s2 + $0xc] ss:$16 sps:$4 sm:$0xff]   ;;  %v6817_v37 = vpack.c.bf16 %v7502_v34, %v7497_v33  ;;  %v7519_v38 = vld [vmem:[%s9268_s2] ss:$16 sps:$4 sm:$0xff]   ;;  %v7524_v39 = vld [vmem:[%s9268_s2 + $0x8] ss:$16 sps:$4 sm:$0xff]  }
   0xe   :  { %v7531_v40 = vld [vmem:[%s9268_s2 + $0x24] ss:$16 sps:$4 sm:$0xff]   ;;  %v7536_v41 = vld [vmem:[%s9268_s2 + $0x2c] ss:$16 sps:$4 sm:$0xff]   ;;  %v7541_v42 = vld [vmem:[%s9268_s2 + $0x20] ss:$16 sps:$4 sm:$0xff]  }
   0xf   :  { %279 = vmatpush1.bf16.msra.mxu0 %v6848_v15  ;;  %352 = vmatpush1.bf16.msra.mxu1 %v6849_v16  ;;  %v7546_v43 = vld [vmem:[%s9268_s2 + $0x28] ss:$16 sps:$4 sm:$0xff]   ;;  %v7561_v46 = vld [vmem:[%s9268_s2 + $0x44] ss:$16 sps:$4 sm:$0xff]   ;;  %v7566_v47 = vld [vmem:[%s9268_s2 + $0x4c] ss:$16 sps:$4 sm:$0xff]  }
  0x10   :  { %280 = vmatprep.subr.bf16.mxu0 %v6850_v17  ;;  %353 = vmatprep.subr.bf16.mxu1 %v6852_v18  ;;  %v21_v45 = vld [vmem:[%s9269_s0 + $0x18] sm:$0xff]  ;;  %v7573_v49 = vld [vmem:[%s9268_s2 + $0x40] ss:$16 sps:$4 sm:$0xff]   ;;  %v7585_v51 = vld [vmem:[%s9268_s2 + $0x64] ss:$16 sps:$4 sm:$0xff]   ;;  %v7762_v15 = vshrl.u32 %v68_v14, 7 }
  0x11   :  { %v6818_v48 = vpack.c.bf16 %v21_v45, %v20_v44  ;;  %v7578_v50 = vld [vmem:[%s9268_s2 + $0x48] ss:$16 sps:$4 sm:$0xff]   ;;  %v7592_v52 = vld [vmem:[%s9268_s2 + $0x6c] ss:$16 sps:$4 sm:$0xff]   ;;  %v7597_v53 = vld [vmem:[%s9268_s2 + $0x60] ss:$16 sps:$4 sm:$0xff]  }
  0x12   :  { %v7602_v54 = vld [vmem:[%s9268_s2 + $0x68] ss:$16 sps:$4 sm:$0xff]   ;;  %v22_v55 = vld [vmem:[%s9269_s0 + $0x20] sm:$0xff]  ;;  %v7622_v58 = vld [vmem:[%s9268_s2 + $0x8c] ss:$16 sps:$4 sm:$0xff]   ;;  %9281 = vst [vmem:[#allocation3_spill] sm:$0xff] %v7762_v15 }
  0x13   :  { %281 = vmatpush1.bf16.msra.mxu0 %v6854_v19  ;;  %354 = vmatpush1.bf16.msra.mxu1 %v6855_v20  ;;  %v23_v56 = vld [vmem:[%s9269_s0 + $0x28] sm:$0xff]  ;;  %v7617_v57 = vld [vmem:[%s9268_s2 + $0x84] ss:$16 sps:$4 sm:$0xff]   ;;  %v7629_v59 = vld [vmem:[%s9268_s2 + $0x80] ss:$16 sps:$4 sm:$0xff]   ;;  %v9274_v16 = vsub.s32 2, %v7762_v15 }
  0x14   :  { %282 = vmatprep.subr.bf16.mxu0 %v6856_v21  ;;  %355 = vmatprep.subr.bf16.mxu1 %v6858_v22  ;;  %v7634_v60 = vld [vmem:[%s9268_s2 + $0x88] ss:$16 sps:$4 sm:$0xff]   ;;  %v6819_v61 = vpack.c.bf16 %v23_v56, %v22_v55  ;;  %v7639_v62 = vld [vmem:[%s9268_s2 + $0xa4] ss:$16 sps:$4 sm:$0xff]   ;;  %v7644_v63 = vld [vmem:[%s9268_s2 + $0xac] ss:$16 sps:$4 sm:$0xff]  }
  0x15   :  { %v7653_v0 = vld [vmem:[%s9268_s2 + $0xa0] ss:$16 sps:$4 sm:$0xff]   ;;  %v7658_v2 = vld [vmem:[%s9268_s2 + $0xa8] ss:$16 sps:$4 sm:$0xff]   ;;  %v7669_v5 = vld [vmem:[%s9268_s2 + $0xc4] ss:$16 sps:$4 sm:$0xff]  }
  0x16   :  { %v24_v3 = vld [vmem:[%s9269_s0 + $0x30] sm:$0xff]  ;;  %v25_v4 = vld [vmem:[%s9269_s0 + $0x38] sm:$0xff]  ;;  %v9272_v17 = vsub.s32 3, %v7762_v15  ;;  %v9275_v18 = vsub.s32 0, %v7762_v15  ;;  %v66_v19 = vld [vmem:[%s9270_s3] sm:$0xf] }
  0x17   :  { %283 = vmatpush1.bf16.msra.mxu0 %v6860_v23  ;;  %356 = vmatpush1.bf16.msra.mxu1 %v6861_v24  ;;  %v7674_v6 = vld [vmem:[%s9268_s2 + $0xcc] ss:$16 sps:$4 sm:$0xff]   ;;  %v7685_v7 = vld [vmem:[%s9268_s2 + $0xc0] ss:$16 sps:$4 sm:$0xff]   ;;  %v7690_v8 = vld [vmem:[%s9268_s2 + $0xc8] ss:$16 sps:$4 sm:$0xff]   ;;  %v6820_v9 = vpack.c.bf16 %v25_v4, %v24_v3  ;;  %v7773_v21 = vrot.slane %v66_v19, %v9274_v16 }
  0x18   :  { %284 = vmatprep.subr.bf16.mxu0 %v6862_v25  ;;  %357 = vmatprep.subr.bf16.mxu1 %v6864_v26  ;;  %v7695_v10 = vld [vmem:[%s9268_s2 + $0xe4] ss:$16 sps:$4 sm:$0xff]   ;;  %v7700_v11 = vld [vmem:[%s9268_s2 + $0xec] ss:$16 sps:$4 sm:$0xff]   ;;  %v7709_v12 = vld [vmem:[%s9268_s2 + $0xe0] ss:$16 sps:$4 sm:$0xff]   ;;  %v7781_v24 = vrot.slane %v66_v19, %v9272_v17  ;;  %v71_v25 = vrot.slane %v66_v19, %v9275_v18 }
  0x19   :  { %v7714_v13 = vld [vmem:[%s9268_s2 + $0xe8] ss:$16 sps:$4 sm:$0xff]   ;;  %v9273_v20 = vsub.s32 1, %v7762_v15 }
  0x1b   :  { %285 = vmatpush1.bf16.msra.mxu0 %v6866_v27  ;;  %358 = vmatpush1.bf16.msra.mxu1 %v6867_v28  ;;  %v75_v28 = vrot.slane %v66_v19, %v9273_v20 }
  0x1c   :  { %286 = vmatprep.subr.bf16.mxu0 %v6868_v29  ;;  %359 = vmatprep.subr.bf16.mxu1 %v6870_v30 }
  0x1f   :  { %287 = vmatpush1.bf16.msra.mxu0 %v6872_v31  ;;  %360 = vmatpush1.bf16.msra.mxu1 %v6873_v32 }
  0x20   :  { %646 = vmatprep.subr.bf16.mxu0 %v7507_v35  ;;  %687 = vmatprep.subr.bf16.mxu1 %v7512_v36 }
  0x22   :  { %305 = vmatmul.mubr.bf16.vlgmr.msra.gmra.mrb[0].mxu0 %v6817_v37  ;;  %378 = vmatmul.mubr.bf16.vlgmr.msra.gmra.mrb[0].mxu1 %v6817_v37 }
  0x23   :  { %647 = vmatpush1.bf16.msra.mxu0 %v7519_v38  ;;  %688 = vmatpush1.bf16.msra.mxu1 %v7524_v39 }
  0x24   :  { %648 = vmatprep.subr.bf16.mxu0 %v7531_v40  ;;  %689 = vmatprep.subr.bf16.mxu1 %v7536_v41 }
  0x25   :  { %314 = vmatprep.mubr.bf16.mxu0 %v9276_v1  ;;  %387 = vmatprep.mubr.bf16.mxu1 %v9276_v1 }
  0x27   :  { %649 = vmatpush1.bf16.msra.mxu0 %v7541_v42  ;;  %690 = vmatpush1.bf16.msra.mxu1 %v7546_v43 }
  0x28   :  { %650 = vmatprep.subr.bf16.mxu0 %v7561_v46  ;;  %691 = vmatprep.subr.bf16.mxu1 %v7566_v47 }
  0x2a   :  { %315 = vmatmul.mubr.bf16.gmra.mrb[4].mxu0 %v6818_v48  ;;  %388 = vmatmul.mubr.bf16.gmra.mrb[4].mxu1 %v6818_v48 }
  0x2b   :  { %651 = vmatpush1.bf16.msra.mxu0 %v7573_v49  ;;  %692 = vmatpush1.bf16.msra.mxu1 %v7578_v50 }
  0x2c   :  { %652 = vmatprep.subr.bf16.mxu0 %v7585_v51  ;;  %693 = vmatprep.subr.bf16.mxu1 %v7592_v52 }
  0x2d   :  { %324 = vmatprep.mubr.bf16.mxu0 %v9276_v1  ;;  %397 = vmatprep.mubr.bf16.mxu1 %v9276_v1 }
  0x2f   :  { %653 = vmatpush1.bf16.msra.mxu0 %v7597_v53  ;;  %694 = vmatpush1.bf16.msra.mxu1 %v7602_v54 }
  0x30   :  { %654 = vmatprep.subr.bf16.mxu0 %v7617_v57  ;;  %695 = vmatprep.subr.bf16.mxu1 %v7622_v58 }
  0x32   :  { %325 = vmatmul.mubr.bf16.gmra.mrb[8].mxu0 %v6819_v61  ;;  %398 = vmatmul.mubr.bf16.gmra.mrb[8].mxu1 %v6819_v61 }
  0x33   :  { %655 = vmatpush1.bf16.msra.mxu0 %v7629_v59  ;;  %696 = vmatpush1.bf16.msra.mxu1 %v7634_v60 }
  0x34   :  { %656 = vmatprep.subr.bf16.mxu0 %v7639_v62  ;;  %697 = vmatprep.subr.bf16.mxu1 %v7644_v63 }
  0x35   :  { %334 = vmatprep.mubr.bf16.mxu0 %v9276_v1  ;;  %407 = vmatprep.mubr.bf16.mxu1 %v9276_v1 }
  0x37   :  { %657 = vmatpush1.bf16.msra.mxu0 %v7653_v0  ;;  %698 = vmatpush1.bf16.msra.mxu1 %v7658_v2 }
  0x38   :  { %658 = vmatprep.subr.bf16.mxu0 %v7669_v5  ;;  %699 = vmatprep.subr.bf16.mxu1 %v7674_v6 }
  0x3a   :  { %335 = vmatmul.mubr.bf16.gmra.mrb[12].mxu0 %v6820_v9  ;;  %408 = vmatmul.mubr.bf16.gmra.mrb[12].mxu1 %v6820_v9 }
  0x3b   :  { %659 = vmatpush1.bf16.msra.mxu0 %v7685_v7  ;;  %700 = vmatpush1.bf16.msra.mxu1 %v7690_v8 }
  0x3c   :  { %660 = vmatprep.subr.bf16.mxu0 %v7695_v10  ;;  %701 = vmatprep.subr.bf16.mxu1 %v7700_v11 }
  0x3d   :  { %678 = vmatprep.mubr.bf16.mxu0 %v9276_v1  ;;  %719 = vmatprep.mubr.bf16.mxu1 %v9276_v1 }
  0x3f   :  { %661 = vmatpush1.bf16.msra.mxu0 %v7709_v12  ;;  %702 = vmatpush1.bf16.msra.mxu1 %v7714_v13 }
  0x40   :  { %957 = vmatprep.subr.bf16.mxu0 %v7507_v35  ;;  %998 = vmatprep.subr.bf16.mxu1 %v7512_v36 }
  0x42   :  { %679 = vmatmul.mubr.bf16.vlgmr.msra.gmra.mrb[16].mxu0 %v9276_v1  ;;  %720 = vmatmul.mubr.bf16.vlgmr.msra.gmra.mrb[16].mxu1 %v9276_v1 }
  0x43   :  { %958 = vmatpush1.bf16.msra.mxu0 %v7519_v38  ;;  %999 = vmatpush1.bf16.msra.mxu1 %v7524_v39 }
  0x44   :  { %959 = vmatprep.subr.bf16.mxu0 %v7531_v40  ;;  %1000 = vmatprep.subr.bf16.mxu1 %v7536_v41 }
  0x45   :  { %989 = vmatprep.mubr.bf16.mxu0 %v9276_v1  ;;  %1030 = vmatprep.mubr.bf16.mxu1 %v9276_v1 }
  0x47   :  { %960 = vmatpush1.bf16.msra.mxu0 %v7541_v42  ;;  %1001 = vmatpush1.bf16.msra.mxu1 %v7546_v43 }
  0x48   :  { %961 = vmatprep.subr.bf16.mxu0 %v7561_v46  ;;  %1002 = vmatprep.subr.bf16.mxu1 %v7566_v47 }
  0x4b   :  { %962 = vmatpush1.bf16.msra.mxu0 %v7573_v49  ;;  %1003 = vmatpush1.bf16.msra.mxu1 %v7578_v50 }
  0x4c   :  { %963 = vmatprep.subr.bf16.mxu0 %v7585_v51  ;;  %1004 = vmatprep.subr.bf16.mxu1 %v7592_v52 }
  0x4f   :  { %964 = vmatpush1.bf16.msra.mxu0 %v7597_v53  ;;  %1005 = vmatpush1.bf16.msra.mxu1 %v7602_v54 }
  0x50   :  { %965 = vmatprep.subr.bf16.mxu0 %v7617_v57  ;;  %1006 = vmatprep.subr.bf16.mxu1 %v7622_v58 }
  0x53   :  { %966 = vmatpush1.bf16.msra.mxu0 %v7629_v59  ;;  %1007 = vmatpush1.bf16.msra.mxu1 %v7634_v60 }
  0x54   :  { %967 = vmatprep.subr.bf16.mxu0 %v7639_v62  ;;  %1008 = vmatprep.subr.bf16.mxu1 %v7644_v63 }
  0x57   :  { %968 = vmatpush1.bf16.msra.mxu0 %v7653_v0  ;;  %1009 = vmatpush1.bf16.msra.mxu1 %v7658_v2 }
  0x58   :  { %969 = vmatprep.subr.bf16.mxu0 %v7669_v5  ;;  %1010 = vmatprep.subr.bf16.mxu1 %v7674_v6 }
  0x5b   :  { %970 = vmatpush1.bf16.msra.mxu0 %v7685_v7  ;;  %1011 = vmatpush1.bf16.msra.mxu1 %v7690_v8 }
  0x5c   :  { %971 = vmatprep.subr.bf16.mxu0 %v7695_v10  ;;  %1012 = vmatprep.subr.bf16.mxu1 %v7700_v11 }
  0x5f   :  { %972 = vmatpush1.bf16.msra.mxu0 %v7709_v12  ;;  %1013 = vmatpush1.bf16.msra.mxu1 %v7714_v13 }
  0x60   :  { %1270 = vmatprep.subr.bf16.mxu0 %v7507_v35  ;;  %1311 = vmatprep.subr.bf16.mxu1 %v7512_v36 }
  0xf5   :  { %v7775_v22 = vpop.f32.mrb[0].mxu0  ;;  %v7777_v23 = vpop.f32.mrb[0].mxu1 }
  0xf6   :  { %v308_v26 = vpop.f32.mrb[1].mxu0  ;;  %v381_v27 = vpop.f32.mrb[1].mxu1 }
  0xf7   :  { %v310_v29 = vpop.f32.mrb[2].mxu0  ;;  %v383_v30 = vpop.f32.mrb[2].mxu1 }
  0xf8   :  { %v7787_v31 = vadd.f32 %v310_v29, %v71_v25  ;;  %v312_v32 = vpop.f32.mrb[3].mxu0  ;;  %v7790_v37 = vadd.f32 %v383_v30, %v7773_v21  ;;  %v385_v44 = vpop.f32.mrb[3].mxu1 }
  0xf9   :  { %v7792_v45 = vadd.f32 %v312_v32, %v75_v28  ;;  %v7795_v48 = vadd.f32 %v385_v44, %v7781_v24 }
  0xfd   :  { %v316_v55 = vpop.f32.mrb[4].mxu0  ;;  %v389_v56 = vpop.f32.mrb[4].mxu1 }
  0xfe   :  { %v7797_v61 = vadd.f32 %v316_v55, %v71_v25  ;;  %v318_v3 = vpop.f32.mrb[5].mxu0  ;;  %v7800_v4 = vadd.f32 %v389_v56, %v7773_v21  ;;  %v391_v9 = vpop.f32.mrb[5].mxu1 }
  0xff   :  { %v7802_v14 = vadd.f32 %v318_v3, %v75_v28  ;;  %v320_v19 = vpop.f32.mrb[6].mxu0  ;;  %v7805_v29 = vadd.f32 %v391_v9, %v7781_v24  ;;  %v393_v30 = vpop.f32.mrb[6].mxu1 }
 0x100   :  { %9282 = vst [vmem:[#allocation4_spill] sm:$0xff] %v7800_v4  ;;  %v7807_v32 = vadd.f32 %v320_v19, %v71_v25  ;;  %v322_v44 = vpop.f32.mrb[7].mxu0  ;;  %v7810_v17 = vadd.f32 %v393_v30, %v7773_v21  ;;  %v395_v55 = vpop.f32.mrb[7].mxu1 }
 0x101   :  { %9283 = vst [vmem:[#allocation5_spill] sm:$0xff] %v7802_v14  ;;  %9284 = vst [vmem:[#allocation6_spill] sm:$0xff] %v7805_v29  ;;  %v7812_v20 = vadd.f32 %v322_v44, %v75_v28  ;;  %v7815_v56 = vadd.f32 %v395_v55, %v7781_v24 }
 0x102   :  { %9285 = vst [vmem:[#allocation7_spill] sm:$0xff] %v7807_v32  ;;  %9286 = vst [vmem:[#allocation8_spill] sm:$0xff] %v7810_v17 }
 0x103   :  { %9287 = vst [vmem:[#allocation9_spill] sm:$0xff] %v7812_v20  ;;  %9288 = vst [vmem:[#allocation10_spill] sm:$0xff] %v7815_v56 }
 0x105   :  { %v326_v16 = vpop.f32.mrb[8].mxu0  ;;  %v399_v3 = vpop.f32.mrb[8].mxu1 }
 0x106   :  { %v7817_v18 = vadd.f32 %v326_v16, %v71_v25  ;;  %v328_v1 = vpop.f32.mrb[9].mxu0  ;;  %v7820_v9 = vadd.f32 %v399_v3, %v7773_v21  ;;  %v401_v19 = vpop.f32.mrb[9].mxu1 }
 0x107   :  { %v7822_v15 = vadd.f32 %v328_v1, %v75_v28  ;;  %v330_v32 = vpop.f32.mrb[10].mxu0  ;;  %v7825_v30 = vadd.f32 %v401_v19, %v7781_v24  ;;  %v403_v44 = vpop.f32.mrb[10].mxu1 }
 0x108   :  { %9289 = vst [vmem:[#allocation11_spill] sm:$0xff] %v7817_v18  ;;  %9290 = vst [vmem:[#allocation12_spill] sm:$0xff] %v7820_v9  ;;  %v7827_v20 = vadd.f32 %v330_v32, %v71_v25  ;;  %v332_v55 = vpop.f32.mrb[11].mxu0  ;;  %v7830_v56 = vadd.f32 %v403_v44, %v7773_v21  ;;  %v405_v16 = vpop.f32.mrb[11].mxu1 }
 0x109   :  { %9291 = vst [vmem:[#allocation13_spill] sm:$0xff] %v7822_v15  ;;  %9292 = vst [vmem:[#allocation14_spill] sm:$0xff] %v7825_v30  ;;  %v7832_v18 = vadd.f32 %v332_v55, %v75_v28  ;;  %v7835_v3 = vadd.f32 %v405_v16, %v7781_v24 }
 0x10a   :  { %9293 = vst [vmem:[#allocation15_spill] sm:$0xff] %v7827_v20  ;;  %9294 = vst [vmem:[#allocation16_spill] sm:$0xff] %v7830_v56 }
 0x10b   :  { %9295 = vst [vmem:[#allocation17_spill] sm:$0xff] %v7832_v18  ;;  %9296 = vst [vmem:[#allocation18_spill] sm:$0xff] %v7835_v3 }
 0x10d   :  { %v336_v9 = vpop.f32.mrb[12].mxu0  ;;  %v409_v1 = vpop.f32.mrb[12].mxu1 }
 0x10e   :  { %v7837_v15 = vadd.f32 %v336_v9, %v71_v25  ;;  %v338_v17 = vpop.f32.mrb[13].mxu0  ;;  %v7840_v19 = vadd.f32 %v409_v1, %v7773_v21  ;;  %v411_v32 = vpop.f32.mrb[13].mxu1 }
 0x10f   :  { %v7842_v20 = vadd.f32 %v338_v17, %v75_v28  ;;  %v340_v30 = vpop.f32.mrb[14].mxu0  ;;  %v7845_v44 = vadd.f32 %v411_v32, %v7781_v24  ;;  %v413_v55 = vpop.f32.mrb[14].mxu1  ;;  %v307_v17 = vadd.f32 %v7775_v22, %v71_v25  ;;  %v309_v32 = vadd.f32 %v308_v26, %v75_v28 }
 0x110   :  { %9297 = vst [vmem:[#allocation19_spill] sm:$0xff] %v7837_v15  ;;  %9298 = vst [vmem:[#allocation20_spill] sm:$0xff] %v7840_v19  ;;  %v7847_v18 = vadd.f32 %v340_v30, %v71_v25  ;;  %v342_v16 = vpop.f32.mrb[15].mxu0  ;;  %v7850_v3 = vadd.f32 %v413_v55, %v7773_v21  ;;  %v415_v9 = vpop.f32.mrb[15].mxu1 }
 0x111   :  { %9299 = vst [vmem:[#allocation21_spill] sm:$0xff] %v7842_v20  ;;  %9300 = vst [vmem:[#allocation22_spill] sm:$0xff] %v7845_v44  ;;  %v7852_v15 = vadd.f32 %v342_v16, %v75_v28  ;;  %v7855_v1 = vadd.f32 %v415_v9, %v7781_v24  ;;  %v380_v20 = vadd.f32 %v7777_v23, %v7773_v21 }
 0x112   :  { %9301 = vst [vmem:[#allocation23_spill] sm:$0xff] %v7847_v18  ;;  %9302 = vst [vmem:[#allocation24_spill] sm:$0xff] %v7850_v3  ;;  %v382_v44 = vadd.f32 %v381_v27, %v7781_v24 }
 0x113   :  { %9303 = vst [vmem:[#allocation25_spill] sm:$0xff] %v7852_v15  ;;  %9304 = vst [vmem:[#allocation26_spill] sm:$0xff] %v7855_v1 }
 0x115   :  { %v680_v30 = vpop.f32.mrb[16].mxu0  ;;  %v721_v18 = vpop.f32.mrb[16].mxu1 }
 0x116   :  { %v728_v19 = vadd.f32 %v680_v30, %v307_v17  ;;  %v730_v56 = vadd.f32 %v721_v18, %v380_v20  ;;  %v682_v55 = vpop.f32.mrb[17].mxu0  ;;  %v723_v3 = vpop.f32.mrb[17].mxu1  ;;  %v9305_v17 = vmov 0  }
 0x117   :  { %v729_v29 = vadd.f32 %v682_v55, %v309_v32  ;;  %v731_v16 = vadd.f32 %v723_v3, %v382_v44  ;;  %v684_v15 = vpop.f32.mrb[18].mxu0  ;;  %v725_v14 = vpop.f32.mrb[18].mxu1 }
 0x118   :  { %v5936_v9 = vmul.f32 -1.442695, %v728_v19  ;;  %v685_v1 = vpop.f32.mrb[19].mxu0  ;;  %v726_v4 = vpop.f32.mrb[19].mxu1 }
 0x119   :  { %v5937_v22 = vmul.f32 -1.442695, %v729_v29  ;;  %v5938_v21 = vmul.f32 -1.442695, %v731_v16 }
 0x11a   :  { %7114 = vpow2.f32 %v5936_v9 }
 0x11b   :  { %7116 = vpow2.f32 %v5937_v22 }
 0x11c   :  { %7118 = vpow2.f32 %v5938_v21 }
 0x11d   :  { %7120 = vtanh.f32 %v730_v56 }
 0x124   :  { %v7115_v23 = vpop.eup %7114 }
 0x125   :  { %v7117_v25 = vpop.eup %7116  ;;  %v735_v24 = vadd.f32 1.0, %v7115_v23 }
 0x126   :  { %v741_v26 = vadd.f32 1.0, %v7117_v25  ;;  %v7119_v18 = vpop.eup %7118 }
 0x127   :  { %7122 = vrcp.f32 %v735_v24  ;;  %v7121_v20 = vpop.eup %7120  ;;  %v748_v14 = vadd.f32 1.0, %v7119_v18 }
 0x128   :  { %7124 = vrcp.f32 %v741_v26 }
 0x129   :  { %7126 = vrcp.f32 %v748_v14 }
 0x131   :  { %v7123_v27 = vpop.eup %7122 }
 0x132   :  { %v7125_v15 = vpop.eup %7124  ;;  %v752_v28 = vmul.f32 %v7123_v27, %v7121_v20 }
 0x133   :  { %v751_v3 = vmul.f32 0.0, %v7125_v15  ;;  %v7127_v29 = vpop.eup %7126 }
 0x135   :  { %v7861_v4 = vadd.f32 %v752_v28, %v751_v3 }
 0x137   :  { %7128 = vtanh.f32 %v7861_v4 }
 0x141   :  { %v7129_v19 = vpop.eup %7128 }
 0x142   :  { %v755_v44 = vmul.f32 %v7129_v19, %v7127_v29 }
 0x144   :  { %v757_v56 = vadd.f32 %v755_v44, %v7497_v33  ;;  %v764_v1 = vpack.c.bf16 %v755_v44, %v755_v44 }
 0x146   :  { %758 = vst [vmem:[%s9271_s4] sm:$0xff] %v757_v56  ;;  %990 = vmatmul.mubr.bf16.vlgmr.msra.gmra.mrb[20].mxu0 %v764_v1  ;;  %1031 = vmatmul.mubr.bf16.vlgmr.msra.gmra.mrb[20].mxu1 %v764_v1 }
 0x147   :  { %1271 = vmatpush1.bf16.msra.mxu0 %v7519_v38  ;;  %1312 = vmatpush1.bf16.msra.mxu1 %v7524_v39 }
 0x148   :  { %1272 = vmatprep.subr.bf16.mxu0 %v7531_v40  ;;  %1313 = vmatprep.subr.bf16.mxu1 %v7536_v41 }
 0x149   :  { %1302 = vmatprep.mubr.bf16.mxu0 %v9305_v17  ;;  %1343 = vmatprep.mubr.bf16.mxu1 %v9305_v17 }
 0x14b   :  { %1273 = vmatpush1.bf16.msra.mxu0 %v7541_v42  ;;  %1314 = vmatpush1.bf16.msra.mxu1 %v7546_v43 }
 0x14c   :  { %1274 = vmatprep.subr.bf16.mxu0 %v7561_v46  ;;  %1315 = vmatprep.subr.bf16.mxu1 %v7566_v47 }
 0x14f   :  { %1275 = vmatpush1.bf16.msra.mxu0 %v7573_v49  ;;  %1316 = vmatpush1.bf16.msra.mxu1 %v7578_v50 }
 0x150   :  { %1276 = vmatprep.subr.bf16.mxu0 %v7585_v51  ;;  %1317 = vmatprep.subr.bf16.mxu1 %v7592_v52 }
 0x153   :  { %1277 = vmatpush1.bf16.msra.mxu0 %v7597_v53  ;;  %1318 = vmatpush1.bf16.msra.mxu1 %v7602_v54 }
 0x154   :  { %1278 = vmatprep.subr.bf16.mxu0 %v7617_v57  ;;  %1319 = vmatprep.subr.bf16.mxu1 %v7622_v58 }
 0x157   :  { %1279 = vmatpush1.bf16.msra.mxu0 %v7629_v59  ;;  %1320 = vmatpush1.bf16.msra.mxu1 %v7634_v60 }
 0x158   :  { %1280 = vmatprep.subr.bf16.mxu0 %v7639_v62  ;;  %1321 = vmatprep.subr.bf16.mxu1 %v7644_v63 }
 0x15b   :  { %1281 = vmatpush1.bf16.msra.mxu0 %v7653_v0  ;;  %1322 = vmatpush1.bf16.msra.mxu1 %v7658_v2 }
 0x15c   :  { %1282 = vmatprep.subr.bf16.mxu0 %v7669_v5  ;;  %1323 = vmatprep.subr.bf16.mxu1 %v7674_v6 }
 0x15f   :  { %1283 = vmatpush1.bf16.msra.mxu0 %v7685_v7  ;;  %1324 = vmatpush1.bf16.msra.mxu1 %v7690_v8 }
 0x160   :  { %1284 = vmatprep.subr.bf16.mxu0 %v7695_v10  ;;  %1325 = vmatprep.subr.bf16.mxu1 %v7700_v11 }
 0x163   :  { %1285 = vmatpush1.bf16.msra.mxu0 %v7709_v12  ;;  %1326 = vmatpush1.bf16.msra.mxu1 %v7714_v13 }
 0x164   :  { %1583 = vmatprep.subr.bf16.mxu0 %v7507_v35  ;;  %1624 = vmatprep.subr.bf16.mxu1 %v7512_v36 }
 0x219   :  { %v991_v33 = vpop.f32.mrb[20].mxu0  ;;  %v1032_v32 = vpop.f32.mrb[20].mxu1 }
 0x21a   :  { %v1039_v30 = vadd.f32 %v991_v33, %v7787_v31  ;;  %v1041_v55 = vadd.f32 %v1032_v32, %v7790_v37  ;;  %v993_v16 = vpop.f32.mrb[21].mxu0  ;;  %v1034_v9 = vpop.f32.mrb[21].mxu1 }
 0x21b   :  { %v1040_v22 = vadd.f32 %v993_v16, %v7792_v45  ;;  %v1042_v21 = vadd.f32 %v1034_v9, %v7795_v48  ;;  %v995_v23 = vpop.f32.mrb[22].mxu0  ;;  %v1036_v25 = vpop.f32.mrb[22].mxu1  ;;  %v7965_v9 = vld [vmem:[%s9268_s2 + $0x4] ss:$16 sps:$4 sm:$0xff]  }
 0x21c   :  { %v5971_v24 = vmul.f32 -1.442695, %v1039_v30  ;;  %v996_v26 = vpop.f32.mrb[23].mxu0  ;;  %v1037_v18 = vpop.f32.mrb[23].mxu1  ;;  %v7980_v23 = vld [vmem:[%s9268_s2 + $0x8] ss:$16 sps:$4 sm:$0xff]  }
 0x21d   :  { %v5972_v35 = vmul.f32 -1.442695, %v1040_v22  ;;  %v5973_v36 = vmul.f32 -1.442695, %v1042_v21  ;;  %v7970_v22 = vld [vmem:[%s9268_s2 + $0xc] ss:$16 sps:$4 sm:$0xff]  }
 0x21e   :  { %7130 = vpow2.f32 %v5971_v24  ;;  %v7975_v21 = vld [vmem:[%s9268_s2] ss:$16 sps:$4 sm:$0xff]   ;;  %v7989_v25 = vld [vmem:[%s9268_s2 + $0x24] ss:$16 sps:$4 sm:$0xff]   ;;  %v7994_v24 = vld [vmem:[%s9268_s2 + $0x2c] ss:$16 sps:$4 sm:$0xff]  }
 0x21f   :  { %7132 = vpow2.f32 %v5972_v35  ;;  %v7999_v26 = vld [vmem:[%s9268_s2 + $0x20] ss:$16 sps:$4 sm:$0xff]   ;;  %v8004_v18 = vld [vmem:[%s9268_s2 + $0x28] ss:$16 sps:$4 sm:$0xff]   ;;  %v8013_v35 = vld [vmem:[%s9268_s2 + $0x44] ss:$16 sps:$4 sm:$0xff]  }
 0x220   :  { %7134 = vpow2.f32 %v5973_v36  ;;  %v8018_v36 = vld [vmem:[%s9268_s2 + $0x4c] ss:$16 sps:$4 sm:$0xff]  }
 0x221   :  { %7136 = vtanh.f32 %v1041_v55 }
 0x228   :  { %v7131_v20 = vpop.eup %7130 }
 0x229   :  { %v7133_v27 = vpop.eup %7132  ;;  %v1046_v31 = vadd.f32 1.0, %v7131_v20  ;;  %v8023_v20 = vld [vmem:[%s9268_s2 + $0x40] ss:$16 sps:$4 sm:$0xff]  }
 0x22a   :  { %v1052_v37 = vadd.f32 1.0, %v7133_v27  ;;  %v7135_v45 = vpop.eup %7134  ;;  %v8028_v27 = vld [vmem:[%s9268_s2 + $0x48] ss:$16 sps:$4 sm:$0xff]  }
 0x22b   :  { %7138 = vrcp.f32 %v1046_v31  ;;  %v7137_v15 = vpop.eup %7136  ;;  %v1059_v3 = vadd.f32 1.0, %v7135_v45  ;;  %v8037_v31 = vld [vmem:[%s9268_s2 + $0x64] ss:$16 sps:$4 sm:$0xff]   ;;  %v8047_v45 = vld [vmem:[%s9268_s2 + $0x60] ss:$16 sps:$4 sm:$0xff]  }
 0x22c   :  { %7140 = vrcp.f32 %v1052_v37  ;;  %v8042_v37 = vld [vmem:[%s9268_s2 + $0x6c] ss:$16 sps:$4 sm:$0xff]  }
 0x22d   :  { %7142 = vrcp.f32 %v1059_v3  ;;  %v8076_v3 = vld [vmem:[%s9268_s2 + $0x88] ss:$16 sps:$4 sm:$0xff]  }
 0x235   :  { %v7139_v48 = vpop.eup %7138 }
 0x236   :  { %v7141_v28 = vpop.eup %7140  ;;  %v1063_v14 = vmul.f32 %v7139_v48, %v7137_v15  ;;  %v8052_v15 = vld [vmem:[%s9268_s2 + $0x68] ss:$16 sps:$4 sm:$0xff]   ;;  %v8061_v48 = vld [vmem:[%s9268_s2 + $0x84] ss:$16 sps:$4 sm:$0xff]  }
 0x237   :  { %v1062_v29 = vmul.f32 %v7141_v28, %v7861_v4  ;;  %v7143_v44 = vpop.eup %7142  ;;  %v6011_v4 = vld [vmem:[%s9269_s0 + $0x10] sm:$0xff]  ;;  %v8066_v28 = vld [vmem:[%s9268_s2 + $0x8c] ss:$16 sps:$4 sm:$0xff]  }
 0x239   :  { %v7907_v19 = vadd.f32 %v1063_v14, %v1062_v29  ;;  %v8071_v14 = vld [vmem:[%s9268_s2 + $0x80] ss:$16 sps:$4 sm:$0xff]   ;;  %v8083_v29 = vld [vmem:[%s9268_s2 + $0xa4] ss:$16 sps:$4 sm:$0xff]  }
 0x23b   :  { %7144 = vtanh.f32 %v7907_v19 }
 0x245   :  { %v7145_v56 = vpop.eup %7144 }
 0x246   :  { %v1066_v1 = vmul.f32 %v7145_v56, %v7143_v44  ;;  %v8095_v44 = vld [vmem:[%s9268_s2 + $0xa8] ss:$16 sps:$4 sm:$0xff]   ;;  %v8100_v56 = vld [vmem:[%s9268_s2 + $0xac] ss:$16 sps:$4 sm:$0xff]  }
 0x248   :  { %v1069_v33 = vadd.f32 %v1066_v1, %v7502_v34  ;;  %v1077_v32 = vpack.c.bf16 %v1066_v1, %v1066_v1  ;;  %v8106_v1 = vld [vmem:[%s9268_s2 + $0xc4] ss:$16 sps:$4 sm:$0xff]  }
 0x24a   :  { %5975 = vst [vmem:[%s9271_s4 + $0x8] sm:$0xff] %v1069_v33  ;;  %1303 = vmatmul.mubr.bf16.vlgmr.msra.gmra.mrb[24].mxu0 %v1077_v32  ;;  %1344 = vmatmul.mubr.bf16.vlgmr.msra.gmra.mrb[24].mxu1 %v1077_v32  ;;  %v8111_v33 = vld [vmem:[%s9268_s2 + $0xcc] ss:$16 sps:$4 sm:$0xff]   ;;  %v8119_v32 = vld [vmem:[%s9268_s2 + $0xc0] ss:$16 sps:$4 sm:$0xff]  }
 0x24b   :  { %1584 = vmatpush1.bf16.msra.mxu0 %v7519_v38  ;;  %1625 = vmatpush1.bf16.msra.mxu1 %v7524_v39 }
 0x24c   :  { %1585 = vmatprep.subr.bf16.mxu0 %v7531_v40  ;;  %1626 = vmatprep.subr.bf16.mxu1 %v7536_v41  ;;  %v9306_v40 = vld [vmem:[#allocation4_spill] sm:$0xff] }
 0x24d   :  { %1615 = vmatprep.mubr.bf16.mxu0 %v9305_v17  ;;  %1656 = vmatprep.mubr.bf16.mxu1 %v9305_v17 }
 0x24f   :  { %1586 = vmatpush1.bf16.msra.mxu0 %v7541_v42  ;;  %1627 = vmatpush1.bf16.msra.mxu1 %v7546_v43 }
 0x250   :  { %1587 = vmatprep.subr.bf16.mxu0 %v7561_v46  ;;  %1628 = vmatprep.subr.bf16.mxu1 %v7566_v47  ;;  %v9307_v46 = vld [vmem:[#allocation5_spill] sm:$0xff] }
 0x253   :  { %1588 = vmatpush1.bf16.msra.mxu0 %v7573_v49  ;;  %1629 = vmatpush1.bf16.msra.mxu1 %v7578_v50  ;;  %v9308_v49 = vld [vmem:[#allocation6_spill] sm:$0xff] }
 0x254   :  { %1589 = vmatprep.subr.bf16.mxu0 %v7585_v51  ;;  %1630 = vmatprep.subr.bf16.mxu1 %v7592_v52 }
 0x257   :  { %1590 = vmatpush1.bf16.msra.mxu0 %v7597_v53  ;;  %1631 = vmatpush1.bf16.msra.mxu1 %v7602_v54 }
 0x258   :  { %1591 = vmatprep.subr.bf16.mxu0 %v7617_v57  ;;  %1632 = vmatprep.subr.bf16.mxu1 %v7622_v58 }
 0x25b   :  { %1592 = vmatpush1.bf16.msra.mxu0 %v7629_v59  ;;  %1633 = vmatpush1.bf16.msra.mxu1 %v7634_v60 }
 0x25c   :  { %1593 = vmatprep.subr.bf16.mxu0 %v7639_v62  ;;  %1634 = vmatprep.subr.bf16.mxu1 %v7644_v63 }
 0x25f   :  { %1594 = vmatpush1.bf16.msra.mxu0 %v7653_v0  ;;  %1635 = vmatpush1.bf16.msra.mxu1 %v7658_v2 }
 0x260   :  { %1595 = vmatprep.subr.bf16.mxu0 %v7669_v5  ;;  %1636 = vmatprep.subr.bf16.mxu1 %v7674_v6 }
 0x263   :  { %1596 = vmatpush1.bf16.msra.mxu0 %v7685_v7  ;;  %1637 = vmatpush1.bf16.msra.mxu1 %v7690_v8 }
 0x264   :  { %1597 = vmatprep.subr.bf16.mxu0 %v7695_v10  ;;  %1638 = vmatprep.subr.bf16.mxu1 %v7700_v11 }
 0x267   :  { %1598 = vmatpush1.bf16.msra.mxu0 %v7709_v12  ;;  %1639 = vmatpush1.bf16.msra.mxu1 %v7714_v13 }
 0x268   :  { %1896 = vmatprep.subr.bf16.mxu0 %v7965_v9  ;;  %1937 = vmatprep.subr.bf16.mxu1 %v7970_v22 }
 0x31d   :  { %v1304_v34 = vpop.f32.mrb[24].mxu0  ;;  %v1345_v38 = vpop.f32.mrb[24].mxu1 }
 0x31e   :  { %v1352_v39 = vadd.f32 %v1304_v34, %v7797_v61  ;;  %v1354_v41 = vadd.f32 %v1345_v38, %v9306_v40  ;;  %v1306_v42 = vpop.f32.mrb[25].mxu0  ;;  %v1347_v43 = vpop.f32.mrb[25].mxu1  ;;  %v8124_v34 = vld [vmem:[%s9268_s2 + $0xc8] ss:$16 sps:$4 sm:$0xff]   ;;  %v8131_v38 = vld [vmem:[%s9268_s2 + $0xe4] ss:$16 sps:$4 sm:$0xff]  }
 0x31f   :  { %v1353_v47 = vadd.f32 %v1306_v42, %v9307_v46  ;;  %v1355_v50 = vadd.f32 %v1347_v43, %v9308_v49  ;;  %v1308_v51 = vpop.f32.mrb[26].mxu0  ;;  %v1349_v52 = vpop.f32.mrb[26].mxu1  ;;  %v8143_v40 = vld [vmem:[%s9268_s2 + $0xe0] ss:$16 sps:$4 sm:$0xff]   ;;  %v9310_v49 = vld [vmem:[#allocation8_spill] sm:$0xff] }
 0x320   :  { %v6008_v53 = vmul.f32 -1.442695, %v1352_v39  ;;  %v1309_v54 = vpop.f32.mrb[27].mxu0  ;;  %v1350_v57 = vpop.f32.mrb[27].mxu1  ;;  %v8136_v39 = vld [vmem:[%s9268_s2 + $0xec] ss:$16 sps:$4 sm:$0xff]  }
 0x321   :  { %v6009_v58 = vmul.f32 -1.442695, %v1353_v47  ;;  %v6010_v59 = vmul.f32 -1.442695, %v1355_v50  ;;  %v9309_v46 = vld [vmem:[#allocation7_spill] sm:$0xff]  ;;  %v9312_v57 = vld [vmem:[#allocation10_spill] sm:$0xff] }
 0x322   :  { %7146 = vpow2.f32 %v6008_v53  ;;  %v9311_v53 = vld [vmem:[#allocation9_spill] sm:$0xff] }
 0x323   :  { %7148 = vpow2.f32 %v6009_v58 }
 0x324   :  { %7150 = vpow2.f32 %v6010_v59 }
 0x325   :  { %7152 = vtanh.f32 %v1354_v41  ;;  %v8148_v41 = vld [vmem:[%s9268_s2 + $0xe8] ss:$16 sps:$4 sm:$0xff]  }
 0x32c   :  { %v7147_v60 = vpop.eup %7146 }
 0x32d   :  { %v7149_v62 = vpop.eup %7148  ;;  %v1359_v63 = vadd.f32 1.0, %v7147_v60 }
 0x32e   :  { %v1365_v0 = vadd.f32 1.0, %v7149_v62  ;;  %v7151_v2 = vpop.eup %7150 }
 0x32f   :  { %7154 = vrcp.f32 %v1359_v63  ;;  %v7153_v5 = vpop.eup %7152  ;;  %v1372_v10 = vadd.f32 1.0, %v7151_v2 }
 0x330   :  { %7156 = vrcp.f32 %v1365_v0 }
 0x331   :  { %7158 = vrcp.f32 %v1372_v10 }
 0x339   :  { %v7155_v6 = vpop.eup %7154 }
 0x33a   :  { %v7157_v7 = vpop.eup %7156  ;;  %v1376_v8 = vmul.f32 %v7155_v6, %v7153_v5 }
 0x33b   :  { %v1375_v11 = vmul.f32 %v7157_v7, %v7907_v19  ;;  %v7159_v13 = vpop.eup %7158  ;;  %v8090_v19 = vld [vmem:[%s9268_s2 + $0xa0] ss:$16 sps:$4 sm:$0xff]  }
 0x33d   :  { %v7951_v12 = vadd.f32 %v1376_v8, %v1375_v11 }
 0x33f   :  { %7160 = vtanh.f32 %v7951_v12 }
 0x349   :  { %v7161_v61 = vpop.eup %7160 }
 0x34a   :  { %v1379_v30 = vmul.f32 %v7161_v61, %v7159_v13 }
 0x34c   :  { %v1382_v55 = vadd.f32 %v6011_v4, %v1379_v30  ;;  %v1390_v16 = vpack.c.bf16 %v1379_v30, %v1379_v30 }
 0x34e   :  { %6012 = vst [vmem:[%s9271_s4 + $0x10] sm:$0xff] %v1382_v55  ;;  %1616 = vmatmul.mubr.bf16.vlgmr.msra.gmra.mrb[28].mxu0 %v1390_v16  ;;  %1657 = vmatmul.mubr.bf16.vlgmr.msra.gmra.mrb[28].mxu1 %v1390_v16 }
 0x34f   :  { %1928 = vmatprep.mubr.bf16.mxu0 %v9305_v17  ;;  %1969 = vmatprep.mubr.bf16.mxu1 %v9305_v17 }
 0x350   :  { %1897 = vmatpush1.bf16.msra.mxu0 %v7975_v21  ;;  %1938 = vmatpush1.bf16.msra.mxu1 %v7980_v23 }
 0x351   :  { %1898 = vmatprep.subr.bf16.mxu0 %v7989_v25  ;;  %1939 = vmatprep.subr.bf16.mxu1 %v7994_v24 }
 0x354   :  { %1899 = vmatpush1.bf16.msra.mxu0 %v7999_v26  ;;  %1940 = vmatpush1.bf16.msra.mxu1 %v8004_v18 }
 0x355   :  { %1900 = vmatprep.subr.bf16.mxu0 %v8013_v35  ;;  %1941 = vmatprep.subr.bf16.mxu1 %v8018_v36 }
 0x358   :  { %1901 = vmatpush1.bf16.msra.mxu0 %v8023_v20  ;;  %1942 = vmatpush1.bf16.msra.mxu1 %v8028_v27 }
 0x359   :  { %1902 = vmatprep.subr.bf16.mxu0 %v8037_v31  ;;  %1943 = vmatprep.subr.bf16.mxu1 %v8042_v37 }
 0x35c   :  { %1903 = vmatpush1.bf16.msra.mxu0 %v8047_v45  ;;  %1944 = vmatpush1.bf16.msra.mxu1 %v8052_v15 }
 0x35d   :  { %1904 = vmatprep.subr.bf16.mxu0 %v8061_v48  ;;  %1945 = vmatprep.subr.bf16.mxu1 %v8066_v28 }
 0x360   :  { %1905 = vmatpush1.bf16.msra.mxu0 %v8071_v14  ;;  %1946 = vmatpush1.bf16.msra.mxu1 %v8076_v3 }
 0x361   :  { %1906 = vmatprep.subr.bf16.mxu0 %v8083_v29  ;;  %1947 = vmatprep.subr.bf16.mxu1 %v8100_v56 }
 0x364   :  { %1907 = vmatpush1.bf16.msra.mxu0 %v8090_v19  ;;  %1948 = vmatpush1.bf16.msra.mxu1 %v8095_v44 }
 0x365   :  { %1908 = vmatprep.subr.bf16.mxu0 %v8106_v1  ;;  %1949 = vmatprep.subr.bf16.mxu1 %v8111_v33 }
 0x368   :  { %1909 = vmatpush1.bf16.msra.mxu0 %v8119_v32  ;;  %1950 = vmatpush1.bf16.msra.mxu1 %v8124_v34 }
 0x369   :  { %1910 = vmatprep.subr.bf16.mxu0 %v8131_v38  ;;  %1951 = vmatprep.subr.bf16.mxu1 %v8136_v39 }
 0x36c   :  { %1911 = vmatpush1.bf16.msra.mxu0 %v8143_v40  ;;  %1952 = vmatpush1.bf16.msra.mxu1 %v8148_v41 }
 0x36d   :  { %2209 = vmatprep.subr.bf16.mxu0 %v7965_v9  ;;  %2250 = vmatprep.subr.bf16.mxu1 %v7970_v22 }
 0x421   :  { %v1617_v42 = vpop.f32.mrb[28].mxu0  ;;  %v1658_v43 = vpop.f32.mrb[28].mxu1 }
 0x422   :  { %v1665_v47 = vadd.f32 %v1617_v42, %v9309_v46  ;;  %v1667_v50 = vadd.f32 %v1658_v43, %v9310_v49  ;;  %v1619_v51 = vpop.f32.mrb[29].mxu0  ;;  %v1660_v52 = vpop.f32.mrb[29].mxu1 }
 0x423   :  { %v1666_v54 = vadd.f32 %v1619_v51, %v9311_v53  ;;  %v1668_v58 = vadd.f32 %v1660_v52, %v9312_v57  ;;  %v1621_v59 = vpop.f32.mrb[30].mxu0  ;;  %v1662_v60 = vpop.f32.mrb[30].mxu1  ;;  %v9313_v53 = vld [vmem:[#allocation11_spill] sm:$0xff]  ;;  %v9314_v57 = vld [vmem:[#allocation12_spill] sm:$0xff] }
 0x424   :  { %v6045_v62 = vmul.f32 -1.442695, %v1665_v47  ;;  %v1622_v63 = vpop.f32.mrb[31].mxu0  ;;  %v1663_v0 = vpop.f32.mrb[31].mxu1  ;;  %v6048_v47 = vld [vmem:[%s9269_s0 + $0x18] sm:$0xff] }
 0x425   :  { %v6046_v2 = vmul.f32 -1.442695, %v1666_v54  ;;  %v6047_v5 = vmul.f32 -1.442695, %v1668_v58  ;;  %v9316_v0 = vld [vmem:[#allocation14_spill] sm:$0xff] }
 0x426   :  { %7162 = vpow2.f32 %v6045_v62  ;;  %v9315_v62 = vld [vmem:[#allocation13_spill] sm:$0xff] }
 0x427   :  { %7164 = vpow2.f32 %v6046_v2 }
 0x428   :  { %7166 = vpow2.f32 %v6047_v5 }
 0x429   :  { %7168 = vtanh.f32 %v1667_v50 }
 0x430   :  { %v7163_v6 = vpop.eup %7162 }
 0x431   :  { %v7165_v7 = vpop.eup %7164  ;;  %v1672_v8 = vadd.f32 1.0, %v7163_v6 }
 0x432   :  { %v1678_v10 = vadd.f32 1.0, %v7165_v7  ;;  %v7167_v11 = vpop.eup %7166 }
 0x433   :  { %7170 = vrcp.f32 %v1672_v8  ;;  %v7169_v13 = vpop.eup %7168  ;;  %v1685_v55 = vadd.f32 1.0, %v7167_v11 }
 0x434   :  { %7172 = vrcp.f32 %v1678_v10 }
 0x435   :  { %7174 = vrcp.f32 %v1685_v55 }
 0x43d   :  { %v7171_v61 = vpop.eup %7170 }
 0x43e   :  { %v7173_v4 = vpop.eup %7172  ;;  %v1689_v30 = vmul.f32 %v7171_v61, %v7169_v13 }
 0x43f   :  { %v1688_v16 = vmul.f32 %v7173_v4, %v7951_v12  ;;  %v7175_v43 = vpop.eup %7174 }
 0x441   :  { %v8161_v42 = vadd.f32 %v1689_v30, %v1688_v16 }
 0x443   :  { %7176 = vtanh.f32 %v8161_v42 }
 0x44d   :  { %v7177_v46 = vpop.eup %7176 }
 0x44e   :  { %v1692_v49 = vmul.f32 %v7177_v46, %v7175_v43 }
 0x450   :  { %v8167_v50 = vadd.f32 %v6048_v47, %v1692_v49  ;;  %v1703_v51 = vpack.c.bf16 %v1692_v49, %v1692_v49 }
 0x452   :  { %6049 = vst [vmem:[%s9271_s4 + $0x18] sm:$0xff] %v8167_v50  ;;  %1929 = vmatmul.mubr.bf16.vlgmr.msra.gmra.mrb[32].mxu0 %v1703_v51  ;;  %1970 = vmatmul.mubr.bf16.vlgmr.msra.gmra.mrb[32].mxu1 %v1703_v51 }
 0x453   :  { %2210 = vmatpush1.bf16.msra.mxu0 %v7975_v21  ;;  %2251 = vmatpush1.bf16.msra.mxu1 %v7980_v23 }
 0x454   :  { %2211 = vmatprep.subr.bf16.mxu0 %v7989_v25  ;;  %2252 = vmatprep.subr.bf16.mxu1 %v7994_v24 }
 0x455   :  { %2241 = vmatprep.mubr.bf16.mxu0 %v9305_v17  ;;  %2282 = vmatprep.mubr.bf16.mxu1 %v9305_v17 }
 0x457   :  { %2212 = vmatpush1.bf16.msra.mxu0 %v7999_v26  ;;  %2253 = vmatpush1.bf16.msra.mxu1 %v8004_v18 }
 0x458   :  { %2213 = vmatprep.subr.bf16.mxu0 %v8013_v35  ;;  %2254 = vmatprep.subr.bf16.mxu1 %v8018_v36 }
 0x45b   :  { %2214 = vmatpush1.bf16.msra.mxu0 %v8023_v20  ;;  %2255 = vmatpush1.bf16.msra.mxu1 %v8028_v27 }
 0x45c   :  { %2215 = vmatprep.subr.bf16.mxu0 %v8037_v31  ;;  %2256 = vmatprep.subr.bf16.mxu1 %v8042_v37 }
 0x45f   :  { %2216 = vmatpush1.bf16.msra.mxu0 %v8047_v45  ;;  %2257 = vmatpush1.bf16.msra.mxu1 %v8052_v15 }
 0x460   :  { %2217 = vmatprep.subr.bf16.mxu0 %v8061_v48  ;;  %2258 = vmatprep.subr.bf16.mxu1 %v8066_v28 }
 0x463   :  { %2218 = vmatpush1.bf16.msra.mxu0 %v8071_v14  ;;  %2259 = vmatpush1.bf16.msra.mxu1 %v8076_v3 }
 0x464   :  { %2219 = vmatprep.subr.bf16.mxu0 %v8083_v29  ;;  %2260 = vmatprep.subr.bf16.mxu1 %v8100_v56 }
 0x467   :  { %2220 = vmatpush1.bf16.msra.mxu0 %v8090_v19  ;;  %2261 = vmatpush1.bf16.msra.mxu1 %v8095_v44 }
 0x468   :  { %2221 = vmatprep.subr.bf16.mxu0 %v8106_v1  ;;  %2262 = vmatprep.subr.bf16.mxu1 %v8111_v33 }
 0x46b   :  { %2222 = vmatpush1.bf16.msra.mxu0 %v8119_v32  ;;  %2263 = vmatpush1.bf16.msra.mxu1 %v8124_v34 }
 0x46c   :  { %2223 = vmatprep.subr.bf16.mxu0 %v8131_v38  ;;  %2264 = vmatprep.subr.bf16.mxu1 %v8136_v39 }
 0x46f   :  { %2224 = vmatpush1.bf16.msra.mxu0 %v8143_v40  ;;  %2265 = vmatpush1.bf16.msra.mxu1 %v8148_v41 }
 0x470   :  { %2522 = vmatprep.subr.bf16.mxu0 %v7965_v9  ;;  %2563 = vmatprep.subr.bf16.mxu1 %v7970_v22 }
 0x525   :  { %v1930_v12 = vpop.f32.mrb[32].mxu0  ;;  %v1971_v52 = vpop.f32.mrb[32].mxu1 }
 0x526   :  { %v1978_v54 = vadd.f32 %v1930_v12, %v9313_v53  ;;  %v1980_v58 = vadd.f32 %v1971_v52, %v9314_v57  ;;  %v1932_v59 = vpop.f32.mrb[33].mxu0  ;;  %v1973_v60 = vpop.f32.mrb[33].mxu1  ;;  %v6085_v57 = vld [vmem:[%s9269_s0 + $0x20] sm:$0xff] }
 0x527   :  { %v1979_v63 = vadd.f32 %v1932_v59, %v9315_v62  ;;  %v1981_v2 = vadd.f32 %v1973_v60, %v9316_v0  ;;  %v1934_v5 = vpop.f32.mrb[34].mxu0  ;;  %v1975_v6 = vpop.f32.mrb[34].mxu1 }
 0x528   :  { %v6082_v7 = vmul.f32 -1.442695, %v1978_v54  ;;  %v1935_v8 = vpop.f32.mrb[35].mxu0  ;;  %v1976_v10 = vpop.f32.mrb[35].mxu1 }
 0x529   :  { %v6083_v11 = vmul.f32 -1.442695, %v1979_v63  ;;  %v6084_v13 = vmul.f32 -1.442695, %v1981_v2  ;;  %v9317_v63 = vld [vmem:[#allocation15_spill] sm:$0xff]  ;;  %v9318_v2 = vld [vmem:[#allocation16_spill] sm:$0xff] }
 0x52a   :  { %7178 = vpow2.f32 %v6082_v7  ;;  %v9319_v8 = vld [vmem:[#allocation17_spill] sm:$0xff] }
 0x52b   :  { %7180 = vpow2.f32 %v6083_v11  ;;  %v9320_v11 = vld [vmem:[#allocation18_spill] sm:$0xff] }
 0x52c   :  { %7182 = vpow2.f32 %v6084_v13 }
 0x52d   :  { %7184 = vtanh.f32 %v1980_v58 }
 0x534   :  { %v7179_v61 = vpop.eup %7178 }
 0x535   :  { %v7181_v4 = vpop.eup %7180  ;;  %v1985_v30 = vadd.f32 1.0, %v7179_v61 }
 0x536   :  { %v1991_v55 = vadd.f32 1.0, %v7181_v4  ;;  %v7183_v16 = vpop.eup %7182 }
 0x537   :  { %7186 = vrcp.f32 %v1985_v30  ;;  %v7185_v43 = vpop.eup %7184  ;;  %v1998_v51 = vadd.f32 1.0, %v7183_v16 }
 0x538   :  { %7188 = vrcp.f32 %v1991_v55 }
 0x539   :  { %7190 = vrcp.f32 %v1998_v51 }
 0x541   :  { %v7187_v46 = vpop.eup %7186 }
 0x542   :  { %v7189_v47 = vpop.eup %7188  ;;  %v2002_v49 = vmul.f32 %v7187_v46, %v7185_v43 }
 0x543   :  { %v2001_v12 = vmul.f32 %v7189_v47, %v8161_v42  ;;  %v7191_v53 = vpop.eup %7190 }
 0x545   :  { %v8212_v52 = vadd.f32 %v2002_v49, %v2001_v12 }
 0x547   :  { %7192 = vtanh.f32 %v8212_v52 }
 0x551   :  { %v7193_v54 = vpop.eup %7192 }
 0x552   :  { %v2005_v58 = vmul.f32 %v7193_v54, %v7191_v53 }
 0x554   :  { %v8218_v59 = vadd.f32 %v6085_v57, %v2005_v58  ;;  %v2016_v60 = vpack.c.bf16 %v2005_v58, %v2005_v58 }
 0x556   :  { %6086 = vst [vmem:[%s9271_s4 + $0x20] sm:$0xff] %v8218_v59  ;;  %2242 = vmatmul.mubr.bf16.vlgmr.msra.gmra.mrb[36].mxu0 %v2016_v60  ;;  %2283 = vmatmul.mubr.bf16.vlgmr.msra.gmra.mrb[36].mxu1 %v2016_v60 }
 0x557   :  { %2523 = vmatpush1.bf16.msra.mxu0 %v7975_v21  ;;  %2564 = vmatpush1.bf16.msra.mxu1 %v7980_v23 }
 0x558   :  { %2524 = vmatprep.subr.bf16.mxu0 %v7989_v25  ;;  %2565 = vmatprep.subr.bf16.mxu1 %v7994_v24 }
 0x559   :  { %2554 = vmatprep.mubr.bf16.mxu0 %v9305_v17  ;;  %2595 = vmatprep.mubr.bf16.mxu1 %v9305_v17 }
 0x55b   :  { %2525 = vmatpush1.bf16.msra.mxu0 %v7999_v26  ;;  %2566 = vmatpush1.bf16.msra.mxu1 %v8004_v18 }
 0x55c   :  { %2526 = vmatprep.subr.bf16.mxu0 %v8013_v35  ;;  %2567 = vmatprep.subr.bf16.mxu1 %v8018_v36 }
 0x55f   :  { %2527 = vmatpush1.bf16.msra.mxu0 %v8023_v20  ;;  %2568 = vmatpush1.bf16.msra.mxu1 %v8028_v27 }
 0x560   :  { %2528 = vmatprep.subr.bf16.mxu0 %v8037_v31  ;;  %2569 = vmatprep.subr.bf16.mxu1 %v8042_v37 }
 0x563   :  { %2529 = vmatpush1.bf16.msra.mxu0 %v8047_v45  ;;  %2570 = vmatpush1.bf16.msra.mxu1 %v8052_v15 }
 0x564   :  { %2530 = vmatprep.subr.bf16.mxu0 %v8061_v48  ;;  %2571 = vmatprep.subr.bf16.mxu1 %v8066_v28 }
 0x567   :  { %2531 = vmatpush1.bf16.msra.mxu0 %v8071_v14  ;;  %2572 = vmatpush1.bf16.msra.mxu1 %v8076_v3 }
 0x568   :  { %2532 = vmatprep.subr.bf16.mxu0 %v8083_v29  ;;  %2573 = vmatprep.subr.bf16.mxu1 %v8100_v56 }
 0x56b   :  { %2533 = vmatpush1.bf16.msra.mxu0 %v8090_v19  ;;  %2574 = vmatpush1.bf16.msra.mxu1 %v8095_v44 }
 0x56c   :  { %2534 = vmatprep.subr.bf16.mxu0 %v8106_v1  ;;  %2575 = vmatprep.subr.bf16.mxu1 %v8111_v33 }
 0x56f   :  { %2535 = vmatpush1.bf16.msra.mxu0 %v8119_v32  ;;  %2576 = vmatpush1.bf16.msra.mxu1 %v8124_v34 }
 0x570   :  { %2536 = vmatprep.subr.bf16.mxu0 %v8131_v38  ;;  %2577 = vmatprep.subr.bf16.mxu1 %v8136_v39 }
 0x573   :  { %2537 = vmatpush1.bf16.msra.mxu0 %v8143_v40  ;;  %2578 = vmatpush1.bf16.msra.mxu1 %v8148_v41 }
 0x574   :  { %2835 = vmatprep.subr.bf16.mxu0 %v7965_v9  ;;  %2876 = vmatprep.subr.bf16.mxu1 %v7970_v22 }
 0x629   :  { %v2243_v42 = vpop.f32.mrb[36].mxu0  ;;  %v2284_v62 = vpop.f32.mrb[36].mxu1 }
 0x62a   :  { %v2291_v0 = vadd.f32 %v2243_v42, %v9317_v63  ;;  %v2293_v5 = vadd.f32 %v2284_v62, %v9318_v2  ;;  %v2245_v6 = vpop.f32.mrb[37].mxu0  ;;  %v2286_v7 = vpop.f32.mrb[37].mxu1 }
 0x62b   :  { %v2292_v10 = vadd.f32 %v2245_v6, %v9319_v8  ;;  %v2294_v13 = vadd.f32 %v2286_v7, %v9320_v11  ;;  %v2247_v61 = vpop.f32.mrb[38].mxu0  ;;  %v2288_v4 = vpop.f32.mrb[38].mxu1 }
 0x62c   :  { %v6119_v30 = vmul.f32 -1.442695, %v2291_v0  ;;  %v2248_v55 = vpop.f32.mrb[39].mxu0  ;;  %v2289_v16 = vpop.f32.mrb[39].mxu1  ;;  %v6122_v0 = vld [vmem:[%s9269_s0 + $0x28] sm:$0xff] }
 0x62d   :  { %v6120_v9 = vmul.f32 -1.442695, %v2292_v10  ;;  %v6121_v22 = vmul.f32 -1.442695, %v2294_v13  ;;  %v6159_v13 = vld [vmem:[%s9269_s0 + $0x30] sm:$0xff] }
 0x62e   :  { %7194 = vpow2.f32 %v6119_v30  ;;  %v6970_v4 = vld [vmem:[%s9267_s1 + $0x100] ss:$16 sps:$4 sm:$0xff]   ;;  %v6973_v30 = vld [vmem:[%s9267_s1 + $0x108] ss:$16 sps:$4 sm:$0xff]  }
 0x62f   :  { %7196 = vpow2.f32 %v6120_v9  ;;  %v6978_v9 = vld [vmem:[%s9267_s1 + $0x124] ss:$16 sps:$4 sm:$0xff]  }
 0x630   :  { %7198 = vpow2.f32 %v6121_v22  ;;  %v6981_v22 = vld [vmem:[%s9267_s1 + $0x12c] ss:$16 sps:$4 sm:$0xff]  }
 0x631   :  { %7200 = vtanh.f32 %v2293_v5 }
 0x638   :  { %v7195_v43 = vpop.eup %7194 }
 0x639   :  { %v7197_v46 = vpop.eup %7196  ;;  %v2298_v47 = vadd.f32 1.0, %v7195_v43  ;;  %v6976_v43 = vld [vmem:[%s9267_s1 + $0x120] ss:$16 sps:$4 sm:$0xff]  }
 0x63a   :  { %v2304_v49 = vadd.f32 1.0, %v7197_v46  ;;  %v7199_v51 = vpop.eup %7198  ;;  %v6979_v46 = vld [vmem:[%s9267_s1 + $0x128] ss:$16 sps:$4 sm:$0xff]  }
 0x63b   :  { %7202 = vrcp.f32 %v2298_v47  ;;  %v7201_v12 = vpop.eup %7200  ;;  %v2311_v58 = vadd.f32 1.0, %v7199_v51  ;;  %v6984_v47 = vld [vmem:[%s9267_s1 + $0x144] ss:$16 sps:$4 sm:$0xff]   ;;  %v6982_v51 = vld [vmem:[%s9267_s1 + $0x140] ss:$16 sps:$4 sm:$0xff]  }
 0x63c   :  { %7204 = vrcp.f32 %v2304_v49  ;;  %v6987_v49 = vld [vmem:[%s9267_s1 + $0x14c] ss:$16 sps:$4 sm:$0xff]  }
 0x63d   :  { %7206 = vrcp.f32 %v2311_v58  ;;  %v6991_v58 = vld [vmem:[%s9267_s1 + $0x168] ss:$16 sps:$4 sm:$0xff]  }
 0x645   :  { %v7203_v53 = vpop.eup %7202 }
 0x646   :  { %v7205_v54 = vpop.eup %7204  ;;  %v2315_v57 = vmul.f32 %v7203_v53, %v7201_v12  ;;  %v6985_v12 = vld [vmem:[%s9267_s1 + $0x148] ss:$16 sps:$4 sm:$0xff]   ;;  %v6990_v53 = vld [vmem:[%s9267_s1 + $0x164] ss:$16 sps:$4 sm:$0xff]  }
 0x647   :  { %v2314_v60 = vmul.f32 %v7205_v54, %v8212_v52  ;;  %v7207_v62 = vpop.eup %7206  ;;  %v6993_v54 = vld [vmem:[%s9267_s1 + $0x16c] ss:$16 sps:$4 sm:$0xff]  }
 0x649   :  { %v8263_v42 = vadd.f32 %v2315_v57, %v2314_v60  ;;  %v6988_v57 = vld [vmem:[%s9267_s1 + $0x160] ss:$16 sps:$4 sm:$0xff]   ;;  %v6996_v60 = vld [vmem:[%s9267_s1 + $0x184] ss:$16 sps:$4 sm:$0xff]  }
 0x64b   :  { %7208 = vtanh.f32 %v8263_v42 }
 0x655   :  { %v7209_v63 = vpop.eup %7208 }
 0x656   :  { %v2318_v2 = vmul.f32 %v7209_v63, %v7207_v62  ;;  %v6994_v62 = vld [vmem:[%s9267_s1 + $0x180] ss:$16 sps:$4 sm:$0xff]   ;;  %v6997_v63 = vld [vmem:[%s9267_s1 + $0x188] ss:$16 sps:$4 sm:$0xff]  }
 0x658   :  { %v8269_v5 = vadd.f32 %v6122_v0, %v2318_v2  ;;  %v2329_v6 = vpack.c.bf16 %v2318_v2, %v2318_v2  ;;  %v7002_v0 = vld [vmem:[%s9267_s1 + $0x1a4] ss:$16 sps:$4 sm:$0xff]   ;;  %v7005_v2 = vld [vmem:[%s9267_s1 + $0x1ac] ss:$16 sps:$4 sm:$0xff]  }
 0x65a   :  { %6123 = vst [vmem:[%s9271_s4 + $0x28] sm:$0xff] %v8269_v5  ;;  %2555 = vmatmul.mubr.bf16.vlgmr.msra.gmra.mrb[40].mxu0 %v2329_v6  ;;  %2596 = vmatmul.mubr.bf16.vlgmr.msra.gmra.mrb[40].mxu1 %v2329_v6  ;;  %v7000_v6 = vld [vmem:[%s9267_s1 + $0x1a0] ss:$16 sps:$4 sm:$0xff]  }
 0x65b   :  { %2836 = vmatpush1.bf16.msra.mxu0 %v7975_v21  ;;  %2877 = vmatpush1.bf16.msra.mxu1 %v7980_v23  ;;  %v6972_v21 = vld [vmem:[%s9267_s1 + $0x104] ss:$16 sps:$4 sm:$0xff]   ;;  %v6975_v23 = vld [vmem:[%s9267_s1 + $0x10c] ss:$16 sps:$4 sm:$0xff]  }
 0x65c   :  { %2837 = vmatprep.subr.bf16.mxu0 %v7989_v25  ;;  %2878 = vmatprep.subr.bf16.mxu1 %v7994_v24 }
 0x65d   :  { %2867 = vmatprep.mubr.bf16.mxu0 %v9305_v17  ;;  %2908 = vmatprep.mubr.bf16.mxu1 %v9305_v17 }
 0x65f   :  { %2838 = vmatpush1.bf16.msra.mxu0 %v7999_v26  ;;  %2879 = vmatpush1.bf16.msra.mxu1 %v8004_v18  ;;  %v9321_v26 = vld [vmem:[#allocation19_spill] sm:$0xff] }
 0x660   :  { %2839 = vmatprep.subr.bf16.mxu0 %v8013_v35  ;;  %2880 = vmatprep.subr.bf16.mxu1 %v8018_v36  ;;  %v9322_v35 = vld [vmem:[#allocation20_spill] sm:$0xff] }
 0x663   :  { %2840 = vmatpush1.bf16.msra.mxu0 %v8023_v20  ;;  %2881 = vmatpush1.bf16.msra.mxu1 %v8028_v27 }
 0x664   :  { %2841 = vmatprep.subr.bf16.mxu0 %v8037_v31  ;;  %2882 = vmatprep.subr.bf16.mxu1 %v8042_v37  ;;  %v9323_v31 = vld [vmem:[#allocation21_spill] sm:$0xff] }
 0x667   :  { %2842 = vmatpush1.bf16.msra.mxu0 %v8047_v45  ;;  %2883 = vmatpush1.bf16.msra.mxu1 %v8052_v15  ;;  %v9324_v45 = vld [vmem:[#allocation22_spill] sm:$0xff] }
 0x668   :  { %2843 = vmatprep.subr.bf16.mxu0 %v8061_v48  ;;  %2884 = vmatprep.subr.bf16.mxu1 %v8066_v28 }
 0x66b   :  { %2844 = vmatpush1.bf16.msra.mxu0 %v8071_v14  ;;  %2885 = vmatpush1.bf16.msra.mxu1 %v8076_v3 }
 0x66c   :  { %2845 = vmatprep.subr.bf16.mxu0 %v8083_v29  ;;  %2886 = vmatprep.subr.bf16.mxu1 %v8100_v56 }
 0x66f   :  { %2846 = vmatpush1.bf16.msra.mxu0 %v8090_v19  ;;  %2887 = vmatpush1.bf16.msra.mxu1 %v8095_v44 }
 0x670   :  { %2847 = vmatprep.subr.bf16.mxu0 %v8106_v1  ;;  %2888 = vmatprep.subr.bf16.mxu1 %v8111_v33 }
 0x673   :  { %2848 = vmatpush1.bf16.msra.mxu0 %v8119_v32  ;;  %2889 = vmatpush1.bf16.msra.mxu1 %v8124_v34 }
 0x674   :  { %2849 = vmatprep.subr.bf16.mxu0 %v8131_v38  ;;  %2890 = vmatprep.subr.bf16.mxu1 %v8136_v39 }
 0x677   :  { %2850 = vmatpush1.bf16.msra.mxu0 %v8143_v40  ;;  %2891 = vmatpush1.bf16.msra.mxu1 %v8148_v41 }
 0x678   :  { %3206 = vmatprep.subr.bf16.mxu0 %v6972_v21  ;;  %3279 = vmatprep.subr.bf16.mxu1 %v6975_v23  ;;  %v7003_v21 = vld [vmem:[%s9267_s1 + $0x1a8] ss:$16 sps:$4 sm:$0xff]   ;;  %v7008_v23 = vld [vmem:[%s9267_s1 + $0x1c4] ss:$16 sps:$4 sm:$0xff]  }
 0x72d   :  { %v2556_v25 = vpop.f32.mrb[40].mxu0  ;;  %v2597_v24 = vpop.f32.mrb[40].mxu1 }
 0x72e   :  { %v2604_v18 = vadd.f32 %v2556_v25, %v9321_v26  ;;  %v2606_v36 = vadd.f32 %v2597_v24, %v9322_v35  ;;  %v2558_v20 = vpop.f32.mrb[41].mxu0  ;;  %v2599_v27 = vpop.f32.mrb[41].mxu1  ;;  %v7011_v25 = vld [vmem:[%s9267_s1 + $0x1cc] ss:$16 sps:$4 sm:$0xff]   ;;  %v7006_v24 = vld [vmem:[%s9267_s1 + $0x1c0] ss:$16 sps:$4 sm:$0xff]  }
 0x72f   :  { %v2605_v37 = vadd.f32 %v2558_v20, %v9323_v31  ;;  %v2607_v15 = vadd.f32 %v2599_v27, %v9324_v45  ;;  %v2560_v48 = vpop.f32.mrb[42].mxu0  ;;  %v2601_v28 = vpop.f32.mrb[42].mxu1  ;;  %v7009_v26 = vld [vmem:[%s9267_s1 + $0x1c8] ss:$16 sps:$4 sm:$0xff]   ;;  %v7017_v35 = vld [vmem:[%s9267_s1 + $0x1ec] ss:$16 sps:$4 sm:$0xff]  }
 0x730   :  { %v6156_v14 = vmul.f32 -1.442695, %v2604_v18  ;;  %v2561_v3 = vpop.f32.mrb[43].mxu0  ;;  %v2602_v29 = vpop.f32.mrb[43].mxu1  ;;  %v7014_v18 = vld [vmem:[%s9267_s1 + $0x1e4] ss:$16 sps:$4 sm:$0xff]   ;;  %v6823_v48 = vpack.c.bf16 %v8269_v5, %v8218_v59 }
 0x731   :  { %v6157_v19 = vmul.f32 -1.442695, %v2605_v37  ;;  %v6158_v44 = vmul.f32 -1.442695, %v2607_v15  ;;  %v7015_v20 = vld [vmem:[%s9267_s1 + $0x1e8] ss:$16 sps:$4 sm:$0xff]  }
 0x732   :  { %7210 = vpow2.f32 %v6156_v14  ;;  %v8425_v27 = vld [vmem:[%s9271_s4 + $0x8] sm:$0xff]  ;;  %v8430_v31 = vld [vmem:[%s9271_s4] sm:$0xff]  ;;  %v2952_v45 = vld [vmem:[%s9271_s4 + $0x10] sm:$0xff] }
 0x733   :  { %7212 = vpow2.f32 %v6157_v19  ;;  %9325 = vst [vmem:[#allocation4_spill] sm:$0xff] %v8425_v27  ;;  %v6821_v37 = vpack.c.bf16 %v8425_v27, %v8430_v31  ;;  %v6822_v15 = vpack.c.bf16 %v8167_v50, %v2952_v45  ;;  %v8449_v28 = vld [vmem:[%s9268_s2 + $0x104] ss:$16 sps:$4 sm:$0xff]   ;;  %v8454_v50 = vld [vmem:[%s9268_s2 + $0x10c] ss:$16 sps:$4 sm:$0xff]  }
 0x734   :  { %7214 = vpow2.f32 %v6158_v44  ;;  %v8459_v59 = vld [vmem:[%s9268_s2 + $0x100] ss:$16 sps:$4 sm:$0xff]   ;;  %v8464_v5 = vld [vmem:[%s9268_s2 + $0x108] ss:$16 sps:$4 sm:$0xff]   ;;  %v8473_v14 = vld [vmem:[%s9268_s2 + $0x124] ss:$16 sps:$4 sm:$0xff]  }
 0x735   :  { %7216 = vtanh.f32 %v2606_v36  ;;  %v7012_v36 = vld [vmem:[%s9267_s1 + $0x1e0] ss:$16 sps:$4 sm:$0xff]   ;;  %v8478_v3 = vld [vmem:[%s9268_s2 + $0x12c] ss:$16 sps:$4 sm:$0xff]   ;;  %v8488_v19 = vld [vmem:[%s9268_s2 + $0x128] ss:$16 sps:$4 sm:$0xff]  }
 0x736   :  { %v8483_v29 = vld [vmem:[%s9268_s2 + $0x120] ss:$16 sps:$4 sm:$0xff]   ;;  %v8497_v44 = vld [vmem:[%s9268_s2 + $0x144] ss:$16 sps:$4 sm:$0xff]  }
 0x73c   :  { %v7211_v56 = vpop.eup %7210 }
 0x73d   :  { %v7213_v1 = vpop.eup %7212  ;;  %v2611_v33 = vadd.f32 1.0, %v7211_v56  ;;  %v8502_v56 = vld [vmem:[%s9268_s2 + $0x14c] ss:$16 sps:$4 sm:$0xff]  }
 0x73e   :  { %v2617_v32 = vadd.f32 1.0, %v7213_v1  ;;  %v7215_v34 = vpop.eup %7214  ;;  %v8507_v1 = vld [vmem:[%s9268_s2 + $0x140] ss:$16 sps:$4 sm:$0xff]  }
 0x73f   :  { %7218 = vrcp.f32 %v2611_v33  ;;  %v7217_v38 = vpop.eup %7216  ;;  %v2624_v52 = vadd.f32 1.0, %v7215_v34  ;;  %v8512_v33 = vld [vmem:[%s9268_s2 + $0x148] ss:$16 sps:$4 sm:$0xff]   ;;  %v8526_v34 = vld [vmem:[%s9268_s2 + $0x16c] ss:$16 sps:$4 sm:$0xff]  }
 0x740   :  { %7220 = vrcp.f32 %v2617_v32  ;;  %v8521_v32 = vld [vmem:[%s9268_s2 + $0x164] ss:$16 sps:$4 sm:$0xff]  }
 0x741   :  { %7222 = vrcp.f32 %v2624_v52  ;;  %v8555_v52 = vld [vmem:[%s9268_s2 + $0x180] ss:$16 sps:$4 sm:$0xff]  }
 0x749   :  { %v7219_v39 = vpop.eup %7218 }
 0x74a   :  { %v7221_v40 = vpop.eup %7220  ;;  %v2628_v41 = vmul.f32 %v7219_v39, %v7217_v38  ;;  %v8531_v38 = vld [vmem:[%s9268_s2 + $0x160] ss:$16 sps:$4 sm:$0xff]   ;;  %v8536_v39 = vld [vmem:[%s9268_s2 + $0x168] ss:$16 sps:$4 sm:$0xff]  }
 0x74b   :  { %v2627_v7 = vmul.f32 %v7221_v40, %v8263_v42  ;;  %v7223_v10 = vpop.eup %7222  ;;  %v6999_v42 = vld [vmem:[%s9267_s1 + $0x18c] ss:$16 sps:$4 sm:$0xff]   ;;  %v8545_v40 = vld [vmem:[%s9268_s2 + $0x184] ss:$16 sps:$4 sm:$0xff]  }
 0x74d   :  { %v8318_v8 = vadd.f32 %v2628_v41, %v2627_v7  ;;  %v8550_v41 = vld [vmem:[%s9268_s2 + $0x18c] ss:$16 sps:$4 sm:$0xff]   ;;  %v8560_v7 = vld [vmem:[%s9268_s2 + $0x188] ss:$16 sps:$4 sm:$0xff]  }
 0x74f   :  { %7224 = vtanh.f32 %v8318_v8 }
 0x759   :  { %v7225_v11 = vpop.eup %7224 }
 0x75a   :  { %v2631_v61 = vmul.f32 %v7225_v11, %v7223_v10  ;;  %v8569_v10 = vld [vmem:[%s9268_s2 + $0x1a4] ss:$16 sps:$4 sm:$0xff]   ;;  %v8574_v11 = vld [vmem:[%s9268_s2 + $0x1ac] ss:$16 sps:$4 sm:$0xff]  }
 0x75c   :  { %v8330_v55 = vadd.f32 %v6159_v13, %v2631_v61  ;;  %v2642_v16 = vpack.c.bf16 %v2631_v61, %v2631_v61  ;;  %v8579_v13 = vld [vmem:[%s9268_s2 + $0x1a0] ss:$16 sps:$4 sm:$0xff]   ;;  %v8584_v61 = vld [vmem:[%s9268_s2 + $0x1a8] ss:$16 sps:$4 sm:$0xff]  }
 0x75e   :  { %6160 = vst [vmem:[%s9271_s4 + $0x30] sm:$0xff] %v8330_v55  ;;  %2868 = vmatmul.mubr.bf16.vlgmr.msra.gmra.mrb[44].mxu0 %v2642_v16  ;;  %2909 = vmatmul.mubr.bf16.vlgmr.msra.gmra.mrb[44].mxu1 %v2642_v16  ;;  %v8603_v16 = vld [vmem:[%s9268_s2 + $0x1c0] ss:$16 sps:$4 sm:$0xff]  }
 0x75f   :  { %3207 = vmatpush1.bf16.msra.mxu0 %v6970_v4  ;;  %3280 = vmatpush1.bf16.msra.mxu1 %v6973_v30  ;;  %v8593_v4 = vld [vmem:[%s9268_s2 + $0x1c4] ss:$16 sps:$4 sm:$0xff]   ;;  %v8598_v30 = vld [vmem:[%s9268_s2 + $0x1cc] ss:$16 sps:$4 sm:$0xff]  }
 0x760   :  { %3208 = vmatprep.subr.bf16.mxu0 %v6978_v9  ;;  %3281 = vmatprep.subr.bf16.mxu1 %v6981_v22  ;;  %v8608_v9 = vld [vmem:[%s9268_s2 + $0x1c8] ss:$16 sps:$4 sm:$0xff]   ;;  %v8615_v22 = vld [vmem:[%s9268_s2 + $0x1e4] ss:$16 sps:$4 sm:$0xff]  }
 0x761   :  { %3238 = vmatprep.mubr.bf16.mxu0 %v9305_v17  ;;  %3311 = vmatprep.mubr.bf16.mxu1 %v9305_v17 }
 0x763   :  { %3209 = vmatpush1.bf16.msra.mxu0 %v6976_v43  ;;  %3282 = vmatpush1.bf16.msra.mxu1 %v6979_v46  ;;  %v8622_v43 = vld [vmem:[%s9268_s2 + $0x1e0] ss:$16 sps:$4 sm:$0xff]   ;;  %v8627_v46 = vld [vmem:[%s9268_s2 + $0x1e8] ss:$16 sps:$4 sm:$0xff]  }
 0x764   :  { %3210 = vmatprep.subr.bf16.mxu0 %v6984_v47  ;;  %3283 = vmatprep.subr.bf16.mxu1 %v6987_v49  ;;  %v8632_v47 = vld [vmem:[%s9268_s2 + $0x1ec] ss:$16 sps:$4 sm:$0xff]  }
 0x767   :  { %3211 = vmatpush1.bf16.msra.mxu0 %v6982_v51  ;;  %3284 = vmatpush1.bf16.msra.mxu1 %v6985_v12  ;;  %v9326_v12 = vld [vmem:[#allocation23_spill] sm:$0xff] }
 0x768   :  { %3212 = vmatprep.subr.bf16.mxu0 %v6990_v53  ;;  %3285 = vmatprep.subr.bf16.mxu1 %v6993_v54  ;;  %v9327_v54 = vld [vmem:[#allocation24_spill] sm:$0xff] }
 0x76b   :  { %3213 = vmatpush1.bf16.msra.mxu0 %v6988_v57  ;;  %3286 = vmatpush1.bf16.msra.mxu1 %v6991_v58 }
 0x76c   :  { %3214 = vmatprep.subr.bf16.mxu0 %v6996_v60  ;;  %3287 = vmatprep.subr.bf16.mxu1 %v6999_v42  ;;  %v9328_v42 = vld [vmem:[#allocation25_spill] sm:$0xff] }
 0x76f   :  { %3215 = vmatpush1.bf16.msra.mxu0 %v6994_v62  ;;  %3288 = vmatpush1.bf16.msra.mxu1 %v6997_v63  ;;  %v9329_v63 = vld [vmem:[#allocation26_spill] sm:$0xff] }
 0x770   :  { %3216 = vmatprep.subr.bf16.mxu0 %v7002_v0  ;;  %3289 = vmatprep.subr.bf16.mxu1 %v7005_v2 }
 0x773   :  { %3217 = vmatpush1.bf16.msra.mxu0 %v7000_v6  ;;  %3290 = vmatpush1.bf16.msra.mxu1 %v7003_v21 }
 0x774   :  { %3218 = vmatprep.subr.bf16.mxu0 %v7008_v23  ;;  %3291 = vmatprep.subr.bf16.mxu1 %v7011_v25 }
 0x777   :  { %3219 = vmatpush1.bf16.msra.mxu0 %v7006_v24  ;;  %3292 = vmatpush1.bf16.msra.mxu1 %v7009_v26 }
 0x778   :  { %3220 = vmatprep.subr.bf16.mxu0 %v7014_v18  ;;  %3293 = vmatprep.subr.bf16.mxu1 %v7017_v35 }
 0x77b   :  { %3221 = vmatpush1.bf16.msra.mxu0 %v7012_v36  ;;  %3294 = vmatpush1.bf16.msra.mxu1 %v7015_v20 }
 0x77c   :  { %3581 = vmatprep.subr.bf16.mxu0 %v8449_v28  ;;  %3622 = vmatprep.subr.bf16.mxu1 %v8454_v50 }
 0x77e   :  { %3239 = vmatmul.mubr.bf16.vlgmr.msra.gmra.mrb[48].mxu0 %v6821_v37  ;;  %3312 = vmatmul.mubr.bf16.vlgmr.msra.gmra.mrb[48].mxu1 %v6821_v37 }
 0x77f   :  { %3248 = vmatprep.mubr.bf16.mxu0 %v9305_v17  ;;  %3321 = vmatprep.mubr.bf16.mxu1 %v9305_v17 }
 0x780   :  { %3582 = vmatpush1.bf16.msra.mxu0 %v8459_v59  ;;  %3623 = vmatpush1.bf16.msra.mxu1 %v8464_v5 }
 0x781   :  { %3583 = vmatprep.subr.bf16.mxu0 %v8473_v14  ;;  %3624 = vmatprep.subr.bf16.mxu1 %v8478_v3 }
 0x784   :  { %3584 = vmatpush1.bf16.msra.mxu0 %v8483_v29  ;;  %3625 = vmatpush1.bf16.msra.mxu1 %v8488_v19 }
 0x785   :  { %3585 = vmatprep.subr.bf16.mxu0 %v8497_v44  ;;  %3626 = vmatprep.subr.bf16.mxu1 %v8502_v56 }
 0x786   :  { %3249 = vmatmul.mubr.bf16.gmra.mrb[52].mxu0 %v6822_v15  ;;  %3322 = vmatmul.mubr.bf16.gmra.mrb[52].mxu1 %v6822_v15 }
 0x787   :  { %3258 = vmatprep.mubr.bf16.mxu0 %v9305_v17  ;;  %3331 = vmatprep.mubr.bf16.mxu1 %v9305_v17 }
 0x788   :  { %3586 = vmatpush1.bf16.msra.mxu0 %v8507_v1  ;;  %3627 = vmatpush1.bf16.msra.mxu1 %v8512_v33 }
 0x789   :  { %3587 = vmatprep.subr.bf16.mxu0 %v8521_v32  ;;  %3628 = vmatprep.subr.bf16.mxu1 %v8526_v34 }
 0x78c   :  { %3588 = vmatpush1.bf16.msra.mxu0 %v8531_v38  ;;  %3629 = vmatpush1.bf16.msra.mxu1 %v8536_v39 }
 0x78d   :  { %3589 = vmatprep.subr.bf16.mxu0 %v8545_v40  ;;  %3630 = vmatprep.subr.bf16.mxu1 %v8550_v41 }
 0x78e   :  { %3259 = vmatmul.mubr.bf16.gmra.mrb[56].mxu0 %v6823_v48  ;;  %3332 = vmatmul.mubr.bf16.gmra.mrb[56].mxu1 %v6823_v48 }
 0x78f   :  { %3268 = vmatprep.mubr.bf16.mxu0 %v9305_v17  ;;  %3341 = vmatprep.mubr.bf16.mxu1 %v9305_v17 }
 0x790   :  { %3590 = vmatpush1.bf16.msra.mxu0 %v8555_v52  ;;  %3631 = vmatpush1.bf16.msra.mxu1 %v8560_v7 }
 0x791   :  { %3591 = vmatprep.subr.bf16.mxu0 %v8569_v10  ;;  %3632 = vmatprep.subr.bf16.mxu1 %v8574_v11 }
 0x794   :  { %3592 = vmatpush1.bf16.msra.mxu0 %v8579_v13  ;;  %3633 = vmatpush1.bf16.msra.mxu1 %v8584_v61 }
 0x795   :  { %3593 = vmatprep.subr.bf16.mxu0 %v8593_v4  ;;  %3634 = vmatprep.subr.bf16.mxu1 %v8598_v30 }
 0x798   :  { %3594 = vmatpush1.bf16.msra.mxu0 %v8603_v16  ;;  %3635 = vmatpush1.bf16.msra.mxu1 %v8608_v9 }
 0x799   :  { %3595 = vmatprep.subr.bf16.mxu0 %v8615_v22  ;;  %3636 = vmatprep.subr.bf16.mxu1 %v8632_v47 }
 0x79c   :  { %3596 = vmatpush1.bf16.msra.mxu0 %v8622_v43  ;;  %3637 = vmatpush1.bf16.msra.mxu1 %v8627_v46 }
 0x79d   :  { %3891 = vmatprep.subr.bf16.mxu0 %v8449_v28  ;;  %3932 = vmatprep.subr.bf16.mxu1 %v8454_v50 }
 0x831   :  { %v2869_v49 = vpop.f32.mrb[44].mxu0  ;;  %v2910_v51 = vpop.f32.mrb[44].mxu1 }
 0x832   :  { %v2917_v53 = vadd.f32 %v2869_v49, %v9326_v12  ;;  %v2919_v57 = vadd.f32 %v2910_v51, %v9327_v54  ;;  %v2871_v58 = vpop.f32.mrb[45].mxu0  ;;  %v2912_v60 = vpop.f32.mrb[45].mxu1 }
 0x833   :  { %v2918_v62 = vadd.f32 %v2871_v58, %v9328_v42  ;;  %v2920_v0 = vadd.f32 %v2912_v60, %v9329_v63  ;;  %v2873_v2 = vpop.f32.mrb[46].mxu0  ;;  %v2914_v6 = vpop.f32.mrb[46].mxu1 }
 0x834   :  { %v6193_v21 = vmul.f32 -1.442695, %v2917_v53  ;;  %v2874_v23 = vpop.f32.mrb[47].mxu0  ;;  %v2915_v25 = vpop.f32.mrb[47].mxu1 }
 0x835   :  { %v6194_v24 = vmul.f32 -1.442695, %v2918_v62  ;;  %v6195_v26 = vmul.f32 -1.442695, %v2920_v0 }
 0x836   :  { %7226 = vpow2.f32 %v6193_v21 }
 0x837   :  { %7228 = vpow2.f32 %v6194_v24 }
 0x838   :  { %7230 = vpow2.f32 %v6195_v26 }
 0x839   :  { %7232 = vtanh.f32 %v2919_v57 }
 0x840   :  { %v7227_v18 = vpop.eup %7226 }
 0x841   :  { %v7229_v35 = vpop.eup %7228  ;;  %v2924_v36 = vadd.f32 1.0, %v7227_v18 }
 0x842   :  { %v2930_v20 = vadd.f32 1.0, %v7229_v35  ;;  %v7231_v37 = vpop.eup %7230 }
 0x843   :  { %7234 = vrcp.f32 %v2924_v36  ;;  %v7233_v45 = vpop.eup %7232  ;;  %v2937_v51 = vadd.f32 1.0, %v7231_v37  ;;  %v6196_v36 = vld [vmem:[%s9269_s0 + $0x38] sm:$0xff] }
 0x844   :  { %7236 = vrcp.f32 %v2930_v20 }
 0x845   :  { %7238 = vrcp.f32 %v2937_v51 }
 0x84d   :  { %v7235_v15 = vpop.eup %7234 }
 0x84e   :  { %v7237_v48 = vpop.eup %7236  ;;  %v2941_v49 = vmul.f32 %v7235_v15, %v7233_v45 }
 0x84f   :  { %v2940_v12 = vmul.f32 %v7237_v48, %v8318_v8  ;;  %v7239_v24 = vpop.eup %7238 }
 0x851   :  { %v2942_v53 = vadd.f32 %v2941_v49, %v2940_v12  ;;  %v8645_v54 = vpop.f32.mrb[48].mxu0  ;;  %v8647_v58 = vpop.f32.mrb[48].mxu1 }
 0x852   :  { %v8649_v60 = vpop.f32.mrb[49].mxu0  ;;  %v8651_v57 = vpop.f32.mrb[49].mxu1 }
 0x853   :  { %7240 = vtanh.f32 %v2942_v53  ;;  %v8653_v42 = vpop.f32.mrb[50].mxu0  ;;  %v8655_v62 = vpop.f32.mrb[50].mxu1 }
 0x854   :  { %v8657_v63 = vpop.f32.mrb[51].mxu0  ;;  %v8659_v0 = vpop.f32.mrb[51].mxu1 }
 0x859   :  { %v8661_v8 = vpop.f32.mrb[52].mxu0  ;;  %v8663_v2 = vpop.f32.mrb[52].mxu1 }
 0x85a   :  { %9330 = vst [vmem:[#allocation5_spill] sm:$0xff] %v8661_v8  ;;  %9331 = vst [vmem:[#allocation6_spill] sm:$0xff] %v8663_v2  ;;  %v8665_v6 = vpop.f32.mrb[53].mxu0  ;;  %v8667_v21 = vpop.f32.mrb[53].mxu1 }
 0x85b   :  { %9332 = vst [vmem:[#allocation7_spill] sm:$0xff] %v8665_v6  ;;  %9333 = vst [vmem:[#allocation8_spill] sm:$0xff] %v8667_v21  ;;  %v8669_v23 = vpop.f32.mrb[54].mxu0  ;;  %v8671_v25 = vpop.f32.mrb[54].mxu1 }
 0x85c   :  { %9334 = vst [vmem:[#allocation9_spill] sm:$0xff] %v8669_v23  ;;  %9335 = vst [vmem:[#allocation10_spill] sm:$0xff] %v8671_v25  ;;  %v8673_v26 = vpop.f32.mrb[55].mxu0  ;;  %v8675_v18 = vpop.f32.mrb[55].mxu1 }
 0x85d   :  { %9336 = vst [vmem:[#allocation11_spill] sm:$0xff] %v8673_v26  ;;  %9337 = vst [vmem:[#allocation12_spill] sm:$0xff] %v8675_v18  ;;  %v7241_v35 = vpop.eup %7240 }
 0x85e   :  { %v2944_v20 = vmul.f32 %v7241_v35, %v7239_v24 }
 0x860   :  { %v2947_v37 = vadd.f32 %v6196_v36, %v2944_v20 }
 0x861   :  { %v8680_v45 = vpop.f32.mrb[56].mxu0  ;;  %v8682_v15 = vpop.f32.mrb[56].mxu1 }
 0x862   :  { %9338 = vst [vmem:[#allocation13_spill] sm:$0xff] %v8680_v45  ;;  %9339 = vst [vmem:[#allocation14_spill] sm:$0xff] %v8682_v15  ;;  %v8687_v48 = vpop.f32.mrb[57].mxu0  ;;  %v8689_v49 = vpop.f32.mrb[57].mxu1  ;;  %v6824_v51 = vpack.c.bf16 %v2947_v37, %v8330_v55  ;;  %v6230_v55 = vld [vmem:[%s9270_s3 + $0x4] sm:$0xf] }
 0x863   :  { %6197 = vst [vmem:[%s9271_s4 + $0x38] sm:$0xff] %v2947_v37  ;;  %9340 = vst [vmem:[#allocation15_spill] sm:$0xff] %v8687_v48  ;;  %v8692_v12 = vpop.f32.mrb[58].mxu0  ;;  %v8694_v53 = vpop.f32.mrb[58].mxu1 }
 0x864   :  { %9341 = vst [vmem:[#allocation16_spill] sm:$0xff] %v8689_v49  ;;  %9342 = vst [vmem:[#allocation17_spill] sm:$0xff] %v8692_v12  ;;  %v8696_v24 = vpop.f32.mrb[59].mxu0  ;;  %v8698_v35 = vpop.f32.mrb[59].mxu1  ;;  %3269 = vmatmul.mubr.bf16.gmra.mrb[60].mxu0 %v6824_v51  ;;  %3342 = vmatmul.mubr.bf16.gmra.mrb[60].mxu1 %v6824_v51 }
 0x865   :  { %9343 = vst [vmem:[#allocation18_spill] sm:$0xff] %v8694_v53  ;;  %9344 = vst [vmem:[#allocation19_spill] sm:$0xff] %v8696_v24  ;;  %3613 = vmatprep.mubr.bf16.mxu0 %v9305_v17  ;;  %3654 = vmatprep.mubr.bf16.mxu1 %v9305_v17  ;;  %v9352_v53 = vld [vmem:[#allocation3_spill] sm:$0xff] }
 0x866   :  { %9345 = vst [vmem:[#allocation20_spill] sm:$0xff] %v8698_v35  ;;  %v9353_v12 = vsub.s32 0, %v9352_v53  ;;  %v9354_v48 = vsub.s32 2, %v9352_v53 }
 0x868   :  { %v8755_v49 = vrot.slane %v6230_v55, %v9353_v12  ;;  %v8759_v15 = vrot.slane %v6230_v55, %v9354_v48 }
 0x86a   :  { %v3241_v12 = vadd.f32 %v8645_v54, %v8755_v49 }
 0x86c   :  { %3614 = vmatmul.mubr.bf16.vlgmr.msra.gmra.mrb[64].mxu0 %v9305_v17  ;;  %3655 = vmatmul.mubr.bf16.vlgmr.msra.gmra.mrb[64].mxu1 %v9305_v17 }
 0x86d   :  { %3892 = vmatpush1.bf16.msra.mxu0 %v8459_v59  ;;  %3933 = vmatpush1.bf16.msra.mxu1 %v8464_v5 }
 0x86e   :  { %3893 = vmatprep.subr.bf16.mxu0 %v8473_v14  ;;  %3934 = vmatprep.subr.bf16.mxu1 %v8478_v3 }
 0x86f   :  { %3923 = vmatprep.mubr.bf16.mxu0 %v9305_v17  ;;  %3964 = vmatprep.mubr.bf16.mxu1 %v9305_v17 }
 0x871   :  { %3894 = vmatpush1.bf16.msra.mxu0 %v8483_v29  ;;  %3935 = vmatpush1.bf16.msra.mxu1 %v8488_v19 }
 0x872   :  { %3895 = vmatprep.subr.bf16.mxu0 %v8497_v44  ;;  %3936 = vmatprep.subr.bf16.mxu1 %v8502_v56 }
 0x875   :  { %3896 = vmatpush1.bf16.msra.mxu0 %v8507_v1  ;;  %3937 = vmatpush1.bf16.msra.mxu1 %v8512_v33 }
 0x876   :  { %3897 = vmatprep.subr.bf16.mxu0 %v8521_v32  ;;  %3938 = vmatprep.subr.bf16.mxu1 %v8526_v34 }
 0x879   :  { %3898 = vmatpush1.bf16.msra.mxu0 %v8531_v38  ;;  %3939 = vmatpush1.bf16.msra.mxu1 %v8536_v39 }
 0x87a   :  { %3899 = vmatprep.subr.bf16.mxu0 %v8545_v40  ;;  %3940 = vmatprep.subr.bf16.mxu1 %v8550_v41 }
 0x87d   :  { %3900 = vmatpush1.bf16.msra.mxu0 %v8555_v52  ;;  %3941 = vmatpush1.bf16.msra.mxu1 %v8560_v7 }
 0x87e   :  { %3901 = vmatprep.subr.bf16.mxu0 %v8569_v10  ;;  %3942 = vmatprep.subr.bf16.mxu1 %v8574_v11 }
 0x881   :  { %3902 = vmatpush1.bf16.msra.mxu0 %v8579_v13  ;;  %3943 = vmatpush1.bf16.msra.mxu1 %v8584_v61 }
 0x882   :  { %3903 = vmatprep.subr.bf16.mxu0 %v8593_v4  ;;  %3944 = vmatprep.subr.bf16.mxu1 %v8598_v30 }
 0x885   :  { %3904 = vmatpush1.bf16.msra.mxu0 %v8603_v16  ;;  %3945 = vmatpush1.bf16.msra.mxu1 %v8608_v9 }
 0x886   :  { %3905 = vmatprep.subr.bf16.mxu0 %v8615_v22  ;;  %3946 = vmatprep.subr.bf16.mxu1 %v8632_v47 }
 0x889   :  { %3906 = vmatpush1.bf16.msra.mxu0 %v8622_v43  ;;  %3947 = vmatpush1.bf16.msra.mxu1 %v8627_v46 }
 0x88a   :  { %4201 = vmatprep.subr.bf16.mxu0 %v8449_v28  ;;  %4242 = vmatprep.subr.bf16.mxu1 %v8454_v50 }
 0x937   :  { %v8741_v36 = vpop.f32.mrb[60].mxu0  ;;  %v8743_v20 = vpop.f32.mrb[60].mxu1 }
 0x938   :  { %9346 = vst [vmem:[#allocation21_spill] sm:$0xff] %v8741_v36  ;;  %9347 = vst [vmem:[#allocation22_spill] sm:$0xff] %v8743_v20  ;;  %v8745_v37 = vpop.f32.mrb[61].mxu0  ;;  %v8747_v51 = vpop.f32.mrb[61].mxu1 }
 0x939   :  { %9348 = vst [vmem:[#allocation23_spill] sm:$0xff] %v8745_v37  ;;  %9349 = vst [vmem:[#allocation24_spill] sm:$0xff] %v8747_v51  ;;  %v8749_v35 = vpop.f32.mrb[62].mxu0  ;;  %v8751_v24 = vpop.f32.mrb[62].mxu1  ;;  %v9357_v37 = vsub.s32 1, %v9352_v53 }
 0x93a   :  { %9350 = vst [vmem:[#allocation25_spill] sm:$0xff] %v8749_v35  ;;  %9351 = vst [vmem:[#allocation26_spill] sm:$0xff] %v8751_v24  ;;  %v8761_v45 = vpop.f32.mrb[63].mxu0  ;;  %v8763_v36 = vpop.f32.mrb[63].mxu1  ;;  %v9358_v35 = vsub.s32 3, %v9352_v53  ;;  %v3314_v24 = vadd.f32 %v8647_v58, %v8759_v15 }
 0x93b   :  { %9355 = vst [vmem:[#allocation3_spill] sm:$0xff] %v8761_v45  ;;  %9356 = vst [vmem:[#allocation27_spill] sm:$0xff] %v8763_v36  ;;  %v8767_v20 = vrot.slane %v6230_v55, %v9357_v37 }
 0x93c   :  { %v8771_v51 = vrot.slane %v6230_v55, %v9358_v35 }
 0x93d   :  { %v3243_v48 = vadd.f32 %v8649_v60, %v8767_v20 }
 0x93e   :  { %v3316_v36 = vadd.f32 %v8651_v57, %v8771_v51 }
 0x93f   :  { %v3615_v45 = vpop.f32.mrb[64].mxu0  ;;  %v3656_v18 = vpop.f32.mrb[64].mxu1 }
 0x940   :  { %v3663_v37 = vadd.f32 %v3615_v45, %v3241_v12  ;;  %v3665_v26 = vadd.f32 %v3656_v18, %v3314_v24  ;;  %v3617_v25 = vpop.f32.mrb[65].mxu0  ;;  %v3658_v53 = vpop.f32.mrb[65].mxu1 }
 0x941   :  { %v3664_v35 = vadd.f32 %v3617_v25, %v3243_v48  ;;  %v3666_v55 = vadd.f32 %v3658_v53, %v3316_v36  ;;  %v3619_v23 = vpop.f32.mrb[66].mxu0  ;;  %v3660_v21 = vpop.f32.mrb[66].mxu1  ;;  %v3247_v53 = vadd.f32 %v8657_v63, %v8767_v20 }
 0x942   :  { %v6331_v54 = vmul.f32 -1.442695, %v3663_v37  ;;  %v3620_v6 = vpop.f32.mrb[67].mxu0  ;;  %v3661_v2 = vpop.f32.mrb[67].mxu1  ;;  %v3318_v37 = vadd.f32 %v8655_v62, %v8759_v15 }
 0x943   :  { %v6332_v58 = vmul.f32 -1.442695, %v3664_v35  ;;  %v6333_v60 = vmul.f32 -1.442695, %v3666_v55  ;;  %v3320_v35 = vadd.f32 %v8659_v0, %v8771_v51 }
 0x944   :  { %7242 = vpow2.f32 %v6331_v54 }
 0x945   :  { %7244 = vpow2.f32 %v6332_v58 }
 0x946   :  { %7246 = vpow2.f32 %v6333_v60 }
 0x947   :  { %7248 = vtanh.f32 %v3665_v26 }
 0x94e   :  { %v7243_v8 = vpop.eup %7242 }
 0x94f   :  { %v7245_v27 = vpop.eup %7244  ;;  %v3670_v57 = vadd.f32 1.0, %v7243_v8 }
 0x950   :  { %v3676_v45 = vadd.f32 1.0, %v7245_v27  ;;  %v7247_v18 = vpop.eup %7246 }
 0x951   :  { %7250 = vrcp.f32 %v3670_v57  ;;  %v7249_v25 = vpop.eup %7248  ;;  %v3683_v36 = vadd.f32 1.0, %v7247_v18 }
 0x952   :  { %7252 = vrcp.f32 %v3676_v45 }
 0x953   :  { %7254 = vrcp.f32 %v3683_v36 }
 0x95b   :  { %v7251_v24 = vpop.eup %7250 }
 0x95c   :  { %v7253_v23 = vpop.eup %7252  ;;  %v3687_v21 = vmul.f32 %v7251_v24, %v7249_v25 }
 0x95d   :  { %v3686_v6 = vmul.f32 0.0, %v7253_v23  ;;  %v7255_v12 = vpop.eup %7254 }
 0x95f   :  { %v8781_v2 = vadd.f32 %v3687_v21, %v3686_v6 }
 0x961   :  { %7256 = vtanh.f32 %v8781_v2 }
 0x96b   :  { %v7257_v48 = vpop.eup %7256 }
 0x96c   :  { %v3690_v8 = vmul.f32 %v7257_v48, %v7255_v12 }
 0x96e   :  { %v3692_v26 = vadd.f32 %v3690_v8, %v8430_v31  ;;  %v3698_v27 = vpack.c.bf16 %v3690_v8, %v3690_v8  ;;  %v3245_v31 = vadd.f32 %v8653_v42, %v8755_v49 }
 0x970   :  { %3693 = vst [vmem:[%s9271_s4] sm:$0xff] %v3692_v26  ;;  %3924 = vmatmul.mubr.bf16.vlgmr.msra.gmra.mrb[68].mxu0 %v3698_v27  ;;  %3965 = vmatmul.mubr.bf16.vlgmr.msra.gmra.mrb[68].mxu1 %v3698_v27 }
 0x971   :  { %4202 = vmatpush1.bf16.msra.mxu0 %v8459_v59  ;;  %4243 = vmatpush1.bf16.msra.mxu1 %v8464_v5 }
 0x972   :  { %4203 = vmatprep.subr.bf16.mxu0 %v8473_v14  ;;  %4244 = vmatprep.subr.bf16.mxu1 %v8478_v3 }
 0x973   :  { %4233 = vmatprep.mubr.bf16.mxu0 %v9305_v17  ;;  %4274 = vmatprep.mubr.bf16.mxu1 %v9305_v17 }
 0x975   :  { %4204 = vmatpush1.bf16.msra.mxu0 %v8483_v29  ;;  %4245 = vmatpush1.bf16.msra.mxu1 %v8488_v19 }
 0x976   :  { %4205 = vmatprep.subr.bf16.mxu0 %v8497_v44  ;;  %4246 = vmatprep.subr.bf16.mxu1 %v8502_v56 }
 0x979   :  { %4206 = vmatpush1.bf16.msra.mxu0 %v8507_v1  ;;  %4247 = vmatpush1.bf16.msra.mxu1 %v8512_v33 }
 0x97a   :  { %4207 = vmatprep.subr.bf16.mxu0 %v8521_v32  ;;  %4248 = vmatprep.subr.bf16.mxu1 %v8526_v34 }
 0x97d   :  { %4208 = vmatpush1.bf16.msra.mxu0 %v8531_v38  ;;  %4249 = vmatpush1.bf16.msra.mxu1 %v8536_v39 }
 0x97e   :  { %4209 = vmatprep.subr.bf16.mxu0 %v8545_v40  ;;  %4250 = vmatprep.subr.bf16.mxu1 %v8550_v41 }
 0x981   :  { %4210 = vmatpush1.bf16.msra.mxu0 %v8555_v52  ;;  %4251 = vmatpush1.bf16.msra.mxu1 %v8560_v7 }
 0x982   :  { %4211 = vmatprep.subr.bf16.mxu0 %v8569_v10  ;;  %4252 = vmatprep.subr.bf16.mxu1 %v8574_v11 }
 0x985   :  { %4212 = vmatpush1.bf16.msra.mxu0 %v8579_v13  ;;  %4253 = vmatpush1.bf16.msra.mxu1 %v8584_v61 }
 0x986   :  { %4213 = vmatprep.subr.bf16.mxu0 %v8593_v4  ;;  %4254 = vmatprep.subr.bf16.mxu1 %v8598_v30 }
 0x989   :  { %4214 = vmatpush1.bf16.msra.mxu0 %v8603_v16  ;;  %4255 = vmatpush1.bf16.msra.mxu1 %v8608_v9 }
 0x98a   :  { %4215 = vmatprep.subr.bf16.mxu0 %v8615_v22  ;;  %4256 = vmatprep.subr.bf16.mxu1 %v8632_v47 }
 0x98d   :  { %4216 = vmatpush1.bf16.msra.mxu0 %v8622_v43  ;;  %4257 = vmatpush1.bf16.msra.mxu1 %v8627_v46 }
 0x98e   :  { %4511 = vmatprep.subr.bf16.mxu0 %v8449_v28  ;;  %4552 = vmatprep.subr.bf16.mxu1 %v8454_v50 }
 0xa43   :  { %v3925_v55 = vpop.f32.mrb[68].mxu0  ;;  %v3966_v54 = vpop.f32.mrb[68].mxu1 }
 0xa44   :  { %v3973_v58 = vadd.f32 %v3925_v55, %v3245_v31  ;;  %v3975_v60 = vadd.f32 %v3966_v54, %v3318_v37  ;;  %v3927_v57 = vpop.f32.mrb[69].mxu0  ;;  %v3968_v28 = vpop.f32.mrb[69].mxu1 }
 0xa45   :  { %v3974_v45 = vadd.f32 %v3927_v57, %v3247_v53  ;;  %v3976_v50 = vadd.f32 %v3968_v28, %v3320_v35  ;;  %v3929_v18 = vpop.f32.mrb[70].mxu0  ;;  %v3970_v25 = vpop.f32.mrb[70].mxu1 }
 0xa46   :  { %v6398_v42 = vmul.f32 -1.442695, %v3973_v58  ;;  %v3930_v24 = vpop.f32.mrb[71].mxu0  ;;  %v3971_v23 = vpop.f32.mrb[71].mxu1  ;;  %v9359_v58 = vld [vmem:[#allocation4_spill] sm:$0xff] }
 0xa47   :  { %v6399_v62 = vmul.f32 -1.442695, %v3974_v45  ;;  %v6400_v63 = vmul.f32 -1.442695, %v3976_v50  ;;  %v6470_v23 = vld [vmem:[%s9271_s4 + $0x10] sm:$0xff] }
 0xa48   :  { %7258 = vpow2.f32 %v6398_v42 }
 0xa49   :  { %7260 = vpow2.f32 %v6399_v62 }
 0xa4a   :  { %7262 = vpow2.f32 %v6400_v63 }
 0xa4b   :  { %7264 = vtanh.f32 %v3975_v60 }
 0xa52   :  { %v7259_v21 = vpop.eup %7258 }
 0xa53   :  { %v7261_v36 = vpop.eup %7260  ;;  %v3980_v0 = vadd.f32 1.0, %v7259_v21  ;;  %v8893_v21 = vld [vmem:[%s9268_s2 + $0x104] ss:$16 sps:$4 sm:$0xff]  }
 0xa54   :  { %v3986_v6 = vadd.f32 1.0, %v7261_v36  ;;  %v7263_v12 = vpop.eup %7262  ;;  %v8898_v36 = vld [vmem:[%s9268_s2 + $0x10c] ss:$16 sps:$4 sm:$0xff]  }
 0xa55   :  { %7266 = vrcp.f32 %v3980_v0  ;;  %v7265_v48 = vpop.eup %7264  ;;  %v3993_v31 = vadd.f32 1.0, %v7263_v12  ;;  %v8903_v0 = vld [vmem:[%s9268_s2 + $0x100] ss:$16 sps:$4 sm:$0xff]   ;;  %v8917_v12 = vld [vmem:[%s9268_s2 + $0x124] ss:$16 sps:$4 sm:$0xff]  }
 0xa56   :  { %7268 = vrcp.f32 %v3986_v6  ;;  %v8908_v6 = vld [vmem:[%s9268_s2 + $0x108] ss:$16 sps:$4 sm:$0xff]  }
 0xa57   :  { %7270 = vrcp.f32 %v3993_v31  ;;  %v8946_v31 = vld [vmem:[%s9268_s2 + $0x14c] ss:$16 sps:$4 sm:$0xff]  }
 0xa5f   :  { %v7267_v8 = vpop.eup %7266 }
 0xa60   :  { %v7269_v26 = vpop.eup %7268  ;;  %v3997_v27 = vmul.f32 %v7267_v8, %v7265_v48  ;;  %v8922_v48 = vld [vmem:[%s9268_s2 + $0x12c] ss:$16 sps:$4 sm:$0xff]   ;;  %v8927_v8 = vld [vmem:[%s9268_s2 + $0x120] ss:$16 sps:$4 sm:$0xff]  }
 0xa61   :  { %v3996_v37 = vmul.f32 %v7269_v26, %v8781_v2  ;;  %v7271_v35 = vpop.eup %7270  ;;  %v8932_v26 = vld [vmem:[%s9268_s2 + $0x128] ss:$16 sps:$4 sm:$0xff]  }
 0xa63   :  { %v8831_v53 = vadd.f32 %v3997_v27, %v3996_v37  ;;  %v8941_v27 = vld [vmem:[%s9268_s2 + $0x144] ss:$16 sps:$4 sm:$0xff]   ;;  %v8951_v37 = vld [vmem:[%s9268_s2 + $0x140] ss:$16 sps:$4 sm:$0xff]  }
 0xa65   :  { %7272 = vtanh.f32 %v8831_v53 }
 0xa6f   :  { %v7273_v55 = vpop.eup %7272 }
 0xa70   :  { %v4000_v54 = vmul.f32 %v7273_v55, %v7271_v35  ;;  %v8965_v35 = vld [vmem:[%s9268_s2 + $0x164] ss:$16 sps:$4 sm:$0xff]   ;;  %v8970_v55 = vld [vmem:[%s9268_s2 + $0x16c] ss:$16 sps:$4 sm:$0xff]  }
 0xa72   :  { %v4002_v60 = vadd.f32 %v4000_v54, %v9359_v58  ;;  %v4008_v57 = vpack.c.bf16 %v4000_v54, %v4000_v54  ;;  %v8975_v54 = vld [vmem:[%s9268_s2 + $0x160] ss:$16 sps:$4 sm:$0xff]   ;;  %v8980_v58 = vld [vmem:[%s9268_s2 + $0x168] ss:$16 sps:$4 sm:$0xff]  }
 0xa74   :  { %6402 = vst [vmem:[%s9271_s4 + $0x8] sm:$0xff] %v4002_v60  ;;  %4234 = vmatmul.mubr.bf16.vlgmr.msra.gmra.mrb[72].mxu0 %v4008_v57  ;;  %4275 = vmatmul.mubr.bf16.vlgmr.msra.gmra.mrb[72].mxu1 %v4008_v57  ;;  %v8989_v60 = vld [vmem:[%s9268_s2 + $0x184] ss:$16 sps:$4 sm:$0xff]   ;;  %v8994_v57 = vld [vmem:[%s9268_s2 + $0x18c] ss:$16 sps:$4 sm:$0xff]  }
 0xa75   :  { %4512 = vmatpush1.bf16.msra.mxu0 %v8459_v59  ;;  %4553 = vmatpush1.bf16.msra.mxu1 %v8464_v5  ;;  %v9360_v59 = vld [vmem:[#allocation5_spill] sm:$0xff] }
 0xa76   :  { %4513 = vmatprep.subr.bf16.mxu0 %v8473_v14  ;;  %4554 = vmatprep.subr.bf16.mxu1 %v8478_v3  ;;  %v3251_v5 = vadd.f32 %v9360_v59, %v8755_v49  ;;  %v9361_v14 = vld [vmem:[#allocation6_spill] sm:$0xff]  ;;  %v8999_v59 = vld [vmem:[%s9268_s2 + $0x180] ss:$16 sps:$4 sm:$0xff]  }
 0xa77   :  { %4543 = vmatprep.mubr.bf16.mxu0 %v9305_v17  ;;  %4584 = vmatprep.mubr.bf16.mxu1 %v9305_v17  ;;  %v3324_v3 = vadd.f32 %v9361_v14, %v8759_v15  ;;  %v9011_v14 = vld [vmem:[%s9268_s2 + $0x1a4] ss:$16 sps:$4 sm:$0xff]  }
 0xa79   :  { %4514 = vmatpush1.bf16.msra.mxu0 %v8483_v29  ;;  %4555 = vmatpush1.bf16.msra.mxu1 %v8488_v19  ;;  %v9362_v29 = vld [vmem:[#allocation7_spill] sm:$0xff] }
 0xa7a   :  { %4515 = vmatprep.subr.bf16.mxu0 %v8497_v44  ;;  %4556 = vmatprep.subr.bf16.mxu1 %v8502_v56  ;;  %v3253_v19 = vadd.f32 %v9362_v29, %v8767_v20  ;;  %v9363_v44 = vld [vmem:[#allocation8_spill] sm:$0xff] }
 0xa7b   :  { %v3326_v56 = vadd.f32 %v9363_v44, %v8771_v51  ;;  %v9023_v29 = vld [vmem:[%s9268_s2 + $0x1a8] ss:$16 sps:$4 sm:$0xff]   ;;  %v9034_v44 = vld [vmem:[%s9268_s2 + $0x1c4] ss:$16 sps:$4 sm:$0xff]  }
 0xa7d   :  { %4516 = vmatpush1.bf16.msra.mxu0 %v8507_v1  ;;  %4557 = vmatpush1.bf16.msra.mxu1 %v8512_v33 }
 0xa7e   :  { %4517 = vmatprep.subr.bf16.mxu0 %v8521_v32  ;;  %4558 = vmatprep.subr.bf16.mxu1 %v8526_v34 }
 0xa81   :  { %4518 = vmatpush1.bf16.msra.mxu0 %v8531_v38  ;;  %4559 = vmatpush1.bf16.msra.mxu1 %v8536_v39 }
 0xa82   :  { %4519 = vmatprep.subr.bf16.mxu0 %v8545_v40  ;;  %4560 = vmatprep.subr.bf16.mxu1 %v8550_v41 }
 0xa85   :  { %4520 = vmatpush1.bf16.msra.mxu0 %v8555_v52  ;;  %4561 = vmatpush1.bf16.msra.mxu1 %v8560_v7 }
 0xa86   :  { %4521 = vmatprep.subr.bf16.mxu0 %v8569_v10  ;;  %4562 = vmatprep.subr.bf16.mxu1 %v8574_v11 }
 0xa89   :  { %4522 = vmatpush1.bf16.msra.mxu0 %v8579_v13  ;;  %4563 = vmatpush1.bf16.msra.mxu1 %v8584_v61 }
 0xa8a   :  { %4523 = vmatprep.subr.bf16.mxu0 %v8593_v4  ;;  %4564 = vmatprep.subr.bf16.mxu1 %v8598_v30 }
 0xa8d   :  { %4524 = vmatpush1.bf16.msra.mxu0 %v8603_v16  ;;  %4565 = vmatpush1.bf16.msra.mxu1 %v8608_v9 }
 0xa8e   :  { %4525 = vmatprep.subr.bf16.mxu0 %v8615_v22  ;;  %4566 = vmatprep.subr.bf16.mxu1 %v8632_v47 }
 0xa91   :  { %4526 = vmatpush1.bf16.msra.mxu0 %v8622_v43  ;;  %4567 = vmatpush1.bf16.msra.mxu1 %v8627_v46 }
 0xa92   :  { %4821 = vmatprep.subr.bf16.mxu0 %v8893_v21  ;;  %4862 = vmatprep.subr.bf16.mxu1 %v8898_v36 }
 0xb47   :  { %v4235_v1 = vpop.f32.mrb[72].mxu0  ;;  %v4276_v33 = vpop.f32.mrb[72].mxu1 }
 0xb48   :  { %v4283_v32 = vadd.f32 %v4235_v1, %v3251_v5  ;;  %v4285_v34 = vadd.f32 %v4276_v33, %v3324_v3  ;;  %v4237_v38 = vpop.f32.mrb[73].mxu0  ;;  %v4278_v39 = vpop.f32.mrb[73].mxu1  ;;  %v9004_v5 = vld [vmem:[%s9268_s2 + $0x188] ss:$16 sps:$4 sm:$0xff]   ;;  %v9018_v3 = vld [vmem:[%s9268_s2 + $0x1a0] ss:$16 sps:$4 sm:$0xff]  }
 0xb49   :  { %v4284_v40 = vadd.f32 %v4237_v38, %v3253_v19  ;;  %v4286_v41 = vadd.f32 %v4278_v39, %v3326_v56  ;;  %v4239_v52 = vpop.f32.mrb[74].mxu0  ;;  %v4280_v7 = vpop.f32.mrb[74].mxu1  ;;  %v9028_v19 = vld [vmem:[%s9268_s2 + $0x1ac] ss:$16 sps:$4 sm:$0xff]   ;;  %v9047_v1 = vld [vmem:[%s9268_s2 + $0x1c0] ss:$16 sps:$4 sm:$0xff]  }
 0xb4a   :  { %v6467_v10 = vmul.f32 -1.442695, %v4283_v32  ;;  %v4240_v11 = vpop.f32.mrb[75].mxu0  ;;  %v4281_v13 = vpop.f32.mrb[75].mxu1  ;;  %v9039_v56 = vld [vmem:[%s9268_s2 + $0x1cc] ss:$16 sps:$4 sm:$0xff]  }
 0xb4b   :  { %v6468_v61 = vmul.f32 -1.442695, %v4284_v40  ;;  %v6469_v4 = vmul.f32 -1.442695, %v4286_v41  ;;  %v9052_v33 = vld [vmem:[%s9268_s2 + $0x1c8] ss:$16 sps:$4 sm:$0xff]  }
 0xb4c   :  { %7274 = vpow2.f32 %v6467_v10  ;;  %v9059_v32 = vld [vmem:[%s9268_s2 + $0x1e4] ss:$16 sps:$4 sm:$0xff]   ;;  %v9071_v38 = vld [vmem:[%s9268_s2 + $0x1e0] ss:$16 sps:$4 sm:$0xff]   ;;  %v9076_v39 = vld [vmem:[%s9268_s2 + $0x1e8] ss:$16 sps:$4 sm:$0xff]  }
 0xb4d   :  { %7276 = vpow2.f32 %v6468_v61  ;;  %v9364_v40 = vld [vmem:[#allocation9_spill] sm:$0xff]  ;;  %v9365_v52 = vld [vmem:[#allocation10_spill] sm:$0xff]  ;;  %v9366_v10 = vld [vmem:[#allocation11_spill] sm:$0xff] }
 0xb4e   :  { %7278 = vpow2.f32 %v6469_v4  ;;  %v3255_v41 = vadd.f32 %v9364_v40, %v8755_v49  ;;  %v3328_v7 = vadd.f32 %v9365_v52, %v8759_v15  ;;  %v3257_v11 = vadd.f32 %v9366_v10, %v8767_v20  ;;  %v9367_v13 = vld [vmem:[#allocation12_spill] sm:$0xff] }
 0xb4f   :  { %7280 = vtanh.f32 %v4285_v34  ;;  %v9064_v34 = vld [vmem:[%s9268_s2 + $0x1ec] ss:$16 sps:$4 sm:$0xff]   ;;  %v3330_v61 = vadd.f32 %v9367_v13, %v8771_v51 }
 0xb56   :  { %v7275_v30 = vpop.eup %7274 }
 0xb57   :  { %v7277_v16 = vpop.eup %7276  ;;  %v4290_v9 = vadd.f32 1.0, %v7275_v30 }
 0xb58   :  { %v4296_v22 = vadd.f32 1.0, %v7277_v16  ;;  %v7279_v43 = vpop.eup %7278 }
 0xb59   :  { %7282 = vrcp.f32 %v4290_v9  ;;  %v7281_v46 = vpop.eup %7280  ;;  %v4303_v45 = vadd.f32 1.0, %v7279_v43 }
 0xb5a   :  { %7284 = vrcp.f32 %v4296_v22 }
 0xb5b   :  { %7286 = vrcp.f32 %v4303_v45 }
 0xb63   :  { %v7283_v47 = vpop.eup %7282 }
 0xb64   :  { %v7285_v2 = vpop.eup %7284  ;;  %v4307_v28 = vmul.f32 %v7283_v47, %v7281_v46 }
 0xb65   :  { %v4306_v50 = vmul.f32 %v7285_v2, %v8831_v53  ;;  %v7287_v25 = vpop.eup %7286  ;;  %v8956_v53 = vld [vmem:[%s9268_s2 + $0x148] ss:$16 sps:$4 sm:$0xff]  }
 0xb67   :  { %v8879_v18 = vadd.f32 %v4307_v28, %v4306_v50 }
 0xb69   :  { %7288 = vtanh.f32 %v8879_v18 }
 0xb73   :  { %v7289_v42 = vpop.eup %7288 }
 0xb74   :  { %v4310_v24 = vmul.f32 %v7289_v42, %v7287_v25 }
 0xb76   :  { %v4312_v62 = vadd.f32 %v6470_v23, %v4310_v24  ;;  %v4318_v63 = vpack.c.bf16 %v4310_v24, %v4310_v24 }
 0xb78   :  { %6471 = vst [vmem:[%s9271_s4 + $0x10] sm:$0xff] %v4312_v62  ;;  %4544 = vmatmul.mubr.bf16.vlgmr.msra.gmra.mrb[76].mxu0 %v4318_v63  ;;  %4585 = vmatmul.mubr.bf16.vlgmr.msra.gmra.mrb[76].mxu1 %v4318_v63 }
 0xb79   :  { %4853 = vmatprep.mubr.bf16.mxu0 %v9305_v17  ;;  %4894 = vmatprep.mubr.bf16.mxu1 %v9305_v17 }
 0xb7a   :  { %4822 = vmatpush1.bf16.msra.mxu0 %v8903_v0  ;;  %4863 = vmatpush1.bf16.msra.mxu1 %v8908_v6 }
 0xb7b   :  { %4823 = vmatprep.subr.bf16.mxu0 %v8917_v12  ;;  %4864 = vmatprep.subr.bf16.mxu1 %v8922_v48 }
 0xb7e   :  { %4824 = vmatpush1.bf16.msra.mxu0 %v8927_v8  ;;  %4865 = vmatpush1.bf16.msra.mxu1 %v8932_v26 }
 0xb7f   :  { %4825 = vmatprep.subr.bf16.mxu0 %v8941_v27  ;;  %4866 = vmatprep.subr.bf16.mxu1 %v8946_v31 }
 0xb82   :  { %4826 = vmatpush1.bf16.msra.mxu0 %v8951_v37  ;;  %4867 = vmatpush1.bf16.msra.mxu1 %v8956_v53 }
 0xb83   :  { %4827 = vmatprep.subr.bf16.mxu0 %v8965_v35  ;;  %4868 = vmatprep.subr.bf16.mxu1 %v8970_v55 }
 0xb86   :  { %4828 = vmatpush1.bf16.msra.mxu0 %v8975_v54  ;;  %4869 = vmatpush1.bf16.msra.mxu1 %v8980_v58 }
 0xb87   :  { %4829 = vmatprep.subr.bf16.mxu0 %v8989_v60  ;;  %4870 = vmatprep.subr.bf16.mxu1 %v8994_v57 }
 0xb8a   :  { %4830 = vmatpush1.bf16.msra.mxu0 %v8999_v59  ;;  %4871 = vmatpush1.bf16.msra.mxu1 %v9004_v5 }
 0xb8b   :  { %4831 = vmatprep.subr.bf16.mxu0 %v9011_v14  ;;  %4872 = vmatprep.subr.bf16.mxu1 %v9028_v19 }
 0xb8e   :  { %4832 = vmatpush1.bf16.msra.mxu0 %v9018_v3  ;;  %4873 = vmatpush1.bf16.msra.mxu1 %v9023_v29 }
 0xb8f   :  { %4833 = vmatprep.subr.bf16.mxu0 %v9034_v44  ;;  %4874 = vmatprep.subr.bf16.mxu1 %v9039_v56 }
 0xb92   :  { %4834 = vmatpush1.bf16.msra.mxu0 %v9047_v1  ;;  %4875 = vmatpush1.bf16.msra.mxu1 %v9052_v33 }
 0xb93   :  { %4835 = vmatprep.subr.bf16.mxu0 %v9059_v32  ;;  %4876 = vmatprep.subr.bf16.mxu1 %v9064_v34 }
 0xb96   :  { %4836 = vmatpush1.bf16.msra.mxu0 %v9071_v38  ;;  %4877 = vmatpush1.bf16.msra.mxu1 %v9076_v39 }
 0xb97   :  { %5131 = vmatprep.subr.bf16.mxu0 %v8893_v21  ;;  %5172 = vmatprep.subr.bf16.mxu1 %v8898_v36 }
 0xc4b   :  { %v4545_v4 = vpop.f32.mrb[76].mxu0  ;;  %v4586_v30 = vpop.f32.mrb[76].mxu1 }
 0xc4c   :  { %v4593_v16 = vadd.f32 %v4545_v4, %v3255_v41  ;;  %v4595_v9 = vadd.f32 %v4586_v30, %v3328_v7  ;;  %v4547_v22 = vpop.f32.mrb[77].mxu0  ;;  %v4588_v43 = vpop.f32.mrb[77].mxu1 }
 0xc4d   :  { %v4594_v46 = vadd.f32 %v4547_v22, %v3257_v11  ;;  %v4596_v47 = vadd.f32 %v4588_v43, %v3330_v61  ;;  %v4549_v2 = vpop.f32.mrb[78].mxu0  ;;  %v4590_v28 = vpop.f32.mrb[78].mxu1 }
 0xc4e   :  { %v6536_v45 = vmul.f32 -1.442695, %v4593_v16  ;;  %v4550_v50 = vpop.f32.mrb[79].mxu0  ;;  %v4591_v25 = vpop.f32.mrb[79].mxu1  ;;  %v9369_v2 = vld [vmem:[#allocation14_spill] sm:$0xff] }
 0xc4f   :  { %v6537_v42 = vmul.f32 -1.442695, %v4594_v46  ;;  %v6538_v24 = vmul.f32 -1.442695, %v4596_v47  ;;  %v3334_v28 = vadd.f32 %v9369_v2, %v8759_v15  ;;  %v9371_v25 = vld [vmem:[#allocation16_spill] sm:$0xff] }
 0xc50   :  { %7290 = vpow2.f32 %v6536_v45  ;;  %v9370_v45 = vld [vmem:[#allocation15_spill] sm:$0xff] }
 0xc51   :  { %7292 = vpow2.f32 %v6537_v42  ;;  %v3263_v50 = vadd.f32 %v9370_v45, %v8767_v20  ;;  %v3336_v42 = vadd.f32 %v9371_v25, %v8771_v51 }
 0xc52   :  { %7294 = vpow2.f32 %v6538_v24 }
 0xc53   :  { %7296 = vtanh.f32 %v4595_v9  ;;  %v6539_v9 = vld [vmem:[%s9271_s4 + $0x18] sm:$0xff] }
 0xc5a   :  { %v7291_v23 = vpop.eup %7290 }
 0xc5b   :  { %v7293_v62 = vpop.eup %7292  ;;  %v4600_v63 = vadd.f32 1.0, %v7291_v23 }
 0xc5c   :  { %v4606_v40 = vadd.f32 1.0, %v7293_v62  ;;  %v7295_v41 = vpop.eup %7294 }
 0xc5d   :  { %7298 = vrcp.f32 %v4600_v63  ;;  %v7297_v52 = vpop.eup %7296  ;;  %v4613_v13 = vadd.f32 1.0, %v7295_v41 }
 0xc5e   :  { %7300 = vrcp.f32 %v4606_v40 }
 0xc5f   :  { %7302 = vrcp.f32 %v4613_v13 }
 0xc67   :  { %v7299_v7 = vpop.eup %7298 }
 0xc68   :  { %v7301_v10 = vpop.eup %7300  ;;  %v4617_v11 = vmul.f32 %v7299_v7, %v7297_v52 }
 0xc69   :  { %v4616_v61 = vmul.f32 %v7301_v10, %v8879_v18  ;;  %v7303_v30 = vpop.eup %7302  ;;  %v9368_v18 = vld [vmem:[#allocation13_spill] sm:$0xff] }
 0xc6a   :  { %v3261_v47 = vadd.f32 %v9368_v18, %v8755_v49 }
 0xc6b   :  { %v9093_v4 = vadd.f32 %v4617_v11, %v4616_v61 }
 0xc6d   :  { %7304 = vtanh.f32 %v9093_v4 }
 0xc77   :  { %v7305_v16 = vpop.eup %7304 }
 0xc78   :  { %v4620_v22 = vmul.f32 %v7305_v16, %v7303_v30 }
 0xc7a   :  { %v4622_v43 = vadd.f32 %v6539_v9, %v4620_v22  ;;  %v4628_v46 = vpack.c.bf16 %v4620_v22, %v4620_v22 }
 0xc7c   :  { %6540 = vst [vmem:[%s9271_s4 + $0x18] sm:$0xff] %v4622_v43  ;;  %4854 = vmatmul.mubr.bf16.vlgmr.msra.gmra.mrb[80].mxu0 %v4628_v46  ;;  %4895 = vmatmul.mubr.bf16.vlgmr.msra.gmra.mrb[80].mxu1 %v4628_v46 }
 0xc7d   :  { %5132 = vmatpush1.bf16.msra.mxu0 %v8903_v0  ;;  %5173 = vmatpush1.bf16.msra.mxu1 %v8908_v6 }
 0xc7e   :  { %5133 = vmatprep.subr.bf16.mxu0 %v8917_v12  ;;  %5174 = vmatprep.subr.bf16.mxu1 %v8922_v48 }
 0xc7f   :  { %5163 = vmatprep.mubr.bf16.mxu0 %v9305_v17  ;;  %5204 = vmatprep.mubr.bf16.mxu1 %v9305_v17 }
 0xc81   :  { %5134 = vmatpush1.bf16.msra.mxu0 %v8927_v8  ;;  %5175 = vmatpush1.bf16.msra.mxu1 %v8932_v26 }
 0xc82   :  { %5135 = vmatprep.subr.bf16.mxu0 %v8941_v27  ;;  %5176 = vmatprep.subr.bf16.mxu1 %v8946_v31 }
 0xc85   :  { %5136 = vmatpush1.bf16.msra.mxu0 %v8951_v37  ;;  %5177 = vmatpush1.bf16.msra.mxu1 %v8956_v53 }
 0xc86   :  { %5137 = vmatprep.subr.bf16.mxu0 %v8965_v35  ;;  %5178 = vmatprep.subr.bf16.mxu1 %v8970_v55 }
 0xc89   :  { %5138 = vmatpush1.bf16.msra.mxu0 %v8975_v54  ;;  %5179 = vmatpush1.bf16.msra.mxu1 %v8980_v58 }
 0xc8a   :  { %5139 = vmatprep.subr.bf16.mxu0 %v8989_v60  ;;  %5180 = vmatprep.subr.bf16.mxu1 %v8994_v57 }
 0xc8d   :  { %5140 = vmatpush1.bf16.msra.mxu0 %v8999_v59  ;;  %5181 = vmatpush1.bf16.msra.mxu1 %v9004_v5 }
 0xc8e   :  { %5141 = vmatprep.subr.bf16.mxu0 %v9011_v14  ;;  %5182 = vmatprep.subr.bf16.mxu1 %v9028_v19 }
 0xc91   :  { %5142 = vmatpush1.bf16.msra.mxu0 %v9018_v3  ;;  %5183 = vmatpush1.bf16.msra.mxu1 %v9023_v29 }
 0xc92   :  { %5143 = vmatprep.subr.bf16.mxu0 %v9034_v44  ;;  %5184 = vmatprep.subr.bf16.mxu1 %v9039_v56 }
 0xc95   :  { %5144 = vmatpush1.bf16.msra.mxu0 %v9047_v1  ;;  %5185 = vmatpush1.bf16.msra.mxu1 %v9052_v33 }
 0xc96   :  { %5145 = vmatprep.subr.bf16.mxu0 %v9059_v32  ;;  %5186 = vmatprep.subr.bf16.mxu1 %v9064_v34 }
 0xc99   :  { %5146 = vmatpush1.bf16.msra.mxu0 %v9071_v38  ;;  %5187 = vmatpush1.bf16.msra.mxu1 %v9076_v39 }
 0xc9a   :  { %5441 = vmatprep.subr.bf16.mxu0 %v8893_v21  ;;  %5482 = vmatprep.subr.bf16.mxu1 %v8898_v36 }
 0xd4f   :  { %v4855_v24 = vpop.f32.mrb[80].mxu0  ;;  %v4896_v23 = vpop.f32.mrb[80].mxu1 }
 0xd50   :  { %v4903_v62 = vadd.f32 %v4855_v24, %v3261_v47  ;;  %v4905_v63 = vadd.f32 %v4896_v23, %v3334_v28  ;;  %v4857_v40 = vpop.f32.mrb[81].mxu0  ;;  %v4898_v41 = vpop.f32.mrb[81].mxu1 }
 0xd51   :  { %v4904_v52 = vadd.f32 %v4857_v40, %v3263_v50  ;;  %v4906_v7 = vadd.f32 %v4898_v41, %v3336_v42  ;;  %v4859_v10 = vpop.f32.mrb[82].mxu0  ;;  %v4900_v11 = vpop.f32.mrb[82].mxu1 }
 0xd52   :  { %v6605_v13 = vmul.f32 -1.442695, %v4903_v62  ;;  %v4860_v61 = vpop.f32.mrb[83].mxu0  ;;  %v4901_v30 = vpop.f32.mrb[83].mxu1  ;;  %v9373_v10 = vld [vmem:[#allocation18_spill] sm:$0xff] }
 0xd53   :  { %v6606_v16 = vmul.f32 -1.442695, %v4904_v52  ;;  %v6607_v22 = vmul.f32 -1.442695, %v4906_v7  ;;  %v3338_v11 = vadd.f32 %v9373_v10, %v8759_v15  ;;  %v9375_v30 = vld [vmem:[#allocation20_spill] sm:$0xff] }
 0xd54   :  { %7306 = vpow2.f32 %v6605_v13  ;;  %v9374_v13 = vld [vmem:[#allocation19_spill] sm:$0xff] }
 0xd55   :  { %7308 = vpow2.f32 %v6606_v16  ;;  %v3267_v61 = vadd.f32 %v9374_v13, %v8767_v20  ;;  %v3340_v16 = vadd.f32 %v9375_v30, %v8771_v51 }
 0xd56   :  { %7310 = vpow2.f32 %v6607_v22 }
 0xd57   :  { %7312 = vtanh.f32 %v4905_v63  ;;  %v6608_v63 = vld [vmem:[%s9271_s4 + $0x20] sm:$0xff] }
 0xd5e   :  { %v7307_v9 = vpop.eup %7306 }
 0xd5f   :  { %v7309_v43 = vpop.eup %7308  ;;  %v4910_v46 = vadd.f32 1.0, %v7307_v9 }
 0xd60   :  { %v4916_v18 = vadd.f32 1.0, %v7309_v43  ;;  %v7311_v47 = vpop.eup %7310 }
 0xd61   :  { %7314 = vrcp.f32 %v4910_v46  ;;  %v7313_v2 = vpop.eup %7312  ;;  %v4923_v25 = vadd.f32 1.0, %v7311_v47 }
 0xd62   :  { %7316 = vrcp.f32 %v4916_v18 }
 0xd63   :  { %7318 = vrcp.f32 %v4923_v25 }
 0xd6b   :  { %v7315_v28 = vpop.eup %7314 }
 0xd6c   :  { %v7317_v45 = vpop.eup %7316  ;;  %v4927_v50 = vmul.f32 %v7315_v28, %v7313_v2 }
 0xd6d   :  { %v4926_v42 = vmul.f32 %v7317_v45, %v9093_v4  ;;  %v7319_v23 = vpop.eup %7318  ;;  %v9372_v4 = vld [vmem:[#allocation17_spill] sm:$0xff] }
 0xd6e   :  { %v3265_v7 = vadd.f32 %v9372_v4, %v8755_v49 }
 0xd6f   :  { %v9145_v24 = vadd.f32 %v4927_v50, %v4926_v42 }
 0xd71   :  { %7320 = vtanh.f32 %v9145_v24 }
 0xd7b   :  { %v7321_v62 = vpop.eup %7320 }
 0xd7c   :  { %v4930_v40 = vmul.f32 %v7321_v62, %v7319_v23 }
 0xd7e   :  { %v4932_v41 = vadd.f32 %v6608_v63, %v4930_v40  ;;  %v4938_v52 = vpack.c.bf16 %v4930_v40, %v4930_v40 }
 0xd80   :  { %6609 = vst [vmem:[%s9271_s4 + $0x20] sm:$0xff] %v4932_v41  ;;  %5164 = vmatmul.mubr.bf16.vlgmr.msra.gmra.mrb[84].mxu0 %v4938_v52  ;;  %5205 = vmatmul.mubr.bf16.vlgmr.msra.gmra.mrb[84].mxu1 %v4938_v52 }
 0xd81   :  { %5442 = vmatpush1.bf16.msra.mxu0 %v8903_v0  ;;  %5483 = vmatpush1.bf16.msra.mxu1 %v8908_v6 }
 0xd82   :  { %5443 = vmatprep.subr.bf16.mxu0 %v8917_v12  ;;  %5484 = vmatprep.subr.bf16.mxu1 %v8922_v48 }
 0xd83   :  { %5473 = vmatprep.mubr.bf16.mxu0 %v9305_v17  ;;  %5514 = vmatprep.mubr.bf16.mxu1 %v9305_v17 }
 0xd85   :  { %5444 = vmatpush1.bf16.msra.mxu0 %v8927_v8  ;;  %5485 = vmatpush1.bf16.msra.mxu1 %v8932_v26 }
 0xd86   :  { %5445 = vmatprep.subr.bf16.mxu0 %v8941_v27  ;;  %5486 = vmatprep.subr.bf16.mxu1 %v8946_v31 }
 0xd89   :  { %5446 = vmatpush1.bf16.msra.mxu0 %v8951_v37  ;;  %5487 = vmatpush1.bf16.msra.mxu1 %v8956_v53 }
 0xd8a   :  { %5447 = vmatprep.subr.bf16.mxu0 %v8965_v35  ;;  %5488 = vmatprep.subr.bf16.mxu1 %v8970_v55 }
 0xd8d   :  { %5448 = vmatpush1.bf16.msra.mxu0 %v8975_v54  ;;  %5489 = vmatpush1.bf16.msra.mxu1 %v8980_v58 }
 0xd8e   :  { %5449 = vmatprep.subr.bf16.mxu0 %v8989_v60  ;;  %5490 = vmatprep.subr.bf16.mxu1 %v8994_v57 }
 0xd91   :  { %5450 = vmatpush1.bf16.msra.mxu0 %v8999_v59  ;;  %5491 = vmatpush1.bf16.msra.mxu1 %v9004_v5 }
 0xd92   :  { %5451 = vmatprep.subr.bf16.mxu0 %v9011_v14  ;;  %5492 = vmatprep.subr.bf16.mxu1 %v9028_v19 }
 0xd95   :  { %5452 = vmatpush1.bf16.msra.mxu0 %v9018_v3  ;;  %5493 = vmatpush1.bf16.msra.mxu1 %v9023_v29 }
 0xd96   :  { %5453 = vmatprep.subr.bf16.mxu0 %v9034_v44  ;;  %5494 = vmatprep.subr.bf16.mxu1 %v9039_v56 }
 0xd99   :  { %5454 = vmatpush1.bf16.msra.mxu0 %v9047_v1  ;;  %5495 = vmatpush1.bf16.msra.mxu1 %v9052_v33 }
 0xd9a   :  { %5455 = vmatprep.subr.bf16.mxu0 %v9059_v32  ;;  %5496 = vmatprep.subr.bf16.mxu1 %v9064_v34 }
 0xd9d   :  { %5456 = vmatpush1.bf16.msra.mxu0 %v9071_v38  ;;  %5497 = vmatpush1.bf16.msra.mxu1 %v9076_v39 }
 0xd9e   :  { %5751 = vmatprep.subr.bf16.mxu0 %v8893_v21  ;;  %5792 = vmatprep.subr.bf16.mxu1 %v8898_v36 }
 0xe53   :  { %v5165_v22 = vpop.f32.mrb[84].mxu0  ;;  %v5206_v9 = vpop.f32.mrb[84].mxu1 }
 0xe54   :  { %v5213_v43 = vadd.f32 %v5165_v22, %v3265_v7  ;;  %v5215_v46 = vadd.f32 %v5206_v9, %v3338_v11  ;;  %v5167_v18 = vpop.f32.mrb[85].mxu0  ;;  %v5208_v21 = vpop.f32.mrb[85].mxu1 }
 0xe55   :  { %v5214_v47 = vadd.f32 %v5167_v18, %v3267_v61  ;;  %v5216_v36 = vadd.f32 %v5208_v21, %v3340_v16  ;;  %v5169_v2 = vpop.f32.mrb[86].mxu0  ;;  %v5210_v28 = vpop.f32.mrb[86].mxu1 }
 0xe56   :  { %v6674_v45 = vmul.f32 -1.442695, %v5213_v43  ;;  %v5170_v50 = vpop.f32.mrb[87].mxu0  ;;  %v5211_v25 = vpop.f32.mrb[87].mxu1  ;;  %v6677_v43 = vld [vmem:[%s9271_s4 + $0x28] sm:$0xff] }
 0xe57   :  { %v6675_v42 = vmul.f32 -1.442695, %v5214_v47  ;;  %v6676_v23 = vmul.f32 -1.442695, %v5216_v36  ;;  %v6746_v50 = vld [vmem:[%s9271_s4 + $0x30] sm:$0xff] }
 0xe58   :  { %7322 = vpow2.f32 %v6674_v45 }
 0xe59   :  { %7324 = vpow2.f32 %v6675_v42 }
 0xe5a   :  { %7326 = vpow2.f32 %v6676_v23  ;;  %v9380_v23 = vld [vmem:[#allocation25_spill] sm:$0xff] }
 0xe5b   :  { %7328 = vtanh.f32 %v5215_v46 }
 0xe62   :  { %v7323_v62 = vpop.eup %7322 }
 0xe63   :  { %v7325_v40 = vpop.eup %7324  ;;  %v5220_v63 = vadd.f32 1.0, %v7323_v62  ;;  %v3275_v62 = vadd.f32 %v9380_v23, %v8755_v49 }
 0xe64   :  { %v5226_v41 = vadd.f32 1.0, %v7325_v40  ;;  %v7327_v52 = vpop.eup %7326  ;;  %v9381_v40 = vld [vmem:[#allocation26_spill] sm:$0xff] }
 0xe65   :  { %7330 = vrcp.f32 %v5220_v63  ;;  %v7329_v4 = vpop.eup %7328  ;;  %v5233_v13 = vadd.f32 1.0, %v7327_v52  ;;  %v3348_v63 = vadd.f32 %v9381_v40, %v8759_v15 }
 0xe66   :  { %7332 = vrcp.f32 %v5226_v41  ;;  %v9382_v41 = vld [vmem:[#allocation3_spill] sm:$0xff] }
 0xe67   :  { %7334 = vrcp.f32 %v5233_v13  ;;  %v3277_v52 = vadd.f32 %v9382_v41, %v8767_v20 }
 0xe6f   :  { %v7331_v7 = vpop.eup %7330 }
 0xe70   :  { %v7333_v10 = vpop.eup %7332  ;;  %v5237_v11 = vmul.f32 %v7331_v7, %v7329_v4  ;;  %v9383_v4 = vld [vmem:[#allocation27_spill] sm:$0xff] }
 0xe71   :  { %v5236_v61 = vmul.f32 %v7333_v10, %v9145_v24  ;;  %v7335_v16 = vpop.eup %7334  ;;  %v3350_v7 = vadd.f32 %v9383_v4, %v8771_v51 }
 0xe73   :  { %v9197_v30 = vadd.f32 %v5237_v11, %v5236_v61 }
 0xe75   :  { %7336 = vtanh.f32 %v9197_v30 }
 0xe7f   :  { %v7337_v22 = vpop.eup %7336 }
 0xe80   :  { %v5240_v9 = vmul.f32 %v7337_v22, %v7335_v16 }
 0xe82   :  { %v5242_v46 = vadd.f32 %v6677_v43, %v5240_v9  ;;  %v5248_v18 = vpack.c.bf16 %v5240_v9, %v5240_v9 }
 0xe84   :  { %6678 = vst [vmem:[%s9271_s4 + $0x28] sm:$0xff] %v5242_v46  ;;  %5474 = vmatmul.mubr.bf16.vlgmr.msra.gmra.mrb[88].mxu0 %v5248_v18  ;;  %5515 = vmatmul.mubr.bf16.vlgmr.msra.gmra.mrb[88].mxu1 %v5248_v18 }
 0xe85   :  { %5752 = vmatpush1.bf16.msra.mxu0 %v8903_v0  ;;  %5793 = vmatpush1.bf16.msra.mxu1 %v8908_v6  ;;  %v9377_v6 = vld [vmem:[#allocation22_spill] sm:$0xff] }
 0xe86   :  { %5753 = vmatprep.subr.bf16.mxu0 %v8917_v12  ;;  %5794 = vmatprep.subr.bf16.mxu1 %v8922_v48  ;;  %v3344_v12 = vadd.f32 %v9377_v6, %v8759_v15  ;;  %v9378_v48 = vld [vmem:[#allocation23_spill] sm:$0xff] }
 0xe87   :  { %5783 = vmatprep.mubr.bf16.mxu0 %v9305_v17  ;;  %5824 = vmatprep.mubr.bf16.mxu1 %v9305_v17  ;;  %v9376_v17 = vld [vmem:[#allocation21_spill] sm:$0xff] }
 0xe88   :  { %v3271_v0 = vadd.f32 %v9376_v17, %v8755_v49 }
 0xe89   :  { %5754 = vmatpush1.bf16.msra.mxu0 %v8927_v8  ;;  %5795 = vmatpush1.bf16.msra.mxu1 %v8932_v26  ;;  %v3273_v8 = vadd.f32 %v9378_v48, %v8767_v20  ;;  %v9379_v26 = vld [vmem:[#allocation24_spill] sm:$0xff] }
 0xe8a   :  { %5755 = vmatprep.subr.bf16.mxu0 %v8941_v27  ;;  %5796 = vmatprep.subr.bf16.mxu1 %v8946_v31  ;;  %v3346_v27 = vadd.f32 %v9379_v26, %v8771_v51 }
 0xe8d   :  { %5756 = vmatpush1.bf16.msra.mxu0 %v8951_v37  ;;  %5797 = vmatpush1.bf16.msra.mxu1 %v8956_v53 }
 0xe8e   :  { %5757 = vmatprep.subr.bf16.mxu0 %v8965_v35  ;;  %5798 = vmatprep.subr.bf16.mxu1 %v8970_v55 }
 0xe91   :  { %5758 = vmatpush1.bf16.msra.mxu0 %v8975_v54  ;;  %5799 = vmatpush1.bf16.msra.mxu1 %v8980_v58 }
 0xe92   :  { %5759 = vmatprep.subr.bf16.mxu0 %v8989_v60  ;;  %5800 = vmatprep.subr.bf16.mxu1 %v8994_v57 }
 0xe95   :  { %5760 = vmatpush1.bf16.msra.mxu0 %v8999_v59  ;;  %5801 = vmatpush1.bf16.msra.mxu1 %v9004_v5 }
 0xe96   :  { %5761 = vmatprep.subr.bf16.mxu0 %v9011_v14  ;;  %5802 = vmatprep.subr.bf16.mxu1 %v9028_v19 }
 0xe99   :  { %5762 = vmatpush1.bf16.msra.mxu0 %v9018_v3  ;;  %5803 = vmatpush1.bf16.msra.mxu1 %v9023_v29 }
 0xe9a   :  { %5763 = vmatprep.subr.bf16.mxu0 %v9034_v44  ;;  %5804 = vmatprep.subr.bf16.mxu1 %v9039_v56 }
 0xe9d   :  { %5764 = vmatpush1.bf16.msra.mxu0 %v9047_v1  ;;  %5805 = vmatpush1.bf16.msra.mxu1 %v9052_v33 }
 0xe9e   :  { %5765 = vmatprep.subr.bf16.mxu0 %v9059_v32  ;;  %5806 = vmatprep.subr.bf16.mxu1 %v9064_v34 }
 0xea1   :  { %5766 = vmatpush1.bf16.msra.mxu0 %v9071_v38  ;;  %5807 = vmatpush1.bf16.msra.mxu1 %v9076_v39 }
 0xf57   :  { %v5475_v31 = vpop.f32.mrb[88].mxu0  ;;  %v5516_v37 = vpop.f32.mrb[88].mxu1 }
 0xf58   :  { %v5523_v53 = vadd.f32 %v5475_v31, %v3271_v0  ;;  %v5525_v35 = vadd.f32 %v5516_v37, %v3344_v12  ;;  %v5477_v55 = vpop.f32.mrb[89].mxu0  ;;  %v5518_v54 = vpop.f32.mrb[89].mxu1 }
 0xf59   :  { %v5524_v58 = vadd.f32 %v5477_v55, %v3273_v8  ;;  %v5526_v60 = vadd.f32 %v5518_v54, %v3346_v27  ;;  %v5479_v57 = vpop.f32.mrb[90].mxu0  ;;  %v5520_v59 = vpop.f32.mrb[90].mxu1 }
 0xf5a   :  { %v6743_v5 = vmul.f32 -1.442695, %v5523_v53  ;;  %v5480_v14 = vpop.f32.mrb[91].mxu0  ;;  %v5521_v3 = vpop.f32.mrb[91].mxu1 }
 0xf5b   :  { %v6744_v29 = vmul.f32 -1.442695, %v5524_v58  ;;  %v6745_v19 = vmul.f32 -1.442695, %v5526_v60  ;;  %v6815_v60 = vld [vmem:[%s9271_s4 + $0x38] sm:$0xff] }
 0xf5c   :  { %7338 = vpow2.f32 %v6743_v5 }
 0xf5d   :  { %7340 = vpow2.f32 %v6744_v29 }
 0xf5e   :  { %7342 = vpow2.f32 %v6745_v19 }
 0xf5f   :  { %7344 = vtanh.f32 %v5525_v35 }
 0xf66   :  { %v7339_v44 = vpop.eup %7338 }
 0xf67   :  { %v7341_v56 = vpop.eup %7340  ;;  %v5530_v1 = vadd.f32 1.0, %v7339_v44 }
 0xf68   :  { %v5536_v33 = vadd.f32 1.0, %v7341_v56  ;;  %v7343_v32 = vpop.eup %7342 }
 0xf69   :  { %7346 = vrcp.f32 %v5530_v1  ;;  %v7345_v34 = vpop.eup %7344  ;;  %v5543_v21 = vadd.f32 1.0, %v7343_v32 }
 0xf6a   :  { %7348 = vrcp.f32 %v5536_v33 }
 0xf6b   :  { %7350 = vrcp.f32 %v5543_v21 }
 0xf73   :  { %v7347_v38 = vpop.eup %7346 }
 0xf74   :  { %v7349_v39 = vpop.eup %7348  ;;  %v5547_v24 = vmul.f32 %v7347_v38, %v7345_v34 }
 0xf75   :  { %v5546_v47 = vmul.f32 %v7349_v39, %v9197_v30  ;;  %v7351_v2 = vpop.eup %7350 }
 0xf77   :  { %v5548_v36 = vadd.f32 %v5547_v24, %v5546_v47 }
 0xf79   :  { %7352 = vtanh.f32 %v5548_v36 }
 0xf83   :  { %v7353_v28 = vpop.eup %7352 }
 0xf84   :  { %v5550_v45 = vmul.f32 %v7353_v28, %v7351_v2 }
 0xf86   :  { %v5552_v25 = vadd.f32 %v6746_v50, %v5550_v45  ;;  %v5558_v42 = vpack.c.bf16 %v5550_v45, %v5550_v45 }
 0xf88   :  { %6747 = vst [vmem:[%s9271_s4 + $0x30] sm:$0xff] %v5552_v25  ;;  %5784 = vmatmul.mubr.bf16.vlgmr.msra.gmra.mrb[92].mxu0 %v5558_v42  ;;  %5825 = vmatmul.mubr.bf16.vlgmr.msra.gmra.mrb[92].mxu1 %v5558_v42 }
0x105b   :  { %v5785_v10 = vpop.f32.mrb[92].mxu0  ;;  %v5826_v11 = vpop.f32.mrb[92].mxu1 }
0x105c   :  { %v5833_v13 = vadd.f32 %v5785_v10, %v3275_v62  ;;  %v5835_v61 = vadd.f32 %v5826_v11, %v3348_v63  ;;  %v5787_v30 = vpop.f32.mrb[93].mxu0  ;;  %v5828_v16 = vpop.f32.mrb[93].mxu1 }
0x105d   :  { %v5834_v22 = vadd.f32 %v5787_v30, %v3277_v52  ;;  %v5836_v9 = vadd.f32 %v5828_v16, %v3350_v7  ;;  %v5789_v43 = vpop.f32.mrb[94].mxu0  ;;  %v5830_v46 = vpop.f32.mrb[94].mxu1 }
0x105e   :  { %v6812_v49 = vmul.f32 -1.442695, %v5833_v13  ;;  %v5790_v18 = vpop.f32.mrb[95].mxu0  ;;  %v5831_v17 = vpop.f32.mrb[95].mxu1 }
0x105f   :  { %v6813_v15 = vmul.f32 -1.442695, %v5834_v22  ;;  %v6814_v20 = vmul.f32 -1.442695, %v5836_v9 }
0x1060   :  { %7354 = vpow2.f32 %v6812_v49 }
0x1061   :  { %7356 = vpow2.f32 %v6813_v15 }
0x1062   :  { %7358 = vpow2.f32 %v6814_v20 }
0x1063   :  { %7360 = vtanh.f32 %v5835_v61 }
0x106a   :  { %v7355_v0 = vpop.eup %7354 }
0x106b   :  { %v7357_v6 = vpop.eup %7356  ;;  %v5840_v51 = vadd.f32 1.0, %v7355_v0 }
0x106c   :  { %v5846_v12 = vadd.f32 1.0, %v7357_v6  ;;  %v7359_v48 = vpop.eup %7358 }
0x106d   :  { %7362 = vrcp.f32 %v5840_v51  ;;  %v7361_v8 = vpop.eup %7360  ;;  %v5853_v37 = vadd.f32 1.0, %v7359_v48 }
0x106e   :  { %7364 = vrcp.f32 %v5846_v12 }
0x106f   :  { %7366 = vrcp.f32 %v5853_v37 }
0x1077   :  { %v7363_v26 = vpop.eup %7362 }
0x1078   :  { %v7365_v27 = vpop.eup %7364  ;;  %v5857_v31 = vmul.f32 %v7363_v26, %v7361_v8 }
0x1079   :  { %v5856_v53 = vmul.f32 %v7365_v27, %v5548_v36  ;;  %v7367_v55 = vpop.eup %7366 }
0x107b   :  { %v5858_v35 = vadd.f32 %v5857_v31, %v5856_v53 }
0x107d   :  { %7368 = vtanh.f32 %v5858_v35 }
0x1087   :  { %v7369_v54 = vpop.eup %7368 }
0x1088   :  { %v5860_v58 = vmul.f32 %v7369_v54, %v7367_v55 }
0x108a   :  { %v5862_v57 = vadd.f32 %v6815_v60, %v5860_v58 }
0x108c   :  { %6816 = vst [vmem:[%s9271_s4 + $0x38] sm:$0xff] %v5862_v57 }

</bundles_post_ra>
